<compile_context>
chip_gen: v7x
topology: tpu7x:2x2x1
jax: 0.10.0
libtpu: 0.0.40
codegen_flags: <defaults>
</compile_context>

<pallas_src>
import jax
import jax.numpy as jnp
from jax import lax
from jax.experimental import pallas as pl
from jax.experimental.pallas import tpu as pltpu

B_TILE = 8  # f32 sublane tile on the batch axis


# ---------------------------------------------------------------------------
# the single fused forward kernel (one batch tile per grid step)
# ---------------------------------------------------------------------------
def _fused_forward_kernel(
    x_ref, mask_ref,
    g1_wih_ref, g1_bih_ref, g1_whhf_ref, g1_whhb_ref, g1_bhhf_ref, g1_bhhb_ref,
    g2_wih_ref, g2_bih_ref, g2_whhf_ref, g2_whhb_ref, g2_bhhf_ref, g2_bhhb_ref,
    wq_ref, bq_ref, wkv_ref, bkv_ref,
    cwt_ref, cwcs_ref, cwc0_ref, cwc2_ref, cb_ref,
    hw_ref, hb_ref,
    ps_ref, t_ref, tmax_ref,
    gi_ref, out_ref, y_ref,
):
    S, B, E = x_ref.shape
    H = E // 2
    H3 = 3 * H
    unroll = True if S <= 16 else 8   # bounded unroll for production-sized S

    def bigru_layer(x_val, wih_ref, bih_ref, whhf_ref, whhb_ref, bhhf_ref, bhhb_ref):
        # Hoisted input projection for BOTH directions: one (S*B,E)@(E,6H) MXU
        # call (bf16 operands, f32 accumulate). gi cols = [r_f z_f n_f | r_b z_b n_b].
        x2 = x_val.reshape(S * B, E).astype(jnp.bfloat16)
        gi = jnp.dot(x2, wih_ref[...], preferred_element_type=jnp.float32)
        gi_ref[...] = (gi + bih_ref[...]).reshape(S, B, 6 * H)

        whh_f = whhf_ref[...]    # [H, 3H] f32, gate cols [r z n]
        whh_b = whhb_ref[...]
        bhh_f = bhhf_ref[...]    # [1, 3H]
        bhh_b = bhhb_ref[...]

        def step(t, carry):
            h_f, h_b = carry
            gif = gi_ref[t]           # forward consumes position t
            gib = gi_ref[S - 1 - t]   # backward consumes position S-1-t
            gh_f = jnp.dot(h_f, whh_f, preferred_element_type=jnp.float32) + bhh_f
            gh_b = jnp.dot(h_b, whh_b, preferred_element_type=jnp.float32) + bhh_b
            # forward direction (PyTorch GRU: n = tanh(gi_n + r*(W_hn h + b_hn)))
            r_f = jax.nn.sigmoid(gif[:, 0:H] + gh_f[:, 0:H])
            z_f = jax.nn.sigmoid(gif[:, H:2 * H] + gh_f[:, H:2 * H])
            n_f = jnp.tanh(gif[:, 2 * H:3 * H] + r_f * gh_f[:, 2 * H:3 * H])
            h_f = (1.0 - z_f) * n_f + z_f * h_f
            # backward direction
            r_b = jax.nn.sigmoid(gib[:, H3:H3 + H] + gh_b[:, 0:H])
            z_b = jax.nn.sigmoid(gib[:, H3 + H:H3 + 2 * H] + gh_b[:, H:2 * H])
            n_b = jnp.tanh(gib[:, H3 + 2 * H:H3 + 3 * H] + r_b * gh_b[:, 2 * H:3 * H])
            h_b = (1.0 - z_b) * n_b + z_b * h_b
            # single combined (S,B,2H) output scratch, halves: [fwd | bwd]
            out_ref[t, :, 0:H] = h_f
            out_ref[S - 1 - t, :, H:2 * H] = h_b
            return (h_f, h_b)

        h0 = jnp.zeros((B, H), jnp.float32)
        lax.fori_loop(0, S, step, (h0, h0), unroll=unroll)
        return out_ref[...]   # [S, B, 2H]

    mask = mask_ref[...]                                      # [S, B, 1]
    t1 = bigru_layer(x_ref[...], g1_wih_ref, g1_bih_ref,
                     g1_whhf_ref, g1_whhb_ref, g1_bhhf_ref, g1_bhhb_ref)
    t2 = bigru_layer(t1, g2_wih_ref, g2_bih_ref,
                     g2_whhf_ref, g2_whhb_ref, g2_bhhf_ref, g2_bhhb_ref)
    t_ref[...] = t2

    # --- masked mean pool over the sequence axis ---
    sum_seq = jnp.sum(t2 * mask, axis=0)                      # [B, E]
    mask_sum = jnp.maximum(jnp.sum(mask, axis=0), 1e-10)      # [B, 1]
    t_max = sum_seq / mask_sum
    tmax_ref[...] = t_max

    # --- attention: query from pooled vec; fused key/value projection ---
    query = (jnp.dot(t_max, wq_ref[...], preferred_element_type=jnp.float32)
             + bq_ref[...])                                   # [B, E]
    t2_2d = t2.reshape(S * B, E).astype(jnp.bfloat16)         # reused for kv & conv
    kv = (jnp.dot(t2_2d, wkv_ref[...], preferred_element_type=jnp.float32)
          + bkv_ref[...]).reshape(S, B, 2 * E)
    key = kv[:, :, 0:E]
    value = kv[:, :, E:2 * E]
    scores = jnp.sum(key * query[None, :, :], axis=-1, keepdims=True)   # [S, B, 1]
    scores = scores - jnp.max(scores, axis=0, keepdims=True)
    w = jnp.exp(scores)
    w = w / jnp.sum(w, axis=0, keepdims=True)                 # softmax over sequence
    ctx = jnp.sum(w * value, axis=0)                          # [B, E]

    # --- Conv1d(k=3, pad=1) over channels [t | broadcast(ctx)], no pad/concat ---
    yt = jnp.dot(t2_2d, cwt_ref[...],
                 preferred_element_type=jnp.float32).reshape(S, B, 3 * E)  # taps 0,1,2
    yc_all = jnp.dot(ctx, cwcs_ref[...], preferred_element_type=jnp.float32)  # [B,E]
    yc0 = jnp.dot(ctx, cwc0_ref[...], preferred_element_type=jnp.float32)
    yc2 = jnp.dot(ctx, cwc2_ref[...], preferred_element_type=jnp.float32)

    # middle tap + position-independent ctx term + bias
    y_ref[...] = yt[:, :, E:2 * E] + (yc_all + cb_ref[...])[None, :, :]
    if S >= 2:
        # shifted taps via slice-adds (no zero-padding temporaries)
        y_ref[1:S] = y_ref[1:S] + yt[0:S - 1, :, 0:E]              # k=0 tap
        y_ref[0:S - 1] = y_ref[0:S - 1] + yt[1:S, :, 2 * E:3 * E]  # k=2 tap
        # ctx edge corrections only at the two boundary rows
        y_ref[0] = y_ref[0] - yc0
        y_ref[S - 1] = y_ref[S - 1] - yc2
    else:
        y_ref[0] = y_ref[0] - yc0 - yc2

    y = jnp.maximum(y_ref[...], 0.0)                          # ReLU

    # --- fused sigmoid heads (ps1 | ps2) in one [E, 2] matmul ---
    logits = (jnp.dot(y.reshape(S * B, E).astype(jnp.bfloat16), hw_ref[...],
                      preferred_element_type=jnp.float32)
              + hb_ref[...])
    ps_ref[...] = jax.nn.sigmoid(logits).reshape(S, B, 2)


# ---------------------------------------------------------------------------
# wrapper: embedding gather + mask in XLA, everything else in the fused kernel
# ---------------------------------------------------------------------------
def s_model_forward(tokens, packed):
    B, S = tokens.shape
    E = packed['emb'].shape[1]
    H = E // 2

    n_btiles = -(-B // B_TILE)
    B_pad = n_btiles * B_TILE

    # gather directly into [S, B_pad, E]: transpose the tiny int token matrix,
    # never the [.,.,E] activations. Padded batch rows use token 0 -> fully masked.
    tok_sb = jnp.transpose(tokens, (1, 0))                       # [S, B]
    if B_pad != B:
        tok_sb = jnp.pad(tok_sb, ((0, 0), (0, B_pad - B)))
    mask_sb1 = (tok_sb > 0).astype(jnp.float32)[:, :, None]      # [S, B_pad, 1]
    x_sbe = jnp.take(packed['emb'], tok_sb, axis=0) * mask_sb1   # fc1_dropout = identity (eval)

    def tile_spec(shape, batch_axis):
        nd = len(shape)
        blk = tuple(B_TILE if a == batch_axis else shape[a] for a in range(nd))
        idx = lambda b, ax=batch_axis, nd=nd: tuple(b if a == ax else 0 for a in range(nd))
        return pl.BlockSpec(blk, idx)

    def full_spec(arr):
        nd = arr.ndim
        return pl.BlockSpec(arr.shape, lambda b, nd=nd: (0,) * nd)

    weight_names = [
        'g1_wih', 'g1_bih', 'g1_whh_f', 'g1_whh_b', 'g1_bhh_f', 'g1_bhh_b',
        'g2_wih', 'g2_bih', 'g2_whh_f', 'g2_whh_b', 'g2_bhh_f', 'g2_bhh_b',
        'attn_wq', 'attn_bq', 'attn_wkv', 'attn_bkv',
        'conv_wt', 'conv_wc_sum', 'conv_wc0', 'conv_wc2', 'conv_b',
        'heads_w', 'heads_b',
    ]
    weights = [packed[n] for n in weight_names]

    in_specs = ([tile_spec((S, B_pad, E), 1), tile_spec((S, B_pad, 1), 1)]
                + [full_spec(w) for w in weights])
    out_specs = (tile_spec((S, B_pad, 2), 1),
                 tile_spec((S, B_pad, E), 1),
                 tile_spec((B_pad, E), 0))
    out_shape = (jax.ShapeDtypeStruct((S, B_pad, 2), jnp.float32),
                 jax.ShapeDtypeStruct((S, B_pad, E), jnp.float32),
                 jax.ShapeDtypeStruct((B_pad, E), jnp.float32))

    fused = pl.pallas_call(
        _fused_forward_kernel,
        grid=(n_btiles,),
        in_specs=in_specs,
        out_specs=out_specs,
        out_shape=out_shape,
        scratch_shapes=[
            pltpu.VMEM((S, B_TILE, 6 * H), jnp.float32),   # gi (shared by both GRU layers)
            pltpu.VMEM((S, B_TILE, 2 * H), jnp.float32),   # BiGRU outputs (t1 then t2)
            pltpu.VMEM((S, B_TILE, E), jnp.float32),       # conv output y
        ],
        compiler_params=pltpu.CompilerParams(
            dimension_semantics=("parallel",),
            vmem_limit_bytes=32 * 1024 * 1024,             # safe on v5e/v6e/v7x
        ),
    )
    ps, t_sbe, t_max = fused(x_sbe, mask_sb1, *weights)

    # drop batch padding
    ps = ps[:, 0:B]
    t_sbe = t_sbe[:, 0:B]
    t_max = t_max[0:B]

    # TODO(synk): fold these small [S,B,*]->[B,S,*] transposes into the kernel's
    # output layout at production sizes (today they are a negligible extra pass).
    ps_bs = jnp.transpose(ps, (1, 0, 2))                     # [B, S, 2]
    t_out = jnp.transpose(t_sbe, (1, 0, 2))                  # [B, S, E]
    mask_out = (tokens > 0).astype(jnp.float32)[:, :, None]  # [B, S, 1]
    return [ps_bs[:, :, 0:1], ps_bs[:, :, 1:2], t_out, t_max, mask_out]


# ---------------------------------------------------------------------------
# deterministic synthetic parameters (PyTorch-like layout) + kernel packing
# ---------------------------------------------------------------------------
def init_params(key, V, E):
    H = E // 2
    ks = list(jax.random.split(key, 32))
    it = iter(ks)

    def lin(fan_in, shape):
        return (jax.random.uniform(next(it), shape, jnp.float32, -1.0, 1.0)
                / jnp.sqrt(jnp.float32(fan_in)))

    params = {}
    params['emb'] = jax.random.normal(next(it), (V, E), jnp.float32) * 0.1
    for g in ('g1', 'g2'):
        for d in ('f', 'b'):
            params[f'{g}_wih_{d}'] = lin(E, (E, 3 * H))   # [in, 3H], gate order r,z,n
            params[f'{g}_whh_{d}'] = lin(H, (H, 3 * H))
            params[f'{g}_bih_{d}'] = lin(H, (1, 3 * H))
            params[f'{g}_bhh_{d}'] = lin(H, (1, 3 * H))
    for n in ('q', 'k', 'v'):
        params[f'attn_w{n}'] = lin(E, (E, E))             # [in, out]
        params[f'attn_b{n}'] = lin(E, (1, E))
    conv_w = lin(2 * E * 3, (E, 2 * E, 3))                # [out, in, k] (PyTorch layout)
    for k in range(3):
        params[f'conv_w{k}'] = jnp.transpose(conv_w[:, :, k])   # [2E(in), E(out)]
    params['conv_b'] = lin(2 * E * 3, (1, E))
    params['ps1_w'] = lin(E, (E, 1))
    params['ps1_b'] = lin(E, (1, 1))
    params['ps2_w'] = lin(E, (E, 1))
    params['ps2_b'] = lin(E, (1, 1))
    return params


def pack_params(p, E):
    """Pack per-direction / per-tap weights into the fused-kernel layouts.
    Large hoisted-matmul weights are stored in bf16 (MXU inputs); everything on
    the recurrence / gate-math path stays f32."""
    H = E // 2
    bf = jnp.bfloat16
    packed = {'emb': p['emb']}
    for g in ('g1', 'g2'):
        # input weights: [wih_f | wih_b] -> [E, 6H], cols [r_f z_f n_f | r_b z_b n_b]
        packed[f'{g}_wih'] = jnp.concatenate(
            [p[f'{g}_wih_f'], p[f'{g}_wih_b']], axis=1).astype(bf)
        packed[f'{g}_bih'] = jnp.concatenate(
            [p[f'{g}_bih_f'], p[f'{g}_bih_b']], axis=1)
        # per-direction recurrent weights (no block-diag / no per-step concats)
        packed[f'{g}_whh_f'] = p[f'{g}_whh_f']            # [H, 3H] f32
        packed[f'{g}_whh_b'] = p[f'{g}_whh_b']
        packed[f'{g}_bhh_f'] = p[f'{g}_bhh_f']            # [1, 3H] f32
        packed[f'{g}_bhh_b'] = p[f'{g}_bhh_b']
    packed['attn_wq'] = p['attn_wq']
    packed['attn_bq'] = p['attn_bq']
    packed['attn_wkv'] = jnp.concatenate([p['attn_wk'], p['attn_wv']], axis=1).astype(bf)
    packed['attn_bkv'] = jnp.concatenate([p['attn_bk'], p['attn_bv']], axis=1)
    cwt, cwc = [], []
    for k in range(3):
        wk = p[f'conv_w{k}']          # [2E, E]
        cwt.append(wk[0:E, :])        # t-half of input channels
        cwc.append(wk[E:2 * E, :])    # ctx-half of input channels
    packed['conv_wt'] = jnp.concatenate(cwt, axis=1).astype(bf)       # [E, 3E]
    packed['conv_wc_sum'] = cwc[0] + cwc[1] + cwc[2]                  # f32 (small)
    packed['conv_wc0'] = cwc[0]
    packed['conv_wc2'] = cwc[2]
    packed['conv_b'] = p['conv_b']
    packed['heads_w'] = jnp.concatenate([p['ps1_w'], p['ps2_w']], axis=1).astype(bf)  # [E,2]
    packed['heads_b'] = jnp.concatenate([p['ps1_b'], p['ps2_b']], axis=1)             # [1,2]
    return packed


if __name__ == "__main__":
    V, E = 50, 32        # word_dict_length, word_emb_size (GRU hidden = E // 2)
    B, S = 2, 8

    key = jax.random.PRNGKey(0)
    k_tok, k_par = jax.random.split(key)
    tokens = jax.random.randint(k_tok, (B, S), 0, V).astype(jnp.int32)
    params = init_params(k_par, V, E)
    packed = pack_params(params, E)

    fwd = jax.jit(s_model_forward)
    outs = fwd(tokens, packed)
    outs = jax.block_until_ready(outs)

    ps1, ps2, t_out, t_max, mask = outs
    assert ps1.shape == (B, S, 1) and ps2.shape == (B, S, 1)
    assert t_out.shape == (B, S, E)
    assert t_max.shape == (B, E)
    assert mask.shape == (B, S, 1)
    assert bool(jnp.all(jnp.isfinite(ps1))) and bool(jnp.all(jnp.isfinite(ps2)))
    assert bool(jnp.all(jnp.isfinite(t_out))) and bool(jnp.all(jnp.isfinite(t_max)))
    print("KERNEL_OK")
</pallas_src>

<mosaic_0001>
module attributes {stable_mosaic.version = 11 : i64} {
  func.func @_fused_forward_kernel(%arg0: i32, %arg1: memref<8x8x32xf32, #tpu.memory_space<vmem>>, %arg2: memref<8x8x1xf32, #tpu.memory_space<vmem>>, %arg3: memref<32x96xbf16, #tpu.memory_space<vmem>>, %arg4: memref<1x96xf32, #tpu.memory_space<vmem>>, %arg5: memref<16x48xf32, #tpu.memory_space<vmem>>, %arg6: memref<16x48xf32, #tpu.memory_space<vmem>>, %arg7: memref<1x48xf32, #tpu.memory_space<vmem>>, %arg8: memref<1x48xf32, #tpu.memory_space<vmem>>, %arg9: memref<32x96xbf16, #tpu.memory_space<vmem>>, %arg10: memref<1x96xf32, #tpu.memory_space<vmem>>, %arg11: memref<16x48xf32, #tpu.memory_space<vmem>>, %arg12: memref<16x48xf32, #tpu.memory_space<vmem>>, %arg13: memref<1x48xf32, #tpu.memory_space<vmem>>, %arg14: memref<1x48xf32, #tpu.memory_space<vmem>>, %arg15: memref<32x32xf32, #tpu.memory_space<vmem>>, %arg16: memref<1x32xf32, #tpu.memory_space<vmem>>, %arg17: memref<32x64xbf16, #tpu.memory_space<vmem>>, %arg18: memref<1x64xf32, #tpu.memory_space<vmem>>, %arg19: memref<32x96xbf16, #tpu.memory_space<vmem>>, %arg20: memref<32x32xf32, #tpu.memory_space<vmem>>, %arg21: memref<32x32xf32, #tpu.memory_space<vmem>>, %arg22: memref<32x32xf32, #tpu.memory_space<vmem>>, %arg23: memref<1x32xf32, #tpu.memory_space<vmem>>, %arg24: memref<32x2xbf16, #tpu.memory_space<vmem>>, %arg25: memref<1x2xf32, #tpu.memory_space<vmem>>, %arg26: memref<8x8x2xf32, #tpu.memory_space<vmem>>, %arg27: memref<8x8x32xf32, #tpu.memory_space<vmem>>, %arg28: memref<8x32xf32, #tpu.memory_space<vmem>>, %arg29: memref<8x8x96xf32, #tpu.memory_space<vmem>>, %arg30: memref<8x8x32xf32, #tpu.memory_space<vmem>>, %arg31: memref<8x8x32xf32, #tpu.memory_space<vmem>>) attributes {dimension_semantics = [#tpu.dimension_semantics<parallel>], iteration_bounds = array<i64: 1>, scalar_prefetch = 0 : i64, scratch_operands = 3 : i64, tpu.core_type = #tpu.core_type<tc>, window_params = [{transform_indices = @transform_0, window_bounds = array<i64: 8, 8, 32>}, {transform_indices = @transform_1, window_bounds = array<i64: 8, 8, 1>}, {pipeline_mode = #tpu.pipeline_mode<synchronous>, transform_indices = @transform_2, window_bounds = array<i64: 32, 96>}, {pipeline_mode = #tpu.pipeline_mode<synchronous>, transform_indices = @transform_3, window_bounds = array<i64: 1, 96>}, {pipeline_mode = #tpu.pipeline_mode<synchronous>, transform_indices = @transform_4, window_bounds = array<i64: 16, 48>}, {pipeline_mode = #tpu.pipeline_mode<synchronous>, transform_indices = @transform_5, window_bounds = array<i64: 16, 48>}, {pipeline_mode = #tpu.pipeline_mode<synchronous>, transform_indices = @transform_6, window_bounds = array<i64: 1, 48>}, {pipeline_mode = #tpu.pipeline_mode<synchronous>, transform_indices = @transform_7, window_bounds = array<i64: 1, 48>}, {pipeline_mode = #tpu.pipeline_mode<synchronous>, transform_indices = @transform_8, window_bounds = array<i64: 32, 96>}, {pipeline_mode = #tpu.pipeline_mode<synchronous>, transform_indices = @transform_9, window_bounds = array<i64: 1, 96>}, {pipeline_mode = #tpu.pipeline_mode<synchronous>, transform_indices = @transform_10, window_bounds = array<i64: 16, 48>}, {pipeline_mode = #tpu.pipeline_mode<synchronous>, transform_indices = @transform_11, window_bounds = array<i64: 16, 48>}, {pipeline_mode = #tpu.pipeline_mode<synchronous>, transform_indices = @transform_12, window_bounds = array<i64: 1, 48>}, {pipeline_mode = #tpu.pipeline_mode<synchronous>, transform_indices = @transform_13, window_bounds = array<i64: 1, 48>}, {pipeline_mode = #tpu.pipeline_mode<synchronous>, transform_indices = @transform_14, window_bounds = array<i64: 32, 32>}, {pipeline_mode = #tpu.pipeline_mode<synchronous>, transform_indices = @transform_15, window_bounds = array<i64: 1, 32>}, {pipeline_mode = #tpu.pipeline_mode<synchronous>, transform_indices = @transform_16, window_bounds = array<i64: 32, 64>}, {pipeline_mode = #tpu.pipeline_mode<synchronous>, transform_indices = @transform_17, window_bounds = array<i64: 1, 64>}, {pipeline_mode = #tpu.pipeline_mode<synchronous>, transform_indices = @transform_18, window_bounds = array<i64: 32, 96>}, {pipeline_mode = #tpu.pipeline_mode<synchronous>, transform_indices = @transform_19, window_bounds = array<i64: 32, 32>}, {pipeline_mode = #tpu.pipeline_mode<synchronous>, transform_indices = @transform_20, window_bounds = array<i64: 32, 32>}, {pipeline_mode = #tpu.pipeline_mode<synchronous>, transform_indices = @transform_21, window_bounds = array<i64: 32, 32>}, {pipeline_mode = #tpu.pipeline_mode<synchronous>, transform_indices = @transform_22, window_bounds = array<i64: 1, 32>}, {pipeline_mode = #tpu.pipeline_mode<synchronous>, transform_indices = @transform_23, window_bounds = array<i64: 32, 2>}, {pipeline_mode = #tpu.pipeline_mode<synchronous>, transform_indices = @transform_24, window_bounds = array<i64: 1, 2>}, {transform_indices = @transform_25, window_bounds = array<i64: 8, 8, 2>}, {transform_indices = @transform_26, window_bounds = array<i64: 8, 8, 32>}, {transform_indices = @transform_27, window_bounds = array<i64: 8, 32>}]} {
    %c0 = arith.constant 0 : index
    %c0_0 = arith.constant 0 : index
    %c0_1 = arith.constant 0 : index
    %0 = vector.load %arg2[%c0, %c0_0, %c0_1] : memref<8x8x1xf32, #tpu.memory_space<vmem>>, vector<8x8x1xf32>
    %c0_2 = arith.constant 0 : index
    %c0_3 = arith.constant 0 : index
    %c0_4 = arith.constant 0 : index
    %1 = vector.load %arg1[%c0_2, %c0_3, %c0_4] : memref<8x8x32xf32, #tpu.memory_space<vmem>>, vector<8x8x32xf32>
    %2 = vector.shape_cast %1 : vector<8x8x32xf32> to vector<64x32xf32>
    %3 = arith.truncf %2 : vector<64x32xf32> to vector<64x32xbf16>
    %c0_5 = arith.constant 0 : index
    %c0_6 = arith.constant 0 : index
    %4 = vector.load %arg3[%c0_5, %c0_6] : memref<32x96xbf16, #tpu.memory_space<vmem>>, vector<32x96xbf16>
    %cst = arith.constant dense<0.000000e+00> : vector<64x96xf32>
    %5 = tpu.matmul %3, %4, %cst {dimension_numbers = #tpu.dot_dimension_numbers<[1], [0], [0], [1], [0, 0, 1, 1], [], []>} : vector<64x32xbf16>, vector<32x96xbf16>, vector<64x96xf32> -> vector<64x96xf32>
    %c0_7 = arith.constant 0 : index
    %c0_8 = arith.constant 0 : index
    %6 = vector.load %arg4[%c0_7, %c0_8] : memref<1x96xf32, #tpu.memory_space<vmem>>, vector<1x96xf32>
    %7 = vector.broadcast %6 : vector<1x96xf32> to vector<64x96xf32>
    %8 = arith.addf %5, %7 : vector<64x96xf32>
    %9 = vector.shape_cast %8 : vector<64x96xf32> to vector<8x8x96xf32>
    %c0_9 = arith.constant 0 : index
    %c0_10 = arith.constant 0 : index
    %c0_11 = arith.constant 0 : index
    %10 = vector.load %arg29[%c0_9, %c0_10, %c0_11] : memref<8x8x96xf32, #tpu.memory_space<vmem>>, vector<8x8x96xf32>
    tpu.vector_store %arg29[%c0_9, %c0_10, %c0_11], %9 {strides = array<i32>} : memref<8x8x96xf32, #tpu.memory_space<vmem>>, vector<8x8x96xf32>,
    %c0_12 = arith.constant 0 : index
    %c0_13 = arith.constant 0 : index
    %11 = vector.load %arg5[%c0_12, %c0_13] : memref<16x48xf32, #tpu.memory_space<vmem>>, vector<16x48xf32>
    %c0_14 = arith.constant 0 : index
    %c0_15 = arith.constant 0 : index
    %12 = vector.load %arg6[%c0_14, %c0_15] : memref<16x48xf32, #tpu.memory_space<vmem>>, vector<16x48xf32>
    %c0_16 = arith.constant 0 : index
    %c0_17 = arith.constant 0 : index
    %13 = vector.load %arg7[%c0_16, %c0_17] : memref<1x48xf32, #tpu.memory_space<vmem>>, vector<1x48xf32>
    %c0_18 = arith.constant 0 : index
    %c0_19 = arith.constant 0 : index
    %14 = vector.load %arg8[%c0_18, %c0_19] : memref<1x48xf32, #tpu.memory_space<vmem>>, vector<1x48xf32>
    %cst_20 = arith.constant 0.000000e+00 : f32
    %15 = vector.broadcast %cst_20 : f32 to vector<8x16xf32>
    %c0_i32 = arith.constant 0 : i32
    %16 = arith.index_cast %c0_i32 : i32 to index
    %c0_21 = arith.constant 0 : index
    %c0_22 = arith.constant 0 : index
    %17 = vector.load %arg29[%16, %c0_21, %c0_22] : memref<8x8x96xf32, #tpu.memory_space<vmem>>, vector<1x8x96xf32>
    %18 = vector.shape_cast %17 : vector<1x8x96xf32> to vector<8x96xf32>
    %c7_i32 = arith.constant 7 : i32
    %19 = arith.subi %c7_i32, %c0_i32 : i32
    %20 = arith.index_cast %19 : i32 to index
    %c0_23 = arith.constant 0 : index
    %c0_24 = arith.constant 0 : index
    %21 = vector.load %arg29[%20, %c0_23, %c0_24] : memref<8x8x96xf32, #tpu.memory_space<vmem>>, vector<1x8x96xf32>
    %22 = vector.shape_cast %21 : vector<1x8x96xf32> to vector<8x96xf32>
    %cst_25 = arith.constant dense<0.000000e+00> : vector<8x48xf32>
    %23 = tpu.matmul %15, %11, %cst_25 {dimension_numbers = #tpu.dot_dimension_numbers<[1], [0], [0], [1], [0, 0, 1, 1], [], []>} : vector<8x16xf32>, vector<16x48xf32>, vector<8x48xf32> -> vector<8x48xf32>
    %24 = vector.broadcast %13 : vector<1x48xf32> to vector<8x48xf32>
    %25 = arith.addf %23, %24 : vector<8x48xf32>
    %cst_26 = arith.constant dense<0.000000e+00> : vector<8x48xf32>
    %26 = tpu.matmul %15, %12, %cst_26 {dimension_numbers = #tpu.dot_dimension_numbers<[1], [0], [0], [1], [0, 0, 1, 1], [], []>} : vector<8x16xf32>, vector<16x48xf32>, vector<8x48xf32> -> vector<8x48xf32>
    %27 = vector.broadcast %14 : vector<1x48xf32> to vector<8x48xf32>
    %28 = arith.addf %26, %27 : vector<8x48xf32>
    %29 = vector.extract_strided_slice %18 {offsets = [0, 0], sizes = [8, 16], strides = [1, 1]} : vector<8x96xf32> to vector<8x16xf32>
    %30 = vector.extract_strided_slice %25 {offsets = [0, 0], sizes = [8, 16], strides = [1, 1]} : vector<8x48xf32> to vector<8x16xf32>
    %31 = arith.addf %29, %30 : vector<8x16xf32>
    %32 = arith.negf %31 : vector<8x16xf32>
    %33 = math.exp %32 : vector<8x16xf32>
    %cst_27 = arith.constant 1.000000e+00 : f32
    %34 = vector.broadcast %cst_27 : f32 to vector<8x16xf32>
    %35 = arith.addf %34, %33 : vector<8x16xf32>
    %36 = arith.divf %34, %35 : vector<8x16xf32>
    %37 = vector.extract_strided_slice %18 {offsets = [0, 16], sizes = [8, 16], strides = [1, 1]} : vector<8x96xf32> to vector<8x16xf32>
    %38 = vector.extract_strided_slice %25 {offsets = [0, 16], sizes = [8, 16], strides = [1, 1]} : vector<8x48xf32> to vector<8x16xf32>
    %39 = arith.addf %37, %38 : vector<8x16xf32>
    %40 = arith.negf %39 : vector<8x16xf32>
    %41 = math.exp %40 : vector<8x16xf32>
    %cst_28 = arith.constant 1.000000e+00 : f32
    %42 = vector.broadcast %cst_28 : f32 to vector<8x16xf32>
    %43 = arith.addf %42, %41 : vector<8x16xf32>
    %44 = arith.divf %42, %43 : vector<8x16xf32>
    %45 = vector.extract_strided_slice %18 {offsets = [0, 32], sizes = [8, 16], strides = [1, 1]} : vector<8x96xf32> to vector<8x16xf32>
    %46 = vector.extract_strided_slice %25 {offsets = [0, 32], sizes = [8, 16], strides = [1, 1]} : vector<8x48xf32> to vector<8x16xf32>
    %47 = arith.mulf %36, %46 : vector<8x16xf32>
    %48 = arith.addf %45, %47 : vector<8x16xf32>
    %49 = math.tanh %48 : vector<8x16xf32>
    %cst_29 = arith.constant 1.000000e+00 : f32
    %50 = vector.broadcast %cst_29 : f32 to vector<8x16xf32>
    %51 = arith.subf %50, %44 : vector<8x16xf32>
    %52 = arith.mulf %51, %49 : vector<8x16xf32>
    %53 = arith.mulf %44, %15 : vector<8x16xf32>
    %54 = arith.addf %52, %53 : vector<8x16xf32>
    %55 = vector.extract_strided_slice %22 {offsets = [0, 48], sizes = [8, 16], strides = [1, 1]} : vector<8x96xf32> to vector<8x16xf32>
    %56 = vector.extract_strided_slice %28 {offsets = [0, 0], sizes = [8, 16], strides = [1, 1]} : vector<8x48xf32> to vector<8x16xf32>
    %57 = arith.addf %55, %56 : vector<8x16xf32>
    %58 = arith.negf %57 : vector<8x16xf32>
    %59 = math.exp %58 : vector<8x16xf32>
    %cst_30 = arith.constant 1.000000e+00 : f32
    %60 = vector.broadcast %cst_30 : f32 to vector<8x16xf32>
    %61 = arith.addf %60, %59 : vector<8x16xf32>
    %62 = arith.divf %60, %61 : vector<8x16xf32>
    %63 = vector.extract_strided_slice %22 {offsets = [0, 64], sizes = [8, 16], strides = [1, 1]} : vector<8x96xf32> to vector<8x16xf32>
    %64 = vector.extract_strided_slice %28 {offsets = [0, 16], sizes = [8, 16], strides = [1, 1]} : vector<8x48xf32> to vector<8x16xf32>
    %65 = arith.addf %63, %64 : vector<8x16xf32>
    %66 = arith.negf %65 : vector<8x16xf32>
    %67 = math.exp %66 : vector<8x16xf32>
    %cst_31 = arith.constant 1.000000e+00 : f32
    %68 = vector.broadcast %cst_31 : f32 to vector<8x16xf32>
    %69 = arith.addf %68, %67 : vector<8x16xf32>
    %70 = arith.divf %68, %69 : vector<8x16xf32>
    %71 = vector.extract_strided_slice %22 {offsets = [0, 80], sizes = [8, 16], strides = [1, 1]} : vector<8x96xf32> to vector<8x16xf32>
    %72 = vector.extract_strided_slice %28 {offsets = [0, 32], sizes = [8, 16], strides = [1, 1]} : vector<8x48xf32> to vector<8x16xf32>
    %73 = arith.mulf %62, %72 : vector<8x16xf32>
    %74 = arith.addf %71, %73 : vector<8x16xf32>
    %75 = math.tanh %74 : vector<8x16xf32>
    %cst_32 = arith.constant 1.000000e+00 : f32
    %76 = vector.broadcast %cst_32 : f32 to vector<8x16xf32>
    %77 = arith.subf %76, %70 : vector<8x16xf32>
    %78 = arith.mulf %77, %75 : vector<8x16xf32>
    %79 = arith.mulf %70, %15 : vector<8x16xf32>
    %80 = arith.addf %78, %79 : vector<8x16xf32>
    %81 = arith.index_cast %c0_i32 : i32 to index
    %c0_33 = arith.constant 0 : index
    %c0_34 = arith.constant 0 : index
    %82 = vector.load %arg30[%81, %c0_33, %c0_34] : memref<8x8x32xf32, #tpu.memory_space<vmem>>, vector<1x8x16xf32>
    %83 = vector.shape_cast %82 : vector<1x8x16xf32> to vector<8x16xf32>
    %84 = vector.shape_cast %54 : vector<8x16xf32> to vector<1x8x16xf32>
    tpu.vector_store %arg30[%81, %c0_33, %c0_34], %84 {strides = array<i32>} : memref<8x8x32xf32, #tpu.memory_space<vmem>>, vector<1x8x16xf32>,
    %c7_i32_35 = arith.constant 7 : i32
    %85 = arith.subi %c7_i32_35, %c0_i32 : i32
    %86 = arith.index_cast %85 : i32 to index
    %c0_36 = arith.constant 0 : index
    %c16 = arith.constant 16 : index
    %87 = vector.load %arg30[%86, %c0_36, %c16] : memref<8x8x32xf32, #tpu.memory_space<vmem>>, vector<1x8x16xf32>
    %88 = vector.shape_cast %87 : vector<1x8x16xf32> to vector<8x16xf32>
    %89 = vector.shape_cast %80 : vector<8x16xf32> to vector<1x8x16xf32>
    tpu.vector_store %arg30[%86, %c0_36, %c16], %89 {strides = array<i32>} : memref<8x8x32xf32, #tpu.memory_space<vmem>>, vector<1x8x16xf32>,
    %c1_i32 = arith.constant 1 : i32
    %90 = arith.index_cast %c1_i32 : i32 to index
    %c0_37 = arith.constant 0 : index
    %c0_38 = arith.constant 0 : index
    %91 = vector.load %arg29[%90, %c0_37, %c0_38] : memref<8x8x96xf32, #tpu.memory_space<vmem>>, vector<1x8x96xf32>
    %92 = vector.shape_cast %91 : vector<1x8x96xf32> to vector<8x96xf32>
    %c7_i32_39 = arith.constant 7 : i32
    %93 = arith.subi %c7_i32_39, %c1_i32 : i32
    %94 = arith.index_cast %93 : i32 to index
    %c0_40 = arith.constant 0 : index
    %c0_41 = arith.constant 0 : index
    %95 = vector.load %arg29[%94, %c0_40, %c0_41] : memref<8x8x96xf32, #tpu.memory_space<vmem>>, vector<1x8x96xf32>
    %96 = vector.shape_cast %95 : vector<1x8x96xf32> to vector<8x96xf32>
    %cst_42 = arith.constant dense<0.000000e+00> : vector<8x48xf32>
    %97 = tpu.matmul %54, %11, %cst_42 {dimension_numbers = #tpu.dot_dimension_numbers<[1], [0], [0], [1], [0, 0, 1, 1], [], []>} : vector<8x16xf32>, vector<16x48xf32>, vector<8x48xf32> -> vector<8x48xf32>
    %98 = vector.broadcast %13 : vector<1x48xf32> to vector<8x48xf32>
    %99 = arith.addf %97, %98 : vector<8x48xf32>
    %cst_43 = arith.constant dense<0.000000e+00> : vector<8x48xf32>
    %100 = tpu.matmul %80, %12, %cst_43 {dimension_numbers = #tpu.dot_dimension_numbers<[1], [0], [0], [1], [0, 0, 1, 1], [], []>} : vector<8x16xf32>, vector<16x48xf32>, vector<8x48xf32> -> vector<8x48xf32>
    %101 = vector.broadcast %14 : vector<1x48xf32> to vector<8x48xf32>
    %102 = arith.addf %100, %101 : vector<8x48xf32>
    %103 = vector.extract_strided_slice %92 {offsets = [0, 0], sizes = [8, 16], strides = [1, 1]} : vector<8x96xf32> to vector<8x16xf32>
    %104 = vector.extract_strided_slice %99 {offsets = [0, 0], sizes = [8, 16], strides = [1, 1]} : vector<8x48xf32> to vector<8x16xf32>
    %105 = arith.addf %103, %104 : vector<8x16xf32>
    %106 = arith.negf %105 : vector<8x16xf32>
    %107 = math.exp %106 : vector<8x16xf32>
    %cst_44 = arith.constant 1.000000e+00 : f32
    %108 = vector.broadcast %cst_44 : f32 to vector<8x16xf32>
    %109 = arith.addf %108, %107 : vector<8x16xf32>
    %110 = arith.divf %108, %109 : vector<8x16xf32>
    %111 = vector.extract_strided_slice %92 {offsets = [0, 16], sizes = [8, 16], strides = [1, 1]} : vector<8x96xf32> to vector<8x16xf32>
    %112 = vector.extract_strided_slice %99 {offsets = [0, 16], sizes = [8, 16], strides = [1, 1]} : vector<8x48xf32> to vector<8x16xf32>
    %113 = arith.addf %111, %112 : vector<8x16xf32>
    %114 = arith.negf %113 : vector<8x16xf32>
    %115 = math.exp %114 : vector<8x16xf32>
    %cst_45 = arith.constant 1.000000e+00 : f32
    %116 = vector.broadcast %cst_45 : f32 to vector<8x16xf32>
    %117 = arith.addf %116, %115 : vector<8x16xf32>
    %118 = arith.divf %116, %117 : vector<8x16xf32>
    %119 = vector.extract_strided_slice %92 {offsets = [0, 32], sizes = [8, 16], strides = [1, 1]} : vector<8x96xf32> to vector<8x16xf32>
    %120 = vector.extract_strided_slice %99 {offsets = [0, 32], sizes = [8, 16], strides = [1, 1]} : vector<8x48xf32> to vector<8x16xf32>
    %121 = arith.mulf %110, %120 : vector<8x16xf32>
    %122 = arith.addf %119, %121 : vector<8x16xf32>
    %123 = math.tanh %122 : vector<8x16xf32>
    %cst_46 = arith.constant 1.000000e+00 : f32
    %124 = vector.broadcast %cst_46 : f32 to vector<8x16xf32>
    %125 = arith.subf %124, %118 : vector<8x16xf32>
    %126 = arith.mulf %125, %123 : vector<8x16xf32>
    %127 = arith.mulf %118, %54 : vector<8x16xf32>
    %128 = arith.addf %126, %127 : vector<8x16xf32>
    %129 = vector.extract_strided_slice %96 {offsets = [0, 48], sizes = [8, 16], strides = [1, 1]} : vector<8x96xf32> to vector<8x16xf32>
    %130 = vector.extract_strided_slice %102 {offsets = [0, 0], sizes = [8, 16], strides = [1, 1]} : vector<8x48xf32> to vector<8x16xf32>
    %131 = arith.addf %129, %130 : vector<8x16xf32>
    %132 = arith.negf %131 : vector<8x16xf32>
    %133 = math.exp %132 : vector<8x16xf32>
    %cst_47 = arith.constant 1.000000e+00 : f32
    %134 = vector.broadcast %cst_47 : f32 to vector<8x16xf32>
    %135 = arith.addf %134, %133 : vector<8x16xf32>
    %136 = arith.divf %134, %135 : vector<8x16xf32>
    %137 = vector.extract_strided_slice %96 {offsets = [0, 64], sizes = [8, 16], strides = [1, 1]} : vector<8x96xf32> to vector<8x16xf32>
    %138 = vector.extract_strided_slice %102 {offsets = [0, 16], sizes = [8, 16], strides = [1, 1]} : vector<8x48xf32> to vector<8x16xf32>
    %139 = arith.addf %137, %138 : vector<8x16xf32>
    %140 = arith.negf %139 : vector<8x16xf32>
    %141 = math.exp %140 : vector<8x16xf32>
    %cst_48 = arith.constant 1.000000e+00 : f32
    %142 = vector.broadcast %cst_48 : f32 to vector<8x16xf32>
    %143 = arith.addf %142, %141 : vector<8x16xf32>
    %144 = arith.divf %142, %143 : vector<8x16xf32>
    %145 = vector.extract_strided_slice %96 {offsets = [0, 80], sizes = [8, 16], strides = [1, 1]} : vector<8x96xf32> to vector<8x16xf32>
    %146 = vector.extract_strided_slice %102 {offsets = [0, 32], sizes = [8, 16], strides = [1, 1]} : vector<8x48xf32> to vector<8x16xf32>
    %147 = arith.mulf %136, %146 : vector<8x16xf32>
    %148 = arith.addf %145, %147 : vector<8x16xf32>
    %149 = math.tanh %148 : vector<8x16xf32>
    %cst_49 = arith.constant 1.000000e+00 : f32
    %150 = vector.broadcast %cst_49 : f32 to vector<8x16xf32>
    %151 = arith.subf %150, %144 : vector<8x16xf32>
    %152 = arith.mulf %151, %149 : vector<8x16xf32>
    %153 = arith.mulf %144, %80 : vector<8x16xf32>
    %154 = arith.addf %152, %153 : vector<8x16xf32>
    %155 = arith.index_cast %c1_i32 : i32 to index
    %c0_50 = arith.constant 0 : index
    %c0_51 = arith.constant 0 : index
    %156 = vector.load %arg30[%155, %c0_50, %c0_51] : memref<8x8x32xf32, #tpu.memory_space<vmem>>, vector<1x8x16xf32>
    %157 = vector.shape_cast %156 : vector<1x8x16xf32> to vector<8x16xf32>
    %158 = vector.shape_cast %128 : vector<8x16xf32> to vector<1x8x16xf32>
    tpu.vector_store %arg30[%155, %c0_50, %c0_51], %158 {strides = array<i32>} : memref<8x8x32xf32, #tpu.memory_space<vmem>>, vector<1x8x16xf32>,
    %c7_i32_52 = arith.constant 7 : i32
    %159 = arith.subi %c7_i32_52, %c1_i32 : i32
    %160 = arith.index_cast %159 : i32 to index
    %c0_53 = arith.constant 0 : index
    %c16_54 = arith.constant 16 : index
    %161 = vector.load %arg30[%160, %c0_53, %c16_54] : memref<8x8x32xf32, #tpu.memory_space<vmem>>, vector<1x8x16xf32>
    %162 = vector.shape_cast %161 : vector<1x8x16xf32> to vector<8x16xf32>
    %163 = vector.shape_cast %154 : vector<8x16xf32> to vector<1x8x16xf32>
    tpu.vector_store %arg30[%160, %c0_53, %c16_54], %163 {strides = array<i32>} : memref<8x8x32xf32, #tpu.memory_space<vmem>>, vector<1x8x16xf32>,
    %c2_i32 = arith.constant 2 : i32
    %164 = arith.index_cast %c2_i32 : i32 to index
    %c0_55 = arith.constant 0 : index
    %c0_56 = arith.constant 0 : index
    %165 = vector.load %arg29[%164, %c0_55, %c0_56] : memref<8x8x96xf32, #tpu.memory_space<vmem>>, vector<1x8x96xf32>
    %166 = vector.shape_cast %165 : vector<1x8x96xf32> to vector<8x96xf32>
    %c7_i32_57 = arith.constant 7 : i32
    %167 = arith.subi %c7_i32_57, %c2_i32 : i32
    %168 = arith.index_cast %167 : i32 to index
    %c0_58 = arith.constant 0 : index
    %c0_59 = arith.constant 0 : index
    %169 = vector.load %arg29[%168, %c0_58, %c0_59] : memref<8x8x96xf32, #tpu.memory_space<vmem>>, vector<1x8x96xf32>
    %170 = vector.shape_cast %169 : vector<1x8x96xf32> to vector<8x96xf32>
    %cst_60 = arith.constant dense<0.000000e+00> : vector<8x48xf32>
    %171 = tpu.matmul %128, %11, %cst_60 {dimension_numbers = #tpu.dot_dimension_numbers<[1], [0], [0], [1], [0, 0, 1, 1], [], []>} : vector<8x16xf32>, vector<16x48xf32>, vector<8x48xf32> -> vector<8x48xf32>
    %172 = vector.broadcast %13 : vector<1x48xf32> to vector<8x48xf32>
    %173 = arith.addf %171, %172 : vector<8x48xf32>
    %cst_61 = arith.constant dense<0.000000e+00> : vector<8x48xf32>
    %174 = tpu.matmul %154, %12, %cst_61 {dimension_numbers = #tpu.dot_dimension_numbers<[1], [0], [0], [1], [0, 0, 1, 1], [], []>} : vector<8x16xf32>, vector<16x48xf32>, vector<8x48xf32> -> vector<8x48xf32>
    %175 = vector.broadcast %14 : vector<1x48xf32> to vector<8x48xf32>
    %176 = arith.addf %174, %175 : vector<8x48xf32>
    %177 = vector.extract_strided_slice %166 {offsets = [0, 0], sizes = [8, 16], strides = [1, 1]} : vector<8x96xf32> to vector<8x16xf32>
    %178 = vector.extract_strided_slice %173 {offsets = [0, 0], sizes = [8, 16], strides = [1, 1]} : vector<8x48xf32> to vector<8x16xf32>
    %179 = arith.addf %177, %178 : vector<8x16xf32>
    %180 = arith.negf %179 : vector<8x16xf32>
    %181 = math.exp %180 : vector<8x16xf32>
    %cst_62 = arith.constant 1.000000e+00 : f32
    %182 = vector.broadcast %cst_62 : f32 to vector<8x16xf32>
    %183 = arith.addf %182, %181 : vector<8x16xf32>
    %184 = arith.divf %182, %183 : vector<8x16xf32>
    %185 = vector.extract_strided_slice %166 {offsets = [0, 16], sizes = [8, 16], strides = [1, 1]} : vector<8x96xf32> to vector<8x16xf32>
    %186 = vector.extract_strided_slice %173 {offsets = [0, 16], sizes = [8, 16], strides = [1, 1]} : vector<8x48xf32> to vector<8x16xf32>
    %187 = arith.addf %185, %186 : vector<8x16xf32>
    %188 = arith.negf %187 : vector<8x16xf32>
    %189 = math.exp %188 : vector<8x16xf32>
    %cst_63 = arith.constant 1.000000e+00 : f32
    %190 = vector.broadcast %cst_63 : f32 to vector<8x16xf32>
    %191 = arith.addf %190, %189 : vector<8x16xf32>
    %192 = arith.divf %190, %191 : vector<8x16xf32>
    %193 = vector.extract_strided_slice %166 {offsets = [0, 32], sizes = [8, 16], strides = [1, 1]} : vector<8x96xf32> to vector<8x16xf32>
    %194 = vector.extract_strided_slice %173 {offsets = [0, 32], sizes = [8, 16], strides = [1, 1]} : vector<8x48xf32> to vector<8x16xf32>
    %195 = arith.mulf %184, %194 : vector<8x16xf32>
    %196 = arith.addf %193, %195 : vector<8x16xf32>
    %197 = math.tanh %196 : vector<8x16xf32>
    %cst_64 = arith.constant 1.000000e+00 : f32
    %198 = vector.broadcast %cst_64 : f32 to vector<8x16xf32>
    %199 = arith.subf %198, %192 : vector<8x16xf32>
    %200 = arith.mulf %199, %197 : vector<8x16xf32>
    %201 = arith.mulf %192, %128 : vector<8x16xf32>
    %202 = arith.addf %200, %201 : vector<8x16xf32>
    %203 = vector.extract_strided_slice %170 {offsets = [0, 48], sizes = [8, 16], strides = [1, 1]} : vector<8x96xf32> to vector<8x16xf32>
    %204 = vector.extract_strided_slice %176 {offsets = [0, 0], sizes = [8, 16], strides = [1, 1]} : vector<8x48xf32> to vector<8x16xf32>
    %205 = arith.addf %203, %204 : vector<8x16xf32>
    %206 = arith.negf %205 : vector<8x16xf32>
    %207 = math.exp %206 : vector<8x16xf32>
    %cst_65 = arith.constant 1.000000e+00 : f32
    %208 = vector.broadcast %cst_65 : f32 to vector<8x16xf32>
    %209 = arith.addf %208, %207 : vector<8x16xf32>
    %210 = arith.divf %208, %209 : vector<8x16xf32>
    %211 = vector.extract_strided_slice %170 {offsets = [0, 64], sizes = [8, 16], strides = [1, 1]} : vector<8x96xf32> to vector<8x16xf32>
    %212 = vector.extract_strided_slice %176 {offsets = [0, 16], sizes = [8, 16], strides = [1, 1]} : vector<8x48xf32> to vector<8x16xf32>
    %213 = arith.addf %211, %212 : vector<8x16xf32>
    %214 = arith.negf %213 : vector<8x16xf32>
    %215 = math.exp %214 : vector<8x16xf32>
    %cst_66 = arith.constant 1.000000e+00 : f32
    %216 = vector.broadcast %cst_66 : f32 to vector<8x16xf32>
    %217 = arith.addf %216, %215 : vector<8x16xf32>
    %218 = arith.divf %216, %217 : vector<8x16xf32>
    %219 = vector.extract_strided_slice %170 {offsets = [0, 80], sizes = [8, 16], strides = [1, 1]} : vector<8x96xf32> to vector<8x16xf32>
    %220 = vector.extract_strided_slice %176 {offsets = [0, 32], sizes = [8, 16], strides = [1, 1]} : vector<8x48xf32> to vector<8x16xf32>
    %221 = arith.mulf %210, %220 : vector<8x16xf32>
    %222 = arith.addf %219, %221 : vector<8x16xf32>
    %223 = math.tanh %222 : vector<8x16xf32>
    %cst_67 = arith.constant 1.000000e+00 : f32
    %224 = vector.broadcast %cst_67 : f32 to vector<8x16xf32>
    %225 = arith.subf %224, %218 : vector<8x16xf32>
    %226 = arith.mulf %225, %223 : vector<8x16xf32>
    %227 = arith.mulf %218, %154 : vector<8x16xf32>
    %228 = arith.addf %226, %227 : vector<8x16xf32>
    %229 = arith.index_cast %c2_i32 : i32 to index
    %c0_68 = arith.constant 0 : index
    %c0_69 = arith.constant 0 : index
    %230 = vector.load %arg30[%229, %c0_68, %c0_69] : memref<8x8x32xf32, #tpu.memory_space<vmem>>, vector<1x8x16xf32>
    %231 = vector.shape_cast %230 : vector<1x8x16xf32> to vector<8x16xf32>
    %232 = vector.shape_cast %202 : vector<8x16xf32> to vector<1x8x16xf32>
    tpu.vector_store %arg30[%229, %c0_68, %c0_69], %232 {strides = array<i32>} : memref<8x8x32xf32, #tpu.memory_space<vmem>>, vector<1x8x16xf32>,
    %c7_i32_70 = arith.constant 7 : i32
    %233 = arith.subi %c7_i32_70, %c2_i32 : i32
    %234 = arith.index_cast %233 : i32 to index
    %c0_71 = arith.constant 0 : index
    %c16_72 = arith.constant 16 : index
    %235 = vector.load %arg30[%234, %c0_71, %c16_72] : memref<8x8x32xf32, #tpu.memory_space<vmem>>, vector<1x8x16xf32>
    %236 = vector.shape_cast %235 : vector<1x8x16xf32> to vector<8x16xf32>
    %237 = vector.shape_cast %228 : vector<8x16xf32> to vector<1x8x16xf32>
    tpu.vector_store %arg30[%234, %c0_71, %c16_72], %237 {strides = array<i32>} : memref<8x8x32xf32, #tpu.memory_space<vmem>>, vector<1x8x16xf32>,
    %c3_i32 = arith.constant 3 : i32
    %238 = arith.index_cast %c3_i32 : i32 to index
    %c0_73 = arith.constant 0 : index
    %c0_74 = arith.constant 0 : index
    %239 = vector.load %arg29[%238, %c0_73, %c0_74] : memref<8x8x96xf32, #tpu.memory_space<vmem>>, vector<1x8x96xf32>
    %240 = vector.shape_cast %239 : vector<1x8x96xf32> to vector<8x96xf32>
    %c7_i32_75 = arith.constant 7 : i32
    %241 = arith.subi %c7_i32_75, %c3_i32 : i32
    %242 = arith.index_cast %241 : i32 to index
    %c0_76 = arith.constant 0 : index
    %c0_77 = arith.constant 0 : index
    %243 = vector.load %arg29[%242, %c0_76, %c0_77] : memref<8x8x96xf32, #tpu.memory_space<vmem>>, vector<1x8x96xf32>
    %244 = vector.shape_cast %243 : vector<1x8x96xf32> to vector<8x96xf32>
    %cst_78 = arith.constant dense<0.000000e+00> : vector<8x48xf32>
    %245 = tpu.matmul %202, %11, %cst_78 {dimension_numbers = #tpu.dot_dimension_numbers<[1], [0], [0], [1], [0, 0, 1, 1], [], []>} : vector<8x16xf32>, vector<16x48xf32>, vector<8x48xf32> -> vector<8x48xf32>
    %246 = vector.broadcast %13 : vector<1x48xf32> to vector<8x48xf32>
    %247 = arith.addf %245, %246 : vector<8x48xf32>
    %cst_79 = arith.constant dense<0.000000e+00> : vector<8x48xf32>
    %248 = tpu.matmul %228, %12, %cst_79 {dimension_numbers = #tpu.dot_dimension_numbers<[1], [0], [0], [1], [0, 0, 1, 1], [], []>} : vector<8x16xf32>, vector<16x48xf32>, vector<8x48xf32> -> vector<8x48xf32>
    %249 = vector.broadcast %14 : vector<1x48xf32> to vector<8x48xf32>
    %250 = arith.addf %248, %249 : vector<8x48xf32>
    %251 = vector.extract_strided_slice %240 {offsets = [0, 0], sizes = [8, 16], strides = [1, 1]} : vector<8x96xf32> to vector<8x16xf32>
    %252 = vector.extract_strided_slice %247 {offsets = [0, 0], sizes = [8, 16], strides = [1, 1]} : vector<8x48xf32> to vector<8x16xf32>
    %253 = arith.addf %251, %252 : vector<8x16xf32>
    %254 = arith.negf %253 : vector<8x16xf32>
    %255 = math.exp %254 : vector<8x16xf32>
    %cst_80 = arith.constant 1.000000e+00 : f32
    %256 = vector.broadcast %cst_80 : f32 to vector<8x16xf32>
    %257 = arith.addf %256, %255 : vector<8x16xf32>
    %258 = arith.divf %256, %257 : vector<8x16xf32>
    %259 = vector.extract_strided_slice %240 {offsets = [0, 16], sizes = [8, 16], strides = [1, 1]} : vector<8x96xf32> to vector<8x16xf32>
    %260 = vector.extract_strided_slice %247 {offsets = [0, 16], sizes = [8, 16], strides = [1, 1]} : vector<8x48xf32> to vector<8x16xf32>
    %261 = arith.addf %259, %260 : vector<8x16xf32>
    %262 = arith.negf %261 : vector<8x16xf32>
    %263 = math.exp %262 : vector<8x16xf32>
    %cst_81 = arith.constant 1.000000e+00 : f32
    %264 = vector.broadcast %cst_81 : f32 to vector<8x16xf32>
    %265 = arith.addf %264, %263 : vector<8x16xf32>
    %266 = arith.divf %264, %265 : vector<8x16xf32>
    %267 = vector.extract_strided_slice %240 {offsets = [0, 32], sizes = [8, 16], strides = [1, 1]} : vector<8x96xf32> to vector<8x16xf32>
    %268 = vector.extract_strided_slice %247 {offsets = [0, 32], sizes = [8, 16], strides = [1, 1]} : vector<8x48xf32> to vector<8x16xf32>
    %269 = arith.mulf %258, %268 : vector<8x16xf32>
    %270 = arith.addf %267, %269 : vector<8x16xf32>
    %271 = math.tanh %270 : vector<8x16xf32>
    %cst_82 = arith.constant 1.000000e+00 : f32
    %272 = vector.broadcast %cst_82 : f32 to vector<8x16xf32>
    %273 = arith.subf %272, %266 : vector<8x16xf32>
    %274 = arith.mulf %273, %271 : vector<8x16xf32>
    %275 = arith.mulf %266, %202 : vector<8x16xf32>
    %276 = arith.addf %274, %275 : vector<8x16xf32>
    %277 = vector.extract_strided_slice %244 {offsets = [0, 48], sizes = [8, 16], strides = [1, 1]} : vector<8x96xf32> to vector<8x16xf32>
    %278 = vector.extract_strided_slice %250 {offsets = [0, 0], sizes = [8, 16], strides = [1, 1]} : vector<8x48xf32> to vector<8x16xf32>
    %279 = arith.addf %277, %278 : vector<8x16xf32>
    %280 = arith.negf %279 : vector<8x16xf32>
    %281 = math.exp %280 : vector<8x16xf32>
    %cst_83 = arith.constant 1.000000e+00 : f32
    %282 = vector.broadcast %cst_83 : f32 to vector<8x16xf32>
    %283 = arith.addf %282, %281 : vector<8x16xf32>
    %284 = arith.divf %282, %283 : vector<8x16xf32>
    %285 = vector.extract_strided_slice %244 {offsets = [0, 64], sizes = [8, 16], strides = [1, 1]} : vector<8x96xf32> to vector<8x16xf32>
    %286 = vector.extract_strided_slice %250 {offsets = [0, 16], sizes = [8, 16], strides = [1, 1]} : vector<8x48xf32> to vector<8x16xf32>
    %287 = arith.addf %285, %286 : vector<8x16xf32>
    %288 = arith.negf %287 : vector<8x16xf32>
    %289 = math.exp %288 : vector<8x16xf32>
    %cst_84 = arith.constant 1.000000e+00 : f32
    %290 = vector.broadcast %cst_84 : f32 to vector<8x16xf32>
    %291 = arith.addf %290, %289 : vector<8x16xf32>
    %292 = arith.divf %290, %291 : vector<8x16xf32>
    %293 = vector.extract_strided_slice %244 {offsets = [0, 80], sizes = [8, 16], strides = [1, 1]} : vector<8x96xf32> to vector<8x16xf32>
    %294 = vector.extract_strided_slice %250 {offsets = [0, 32], sizes = [8, 16], strides = [1, 1]} : vector<8x48xf32> to vector<8x16xf32>
    %295 = arith.mulf %284, %294 : vector<8x16xf32>
    %296 = arith.addf %293, %295 : vector<8x16xf32>
    %297 = math.tanh %296 : vector<8x16xf32>
    %cst_85 = arith.constant 1.000000e+00 : f32
    %298 = vector.broadcast %cst_85 : f32 to vector<8x16xf32>
    %299 = arith.subf %298, %292 : vector<8x16xf32>
    %300 = arith.mulf %299, %297 : vector<8x16xf32>
    %301 = arith.mulf %292, %228 : vector<8x16xf32>
    %302 = arith.addf %300, %301 : vector<8x16xf32>
    %303 = arith.index_cast %c3_i32 : i32 to index
    %c0_86 = arith.constant 0 : index
    %c0_87 = arith.constant 0 : index
    %304 = vector.load %arg30[%303, %c0_86, %c0_87] : memref<8x8x32xf32, #tpu.memory_space<vmem>>, vector<1x8x16xf32>
    %305 = vector.shape_cast %304 : vector<1x8x16xf32> to vector<8x16xf32>
    %306 = vector.shape_cast %276 : vector<8x16xf32> to vector<1x8x16xf32>
    tpu.vector_store %arg30[%303, %c0_86, %c0_87], %306 {strides = array<i32>} : memref<8x8x32xf32, #tpu.memory_space<vmem>>, vector<1x8x16xf32>,
    %c7_i32_88 = arith.constant 7 : i32
    %307 = arith.subi %c7_i32_88, %c3_i32 : i32
    %308 = arith.index_cast %307 : i32 to index
    %c0_89 = arith.constant 0 : index
    %c16_90 = arith.constant 16 : index
    %309 = vector.load %arg30[%308, %c0_89, %c16_90] : memref<8x8x32xf32, #tpu.memory_space<vmem>>, vector<1x8x16xf32>
    %310 = vector.shape_cast %309 : vector<1x8x16xf32> to vector<8x16xf32>
    %311 = vector.shape_cast %302 : vector<8x16xf32> to vector<1x8x16xf32>
    tpu.vector_store %arg30[%308, %c0_89, %c16_90], %311 {strides = array<i32>} : memref<8x8x32xf32, #tpu.memory_space<vmem>>, vector<1x8x16xf32>,
    %c4_i32 = arith.constant 4 : i32
    %312 = arith.index_cast %c4_i32 : i32 to index
    %c0_91 = arith.constant 0 : index
    %c0_92 = arith.constant 0 : index
    %313 = vector.load %arg29[%312, %c0_91, %c0_92] : memref<8x8x96xf32, #tpu.memory_space<vmem>>, vector<1x8x96xf32>
    %314 = vector.shape_cast %313 : vector<1x8x96xf32> to vector<8x96xf32>
    %c7_i32_93 = arith.constant 7 : i32
    %315 = arith.subi %c7_i32_93, %c4_i32 : i32
    %316 = arith.index_cast %315 : i32 to index
    %c0_94 = arith.constant 0 : index
    %c0_95 = arith.constant 0 : index
    %317 = vector.load %arg29[%316, %c0_94, %c0_95] : memref<8x8x96xf32, #tpu.memory_space<vmem>>, vector<1x8x96xf32>
    %318 = vector.shape_cast %317 : vector<1x8x96xf32> to vector<8x96xf32>
    %cst_96 = arith.constant dense<0.000000e+00> : vector<8x48xf32>
    %319 = tpu.matmul %276, %11, %cst_96 {dimension_numbers = #tpu.dot_dimension_numbers<[1], [0], [0], [1], [0, 0, 1, 1], [], []>} : vector<8x16xf32>, vector<16x48xf32>, vector<8x48xf32> -> vector<8x48xf32>
    %320 = vector.broadcast %13 : vector<1x48xf32> to vector<8x48xf32>
    %321 = arith.addf %319, %320 : vector<8x48xf32>
    %cst_97 = arith.constant dense<0.000000e+00> : vector<8x48xf32>
    %322 = tpu.matmul %302, %12, %cst_97 {dimension_numbers = #tpu.dot_dimension_numbers<[1], [0], [0], [1], [0, 0, 1, 1], [], []>} : vector<8x16xf32>, vector<16x48xf32>, vector<8x48xf32> -> vector<8x48xf32>
    %323 = vector.broadcast %14 : vector<1x48xf32> to vector<8x48xf32>
    %324 = arith.addf %322, %323 : vector<8x48xf32>
    %325 = vector.extract_strided_slice %314 {offsets = [0, 0], sizes = [8, 16], strides = [1, 1]} : vector<8x96xf32> to vector<8x16xf32>
    %326 = vector.extract_strided_slice %321 {offsets = [0, 0], sizes = [8, 16], strides = [1, 1]} : vector<8x48xf32> to vector<8x16xf32>
    %327 = arith.addf %325, %326 : vector<8x16xf32>
    %328 = arith.negf %327 : vector<8x16xf32>
    %329 = math.exp %328 : vector<8x16xf32>
    %cst_98 = arith.constant 1.000000e+00 : f32
    %330 = vector.broadcast %cst_98 : f32 to vector<8x16xf32>
    %331 = arith.addf %330, %329 : vector<8x16xf32>
    %332 = arith.divf %330, %331 : vector<8x16xf32>
    %333 = vector.extract_strided_slice %314 {offsets = [0, 16], sizes = [8, 16], strides = [1, 1]} : vector<8x96xf32> to vector<8x16xf32>
    %334 = vector.extract_strided_slice %321 {offsets = [0, 16], sizes = [8, 16], strides = [1, 1]} : vector<8x48xf32> to vector<8x16xf32>
    %335 = arith.addf %333, %334 : vector<8x16xf32>
    %336 = arith.negf %335 : vector<8x16xf32>
    %337 = math.exp %336 : vector<8x16xf32>
    %cst_99 = arith.constant 1.000000e+00 : f32
    %338 = vector.broadcast %cst_99 : f32 to vector<8x16xf32>
    %339 = arith.addf %338, %337 : vector<8x16xf32>
    %340 = arith.divf %338, %339 : vector<8x16xf32>
    %341 = vector.extract_strided_slice %314 {offsets = [0, 32], sizes = [8, 16], strides = [1, 1]} : vector<8x96xf32> to vector<8x16xf32>
    %342 = vector.extract_strided_slice %321 {offsets = [0, 32], sizes = [8, 16], strides = [1, 1]} : vector<8x48xf32> to vector<8x16xf32>
    %343 = arith.mulf %332, %342 : vector<8x16xf32>
    %344 = arith.addf %341, %343 : vector<8x16xf32>
    %345 = math.tanh %344 : vector<8x16xf32>
    %cst_100 = arith.constant 1.000000e+00 : f32
    %346 = vector.broadcast %cst_100 : f32 to vector<8x16xf32>
    %347 = arith.subf %346, %340 : vector<8x16xf32>
    %348 = arith.mulf %347, %345 : vector<8x16xf32>
    %349 = arith.mulf %340, %276 : vector<8x16xf32>
    %350 = arith.addf %348, %349 : vector<8x16xf32>
    %351 = vector.extract_strided_slice %318 {offsets = [0, 48], sizes = [8, 16], strides = [1, 1]} : vector<8x96xf32> to vector<8x16xf32>
    %352 = vector.extract_strided_slice %324 {offsets = [0, 0], sizes = [8, 16], strides = [1, 1]} : vector<8x48xf32> to vector<8x16xf32>
    %353 = arith.addf %351, %352 : vector<8x16xf32>
    %354 = arith.negf %353 : vector<8x16xf32>
    %355 = math.exp %354 : vector<8x16xf32>
    %cst_101 = arith.constant 1.000000e+00 : f32
    %356 = vector.broadcast %cst_101 : f32 to vector<8x16xf32>
    %357 = arith.addf %356, %355 : vector<8x16xf32>
    %358 = arith.divf %356, %357 : vector<8x16xf32>
    %359 = vector.extract_strided_slice %318 {offsets = [0, 64], sizes = [8, 16], strides = [1, 1]} : vector<8x96xf32> to vector<8x16xf32>
    %360 = vector.extract_strided_slice %324 {offsets = [0, 16], sizes = [8, 16], strides = [1, 1]} : vector<8x48xf32> to vector<8x16xf32>
    %361 = arith.addf %359, %360 : vector<8x16xf32>
    %362 = arith.negf %361 : vector<8x16xf32>
    %363 = math.exp %362 : vector<8x16xf32>
    %cst_102 = arith.constant 1.000000e+00 : f32
    %364 = vector.broadcast %cst_102 : f32 to vector<8x16xf32>
    %365 = arith.addf %364, %363 : vector<8x16xf32>
    %366 = arith.divf %364, %365 : vector<8x16xf32>
    %367 = vector.extract_strided_slice %318 {offsets = [0, 80], sizes = [8, 16], strides = [1, 1]} : vector<8x96xf32> to vector<8x16xf32>
    %368 = vector.extract_strided_slice %324 {offsets = [0, 32], sizes = [8, 16], strides = [1, 1]} : vector<8x48xf32> to vector<8x16xf32>
    %369 = arith.mulf %358, %368 : vector<8x16xf32>
    %370 = arith.addf %367, %369 : vector<8x16xf32>
    %371 = math.tanh %370 : vector<8x16xf32>
    %cst_103 = arith.constant 1.000000e+00 : f32
    %372 = vector.broadcast %cst_103 : f32 to vector<8x16xf32>
    %373 = arith.subf %372, %366 : vector<8x16xf32>
    %374 = arith.mulf %373, %371 : vector<8x16xf32>
    %375 = arith.mulf %366, %302 : vector<8x16xf32>
    %376 = arith.addf %374, %375 : vector<8x16xf32>
    %377 = arith.index_cast %c4_i32 : i32 to index
    %c0_104 = arith.constant 0 : index
    %c0_105 = arith.constant 0 : index
    %378 = vector.load %arg30[%377, %c0_104, %c0_105] : memref<8x8x32xf32, #tpu.memory_space<vmem>>, vector<1x8x16xf32>
    %379 = vector.shape_cast %378 : vector<1x8x16xf32> to vector<8x16xf32>
    %380 = vector.shape_cast %350 : vector<8x16xf32> to vector<1x8x16xf32>
    tpu.vector_store %arg30[%377, %c0_104, %c0_105], %380 {strides = array<i32>} : memref<8x8x32xf32, #tpu.memory_space<vmem>>, vector<1x8x16xf32>,
    %c7_i32_106 = arith.constant 7 : i32
    %381 = arith.subi %c7_i32_106, %c4_i32 : i32
    %382 = arith.index_cast %381 : i32 to index
    %c0_107 = arith.constant 0 : index
    %c16_108 = arith.constant 16 : index
    %383 = vector.load %arg30[%382, %c0_107, %c16_108] : memref<8x8x32xf32, #tpu.memory_space<vmem>>, vector<1x8x16xf32>
    %384 = vector.shape_cast %383 : vector<1x8x16xf32> to vector<8x16xf32>
    %385 = vector.shape_cast %376 : vector<8x16xf32> to vector<1x8x16xf32>
    tpu.vector_store %arg30[%382, %c0_107, %c16_108], %385 {strides = array<i32>} : memref<8x8x32xf32, #tpu.memory_space<vmem>>, vector<1x8x16xf32>,
    %c5_i32 = arith.constant 5 : i32
    %386 = arith.index_cast %c5_i32 : i32 to index
    %c0_109 = arith.constant 0 : index
    %c0_110 = arith.constant 0 : index
    %387 = vector.load %arg29[%386, %c0_109, %c0_110] : memref<8x8x96xf32, #tpu.memory_space<vmem>>, vector<1x8x96xf32>
    %388 = vector.shape_cast %387 : vector<1x8x96xf32> to vector<8x96xf32>
    %c7_i32_111 = arith.constant 7 : i32
    %389 = arith.subi %c7_i32_111, %c5_i32 : i32
    %390 = arith.index_cast %389 : i32 to index
    %c0_112 = arith.constant 0 : index
    %c0_113 = arith.constant 0 : index
    %391 = vector.load %arg29[%390, %c0_112, %c0_113] : memref<8x8x96xf32, #tpu.memory_space<vmem>>, vector<1x8x96xf32>
    %392 = vector.shape_cast %391 : vector<1x8x96xf32> to vector<8x96xf32>
    %cst_114 = arith.constant dense<0.000000e+00> : vector<8x48xf32>
    %393 = tpu.matmul %350, %11, %cst_114 {dimension_numbers = #tpu.dot_dimension_numbers<[1], [0], [0], [1], [0, 0, 1, 1], [], []>} : vector<8x16xf32>, vector<16x48xf32>, vector<8x48xf32> -> vector<8x48xf32>
    %394 = vector.broadcast %13 : vector<1x48xf32> to vector<8x48xf32>
    %395 = arith.addf %393, %394 : vector<8x48xf32>
    %cst_115 = arith.constant dense<0.000000e+00> : vector<8x48xf32>
    %396 = tpu.matmul %376, %12, %cst_115 {dimension_numbers = #tpu.dot_dimension_numbers<[1], [0], [0], [1], [0, 0, 1, 1], [], []>} : vector<8x16xf32>, vector<16x48xf32>, vector<8x48xf32> -> vector<8x48xf32>
    %397 = vector.broadcast %14 : vector<1x48xf32> to vector<8x48xf32>
    %398 = arith.addf %396, %397 : vector<8x48xf32>
    %399 = vector.extract_strided_slice %388 {offsets = [0, 0], sizes = [8, 16], strides = [1, 1]} : vector<8x96xf32> to vector<8x16xf32>
    %400 = vector.extract_strided_slice %395 {offsets = [0, 0], sizes = [8, 16], strides = [1, 1]} : vector<8x48xf32> to vector<8x16xf32>
    %401 = arith.addf %399, %400 : vector<8x16xf32>
    %402 = arith.negf %401 : vector<8x16xf32>
    %403 = math.exp %402 : vector<8x16xf32>
    %cst_116 = arith.constant 1.000000e+00 : f32
    %404 = vector.broadcast %cst_116 : f32 to vector<8x16xf32>
    %405 = arith.addf %404, %403 : vector<8x16xf32>
    %406 = arith.divf %404, %405 : vector<8x16xf32>
    %407 = vector.extract_strided_slice %388 {offsets = [0, 16], sizes = [8, 16], strides = [1, 1]} : vector<8x96xf32> to vector<8x16xf32>
    %408 = vector.extract_strided_slice %395 {offsets = [0, 16], sizes = [8, 16], strides = [1, 1]} : vector<8x48xf32> to vector<8x16xf32>
    %409 = arith.addf %407, %408 : vector<8x16xf32>
    %410 = arith.negf %409 : vector<8x16xf32>
    %411 = math.exp %410 : vector<8x16xf32>
    %cst_117 = arith.constant 1.000000e+00 : f32
    %412 = vector.broadcast %cst_117 : f32 to vector<8x16xf32>
    %413 = arith.addf %412, %411 : vector<8x16xf32>
    %414 = arith.divf %412, %413 : vector<8x16xf32>
    %415 = vector.extract_strided_slice %388 {offsets = [0, 32], sizes = [8, 16], strides = [1, 1]} : vector<8x96xf32> to vector<8x16xf32>
    %416 = vector.extract_strided_slice %395 {offsets = [0, 32], sizes = [8, 16], strides = [1, 1]} : vector<8x48xf32> to vector<8x16xf32>
    %417 = arith.mulf %406, %416 : vector<8x16xf32>
    %418 = arith.addf %415, %417 : vector<8x16xf32>
    %419 = math.tanh %418 : vector<8x16xf32>
    %cst_118 = arith.constant 1.000000e+00 : f32
    %420 = vector.broadcast %cst_118 : f32 to vector<8x16xf32>
    %421 = arith.subf %420, %414 : vector<8x16xf32>
    %422 = arith.mulf %421, %419 : vector<8x16xf32>
    %423 = arith.mulf %414, %350 : vector<8x16xf32>
    %424 = arith.addf %422, %423 : vector<8x16xf32>
    %425 = vector.extract_strided_slice %392 {offsets = [0, 48], sizes = [8, 16], strides = [1, 1]} : vector<8x96xf32> to vector<8x16xf32>
    %426 = vector.extract_strided_slice %398 {offsets = [0, 0], sizes = [8, 16], strides = [1, 1]} : vector<8x48xf32> to vector<8x16xf32>
    %427 = arith.addf %425, %426 : vector<8x16xf32>
    %428 = arith.negf %427 : vector<8x16xf32>
    %429 = math.exp %428 : vector<8x16xf32>
    %cst_119 = arith.constant 1.000000e+00 : f32
    %430 = vector.broadcast %cst_119 : f32 to vector<8x16xf32>
    %431 = arith.addf %430, %429 : vector<8x16xf32>
    %432 = arith.divf %430, %431 : vector<8x16xf32>
    %433 = vector.extract_strided_slice %392 {offsets = [0, 64], sizes = [8, 16], strides = [1, 1]} : vector<8x96xf32> to vector<8x16xf32>
    %434 = vector.extract_strided_slice %398 {offsets = [0, 16], sizes = [8, 16], strides = [1, 1]} : vector<8x48xf32> to vector<8x16xf32>
    %435 = arith.addf %433, %434 : vector<8x16xf32>
    %436 = arith.negf %435 : vector<8x16xf32>
    %437 = math.exp %436 : vector<8x16xf32>
    %cst_120 = arith.constant 1.000000e+00 : f32
    %438 = vector.broadcast %cst_120 : f32 to vector<8x16xf32>
    %439 = arith.addf %438, %437 : vector<8x16xf32>
    %440 = arith.divf %438, %439 : vector<8x16xf32>
    %441 = vector.extract_strided_slice %392 {offsets = [0, 80], sizes = [8, 16], strides = [1, 1]} : vector<8x96xf32> to vector<8x16xf32>
    %442 = vector.extract_strided_slice %398 {offsets = [0, 32], sizes = [8, 16], strides = [1, 1]} : vector<8x48xf32> to vector<8x16xf32>
    %443 = arith.mulf %432, %442 : vector<8x16xf32>
    %444 = arith.addf %441, %443 : vector<8x16xf32>
    %445 = math.tanh %444 : vector<8x16xf32>
    %cst_121 = arith.constant 1.000000e+00 : f32
    %446 = vector.broadcast %cst_121 : f32 to vector<8x16xf32>
    %447 = arith.subf %446, %440 : vector<8x16xf32>
    %448 = arith.mulf %447, %445 : vector<8x16xf32>
    %449 = arith.mulf %440, %376 : vector<8x16xf32>
    %450 = arith.addf %448, %449 : vector<8x16xf32>
    %451 = arith.index_cast %c5_i32 : i32 to index
    %c0_122 = arith.constant 0 : index
    %c0_123 = arith.constant 0 : index
    %452 = vector.load %arg30[%451, %c0_122, %c0_123] : memref<8x8x32xf32, #tpu.memory_space<vmem>>, vector<1x8x16xf32>
    %453 = vector.shape_cast %452 : vector<1x8x16xf32> to vector<8x16xf32>
    %454 = vector.shape_cast %424 : vector<8x16xf32> to vector<1x8x16xf32>
    tpu.vector_store %arg30[%451, %c0_122, %c0_123], %454 {strides = array<i32>} : memref<8x8x32xf32, #tpu.memory_space<vmem>>, vector<1x8x16xf32>,
    %c7_i32_124 = arith.constant 7 : i32
    %455 = arith.subi %c7_i32_124, %c5_i32 : i32
    %456 = arith.index_cast %455 : i32 to index
    %c0_125 = arith.constant 0 : index
    %c16_126 = arith.constant 16 : index
    %457 = vector.load %arg30[%456, %c0_125, %c16_126] : memref<8x8x32xf32, #tpu.memory_space<vmem>>, vector<1x8x16xf32>
    %458 = vector.shape_cast %457 : vector<1x8x16xf32> to vector<8x16xf32>
    %459 = vector.shape_cast %450 : vector<8x16xf32> to vector<1x8x16xf32>
    tpu.vector_store %arg30[%456, %c0_125, %c16_126], %459 {strides = array<i32>} : memref<8x8x32xf32, #tpu.memory_space<vmem>>, vector<1x8x16xf32>,
    %c6_i32 = arith.constant 6 : i32
    %460 = arith.index_cast %c6_i32 : i32 to index
    %c0_127 = arith.constant 0 : index
    %c0_128 = arith.constant 0 : index
    %461 = vector.load %arg29[%460, %c0_127, %c0_128] : memref<8x8x96xf32, #tpu.memory_space<vmem>>, vector<1x8x96xf32>
    %462 = vector.shape_cast %461 : vector<1x8x96xf32> to vector<8x96xf32>
    %c7_i32_129 = arith.constant 7 : i32
    %463 = arith.subi %c7_i32_129, %c6_i32 : i32
    %464 = arith.index_cast %463 : i32 to index
    %c0_130 = arith.constant 0 : index
    %c0_131 = arith.constant 0 : index
    %465 = vector.load %arg29[%464, %c0_130, %c0_131] : memref<8x8x96xf32, #tpu.memory_space<vmem>>, vector<1x8x96xf32>
    %466 = vector.shape_cast %465 : vector<1x8x96xf32> to vector<8x96xf32>
    %cst_132 = arith.constant dense<0.000000e+00> : vector<8x48xf32>
    %467 = tpu.matmul %424, %11, %cst_132 {dimension_numbers = #tpu.dot_dimension_numbers<[1], [0], [0], [1], [0, 0, 1, 1], [], []>} : vector<8x16xf32>, vector<16x48xf32>, vector<8x48xf32> -> vector<8x48xf32>
    %468 = vector.broadcast %13 : vector<1x48xf32> to vector<8x48xf32>
    %469 = arith.addf %467, %468 : vector<8x48xf32>
    %cst_133 = arith.constant dense<0.000000e+00> : vector<8x48xf32>
    %470 = tpu.matmul %450, %12, %cst_133 {dimension_numbers = #tpu.dot_dimension_numbers<[1], [0], [0], [1], [0, 0, 1, 1], [], []>} : vector<8x16xf32>, vector<16x48xf32>, vector<8x48xf32> -> vector<8x48xf32>
    %471 = vector.broadcast %14 : vector<1x48xf32> to vector<8x48xf32>
    %472 = arith.addf %470, %471 : vector<8x48xf32>
    %473 = vector.extract_strided_slice %462 {offsets = [0, 0], sizes = [8, 16], strides = [1, 1]} : vector<8x96xf32> to vector<8x16xf32>
    %474 = vector.extract_strided_slice %469 {offsets = [0, 0], sizes = [8, 16], strides = [1, 1]} : vector<8x48xf32> to vector<8x16xf32>
    %475 = arith.addf %473, %474 : vector<8x16xf32>
    %476 = arith.negf %475 : vector<8x16xf32>
    %477 = math.exp %476 : vector<8x16xf32>
    %cst_134 = arith.constant 1.000000e+00 : f32
    %478 = vector.broadcast %cst_134 : f32 to vector<8x16xf32>
    %479 = arith.addf %478, %477 : vector<8x16xf32>
    %480 = arith.divf %478, %479 : vector<8x16xf32>
    %481 = vector.extract_strided_slice %462 {offsets = [0, 16], sizes = [8, 16], strides = [1, 1]} : vector<8x96xf32> to vector<8x16xf32>
    %482 = vector.extract_strided_slice %469 {offsets = [0, 16], sizes = [8, 16], strides = [1, 1]} : vector<8x48xf32> to vector<8x16xf32>
    %483 = arith.addf %481, %482 : vector<8x16xf32>
    %484 = arith.negf %483 : vector<8x16xf32>
    %485 = math.exp %484 : vector<8x16xf32>
    %cst_135 = arith.constant 1.000000e+00 : f32
    %486 = vector.broadcast %cst_135 : f32 to vector<8x16xf32>
    %487 = arith.addf %486, %485 : vector<8x16xf32>
    %488 = arith.divf %486, %487 : vector<8x16xf32>
    %489 = vector.extract_strided_slice %462 {offsets = [0, 32], sizes = [8, 16], strides = [1, 1]} : vector<8x96xf32> to vector<8x16xf32>
    %490 = vector.extract_strided_slice %469 {offsets = [0, 32], sizes = [8, 16], strides = [1, 1]} : vector<8x48xf32> to vector<8x16xf32>
    %491 = arith.mulf %480, %490 : vector<8x16xf32>
    %492 = arith.addf %489, %491 : vector<8x16xf32>
    %493 = math.tanh %492 : vector<8x16xf32>
    %cst_136 = arith.constant 1.000000e+00 : f32
    %494 = vector.broadcast %cst_136 : f32 to vector<8x16xf32>
    %495 = arith.subf %494, %488 : vector<8x16xf32>
    %496 = arith.mulf %495, %493 : vector<8x16xf32>
    %497 = arith.mulf %488, %424 : vector<8x16xf32>
    %498 = arith.addf %496, %497 : vector<8x16xf32>
    %499 = vector.extract_strided_slice %466 {offsets = [0, 48], sizes = [8, 16], strides = [1, 1]} : vector<8x96xf32> to vector<8x16xf32>
    %500 = vector.extract_strided_slice %472 {offsets = [0, 0], sizes = [8, 16], strides = [1, 1]} : vector<8x48xf32> to vector<8x16xf32>
    %501 = arith.addf %499, %500 : vector<8x16xf32>
    %502 = arith.negf %501 : vector<8x16xf32>
    %503 = math.exp %502 : vector<8x16xf32>
    %cst_137 = arith.constant 1.000000e+00 : f32
    %504 = vector.broadcast %cst_137 : f32 to vector<8x16xf32>
    %505 = arith.addf %504, %503 : vector<8x16xf32>
    %506 = arith.divf %504, %505 : vector<8x16xf32>
    %507 = vector.extract_strided_slice %466 {offsets = [0, 64], sizes = [8, 16], strides = [1, 1]} : vector<8x96xf32> to vector<8x16xf32>
    %508 = vector.extract_strided_slice %472 {offsets = [0, 16], sizes = [8, 16], strides = [1, 1]} : vector<8x48xf32> to vector<8x16xf32>
    %509 = arith.addf %507, %508 : vector<8x16xf32>
    %510 = arith.negf %509 : vector<8x16xf32>
    %511 = math.exp %510 : vector<8x16xf32>
    %cst_138 = arith.constant 1.000000e+00 : f32
    %512 = vector.broadcast %cst_138 : f32 to vector<8x16xf32>
    %513 = arith.addf %512, %511 : vector<8x16xf32>
    %514 = arith.divf %512, %513 : vector<8x16xf32>
    %515 = vector.extract_strided_slice %466 {offsets = [0, 80], sizes = [8, 16], strides = [1, 1]} : vector<8x96xf32> to vector<8x16xf32>
    %516 = vector.extract_strided_slice %472 {offsets = [0, 32], sizes = [8, 16], strides = [1, 1]} : vector<8x48xf32> to vector<8x16xf32>
    %517 = arith.mulf %506, %516 : vector<8x16xf32>
    %518 = arith.addf %515, %517 : vector<8x16xf32>
    %519 = math.tanh %518 : vector<8x16xf32>
    %cst_139 = arith.constant 1.000000e+00 : f32
    %520 = vector.broadcast %cst_139 : f32 to vector<8x16xf32>
    %521 = arith.subf %520, %514 : vector<8x16xf32>
    %522 = arith.mulf %521, %519 : vector<8x16xf32>
    %523 = arith.mulf %514, %450 : vector<8x16xf32>
    %524 = arith.addf %522, %523 : vector<8x16xf32>
    %525 = arith.index_cast %c6_i32 : i32 to index
    %c0_140 = arith.constant 0 : index
    %c0_141 = arith.constant 0 : index
    %526 = vector.load %arg30[%525, %c0_140, %c0_141] : memref<8x8x32xf32, #tpu.memory_space<vmem>>, vector<1x8x16xf32>
    %527 = vector.shape_cast %526 : vector<1x8x16xf32> to vector<8x16xf32>
    %528 = vector.shape_cast %498 : vector<8x16xf32> to vector<1x8x16xf32>
    tpu.vector_store %arg30[%525, %c0_140, %c0_141], %528 {strides = array<i32>} : memref<8x8x32xf32, #tpu.memory_space<vmem>>, vector<1x8x16xf32>,
    %c7_i32_142 = arith.constant 7 : i32
    %529 = arith.subi %c7_i32_142, %c6_i32 : i32
    %530 = arith.index_cast %529 : i32 to index
    %c0_143 = arith.constant 0 : index
    %c16_144 = arith.constant 16 : index
    %531 = vector.load %arg30[%530, %c0_143, %c16_144] : memref<8x8x32xf32, #tpu.memory_space<vmem>>, vector<1x8x16xf32>
    %532 = vector.shape_cast %531 : vector<1x8x16xf32> to vector<8x16xf32>
    %533 = vector.shape_cast %524 : vector<8x16xf32> to vector<1x8x16xf32>
    tpu.vector_store %arg30[%530, %c0_143, %c16_144], %533 {strides = array<i32>} : memref<8x8x32xf32, #tpu.memory_space<vmem>>, vector<1x8x16xf32>,
    %c7_i32_145 = arith.constant 7 : i32
    %534 = arith.index_cast %c7_i32_145 : i32 to index
    %c0_146 = arith.constant 0 : index
    %c0_147 = arith.constant 0 : index
    %535 = vector.load %arg29[%534, %c0_146, %c0_147] : memref<8x8x96xf32, #tpu.memory_space<vmem>>, vector<1x8x96xf32>
    %536 = vector.shape_cast %535 : vector<1x8x96xf32> to vector<8x96xf32>
    %c7_i32_148 = arith.constant 7 : i32
    %537 = arith.subi %c7_i32_148, %c7_i32_145 : i32
    %538 = arith.index_cast %537 : i32 to index
    %c0_149 = arith.constant 0 : index
    %c0_150 = arith.constant 0 : index
    %539 = vector.load %arg29[%538, %c0_149, %c0_150] : memref<8x8x96xf32, #tpu.memory_space<vmem>>, vector<1x8x96xf32>
    %540 = vector.shape_cast %539 : vector<1x8x96xf32> to vector<8x96xf32>
    %cst_151 = arith.constant dense<0.000000e+00> : vector<8x48xf32>
    %541 = tpu.matmul %498, %11, %cst_151 {dimension_numbers = #tpu.dot_dimension_numbers<[1], [0], [0], [1], [0, 0, 1, 1], [], []>} : vector<8x16xf32>, vector<16x48xf32>, vector<8x48xf32> -> vector<8x48xf32>
    %542 = vector.broadcast %13 : vector<1x48xf32> to vector<8x48xf32>
    %543 = arith.addf %541, %542 : vector<8x48xf32>
    %cst_152 = arith.constant dense<0.000000e+00> : vector<8x48xf32>
    %544 = tpu.matmul %524, %12, %cst_152 {dimension_numbers = #tpu.dot_dimension_numbers<[1], [0], [0], [1], [0, 0, 1, 1], [], []>} : vector<8x16xf32>, vector<16x48xf32>, vector<8x48xf32> -> vector<8x48xf32>
    %545 = vector.broadcast %14 : vector<1x48xf32> to vector<8x48xf32>
    %546 = arith.addf %544, %545 : vector<8x48xf32>
    %547 = vector.extract_strided_slice %536 {offsets = [0, 0], sizes = [8, 16], strides = [1, 1]} : vector<8x96xf32> to vector<8x16xf32>
    %548 = vector.extract_strided_slice %543 {offsets = [0, 0], sizes = [8, 16], strides = [1, 1]} : vector<8x48xf32> to vector<8x16xf32>
    %549 = arith.addf %547, %548 : vector<8x16xf32>
    %550 = arith.negf %549 : vector<8x16xf32>
    %551 = math.exp %550 : vector<8x16xf32>
    %cst_153 = arith.constant 1.000000e+00 : f32
    %552 = vector.broadcast %cst_153 : f32 to vector<8x16xf32>
    %553 = arith.addf %552, %551 : vector<8x16xf32>
    %554 = arith.divf %552, %553 : vector<8x16xf32>
    %555 = vector.extract_strided_slice %536 {offsets = [0, 16], sizes = [8, 16], strides = [1, 1]} : vector<8x96xf32> to vector<8x16xf32>
    %556 = vector.extract_strided_slice %543 {offsets = [0, 16], sizes = [8, 16], strides = [1, 1]} : vector<8x48xf32> to vector<8x16xf32>
    %557 = arith.addf %555, %556 : vector<8x16xf32>
    %558 = arith.negf %557 : vector<8x16xf32>
    %559 = math.exp %558 : vector<8x16xf32>
    %cst_154 = arith.constant 1.000000e+00 : f32
    %560 = vector.broadcast %cst_154 : f32 to vector<8x16xf32>
    %561 = arith.addf %560, %559 : vector<8x16xf32>
    %562 = arith.divf %560, %561 : vector<8x16xf32>
    %563 = vector.extract_strided_slice %536 {offsets = [0, 32], sizes = [8, 16], strides = [1, 1]} : vector<8x96xf32> to vector<8x16xf32>
    %564 = vector.extract_strided_slice %543 {offsets = [0, 32], sizes = [8, 16], strides = [1, 1]} : vector<8x48xf32> to vector<8x16xf32>
    %565 = arith.mulf %554, %564 : vector<8x16xf32>
    %566 = arith.addf %563, %565 : vector<8x16xf32>
    %567 = math.tanh %566 : vector<8x16xf32>
    %cst_155 = arith.constant 1.000000e+00 : f32
    %568 = vector.broadcast %cst_155 : f32 to vector<8x16xf32>
    %569 = arith.subf %568, %562 : vector<8x16xf32>
    %570 = arith.mulf %569, %567 : vector<8x16xf32>
    %571 = arith.mulf %562, %498 : vector<8x16xf32>
    %572 = arith.addf %570, %571 : vector<8x16xf32>
    %573 = vector.extract_strided_slice %540 {offsets = [0, 48], sizes = [8, 16], strides = [1, 1]} : vector<8x96xf32> to vector<8x16xf32>
    %574 = vector.extract_strided_slice %546 {offsets = [0, 0], sizes = [8, 16], strides = [1, 1]} : vector<8x48xf32> to vector<8x16xf32>
    %575 = arith.addf %573, %574 : vector<8x16xf32>
    %576 = arith.negf %575 : vector<8x16xf32>
    %577 = math.exp %576 : vector<8x16xf32>
    %cst_156 = arith.constant 1.000000e+00 : f32
    %578 = vector.broadcast %cst_156 : f32 to vector<8x16xf32>
    %579 = arith.addf %578, %577 : vector<8x16xf32>
    %580 = arith.divf %578, %579 : vector<8x16xf32>
    %581 = vector.extract_strided_slice %540 {offsets = [0, 64], sizes = [8, 16], strides = [1, 1]} : vector<8x96xf32> to vector<8x16xf32>
    %582 = vector.extract_strided_slice %546 {offsets = [0, 16], sizes = [8, 16], strides = [1, 1]} : vector<8x48xf32> to vector<8x16xf32>
    %583 = arith.addf %581, %582 : vector<8x16xf32>
    %584 = arith.negf %583 : vector<8x16xf32>
    %585 = math.exp %584 : vector<8x16xf32>
    %cst_157 = arith.constant 1.000000e+00 : f32
    %586 = vector.broadcast %cst_157 : f32 to vector<8x16xf32>
    %587 = arith.addf %586, %585 : vector<8x16xf32>
    %588 = arith.divf %586, %587 : vector<8x16xf32>
    %589 = vector.extract_strided_slice %540 {offsets = [0, 80], sizes = [8, 16], strides = [1, 1]} : vector<8x96xf32> to vector<8x16xf32>
    %590 = vector.extract_strided_slice %546 {offsets = [0, 32], sizes = [8, 16], strides = [1, 1]} : vector<8x48xf32> to vector<8x16xf32>
    %591 = arith.mulf %580, %590 : vector<8x16xf32>
    %592 = arith.addf %589, %591 : vector<8x16xf32>
    %593 = math.tanh %592 : vector<8x16xf32>
    %cst_158 = arith.constant 1.000000e+00 : f32
    %594 = vector.broadcast %cst_158 : f32 to vector<8x16xf32>
    %595 = arith.subf %594, %588 : vector<8x16xf32>
    %596 = arith.mulf %595, %593 : vector<8x16xf32>
    %597 = arith.mulf %588, %524 : vector<8x16xf32>
    %598 = arith.addf %596, %597 : vector<8x16xf32>
    %599 = arith.index_cast %c7_i32_145 : i32 to index
    %c0_159 = arith.constant 0 : index
    %c0_160 = arith.constant 0 : index
    %600 = vector.load %arg30[%599, %c0_159, %c0_160] : memref<8x8x32xf32, #tpu.memory_space<vmem>>, vector<1x8x16xf32>
    %601 = vector.shape_cast %600 : vector<1x8x16xf32> to vector<8x16xf32>
    %602 = vector.shape_cast %572 : vector<8x16xf32> to vector<1x8x16xf32>
    tpu.vector_store %arg30[%599, %c0_159, %c0_160], %602 {strides = array<i32>} : memref<8x8x32xf32, #tpu.memory_space<vmem>>, vector<1x8x16xf32>,
    %c7_i32_161 = arith.constant 7 : i32
    %603 = arith.subi %c7_i32_161, %c7_i32_145 : i32
    %604 = arith.index_cast %603 : i32 to index
    %c0_162 = arith.constant 0 : index
    %c16_163 = arith.constant 16 : index
    %605 = vector.load %arg30[%604, %c0_162, %c16_163] : memref<8x8x32xf32, #tpu.memory_space<vmem>>, vector<1x8x16xf32>
    %606 = vector.shape_cast %605 : vector<1x8x16xf32> to vector<8x16xf32>
    %607 = vector.shape_cast %598 : vector<8x16xf32> to vector<1x8x16xf32>
    tpu.vector_store %arg30[%604, %c0_162, %c16_163], %607 {strides = array<i32>} : memref<8x8x32xf32, #tpu.memory_space<vmem>>, vector<1x8x16xf32>,
    %c8_i32 = arith.constant 8 : i32
    %c0_164 = arith.constant 0 : index
    %c0_165 = arith.constant 0 : index
    %c0_166 = arith.constant 0 : index
    %608 = vector.load %arg30[%c0_164, %c0_165, %c0_166] : memref<8x8x32xf32, #tpu.memory_space<vmem>>, vector<8x8x32xf32>
    %609 = vector.shape_cast %608 : vector<8x8x32xf32> to vector<64x32xf32>
    %610 = arith.truncf %609 : vector<64x32xf32> to vector<64x32xbf16>
    %c0_167 = arith.constant 0 : index
    %c0_168 = arith.constant 0 : index
    %611 = vector.load %arg9[%c0_167, %c0_168] : memref<32x96xbf16, #tpu.memory_space<vmem>>, vector<32x96xbf16>
    %cst_169 = arith.constant dense<0.000000e+00> : vector<64x96xf32>
    %612 = tpu.matmul %610, %611, %cst_169 {dimension_numbers = #tpu.dot_dimension_numbers<[1], [0], [0], [1], [0, 0, 1, 1], [], []>} : vector<64x32xbf16>, vector<32x96xbf16>, vector<64x96xf32> -> vector<64x96xf32>
    %c0_170 = arith.constant 0 : index
    %c0_171 = arith.constant 0 : index
    %613 = vector.load %arg10[%c0_170, %c0_171] : memref<1x96xf32, #tpu.memory_space<vmem>>, vector<1x96xf32>
    %614 = vector.broadcast %613 : vector<1x96xf32> to vector<64x96xf32>
    %615 = arith.addf %612, %614 : vector<64x96xf32>
    %616 = vector.shape_cast %615 : vector<64x96xf32> to vector<8x8x96xf32>
    %c0_172 = arith.constant 0 : index
    %c0_173 = arith.constant 0 : index
    %c0_174 = arith.constant 0 : index
    %617 = vector.load %arg29[%c0_172, %c0_173, %c0_174] : memref<8x8x96xf32, #tpu.memory_space<vmem>>, vector<8x8x96xf32>
    tpu.vector_store %arg29[%c0_172, %c0_173, %c0_174], %616 {strides = array<i32>} : memref<8x8x96xf32, #tpu.memory_space<vmem>>, vector<8x8x96xf32>,
    %c0_175 = arith.constant 0 : index
    %c0_176 = arith.constant 0 : index
    %618 = vector.load %arg11[%c0_175, %c0_176] : memref<16x48xf32, #tpu.memory_space<vmem>>, vector<16x48xf32>
    %c0_177 = arith.constant 0 : index
    %c0_178 = arith.constant 0 : index
    %619 = vector.load %arg12[%c0_177, %c0_178] : memref<16x48xf32, #tpu.memory_space<vmem>>, vector<16x48xf32>
    %c0_179 = arith.constant 0 : index
    %c0_180 = arith.constant 0 : index
    %620 = vector.load %arg13[%c0_179, %c0_180] : memref<1x48xf32, #tpu.memory_space<vmem>>, vector<1x48xf32>
    %c0_181 = arith.constant 0 : index
    %c0_182 = arith.constant 0 : index
    %621 = vector.load %arg14[%c0_181, %c0_182] : memref<1x48xf32, #tpu.memory_space<vmem>>, vector<1x48xf32>
    %cst_183 = arith.constant 0.000000e+00 : f32
    %622 = vector.broadcast %cst_183 : f32 to vector<8x16xf32>
    %c0_i32_184 = arith.constant 0 : i32
    %623 = arith.index_cast %c0_i32_184 : i32 to index
    %c0_185 = arith.constant 0 : index
    %c0_186 = arith.constant 0 : index
    %624 = vector.load %arg29[%623, %c0_185, %c0_186] : memref<8x8x96xf32, #tpu.memory_space<vmem>>, vector<1x8x96xf32>
    %625 = vector.shape_cast %624 : vector<1x8x96xf32> to vector<8x96xf32>
    %c7_i32_187 = arith.constant 7 : i32
    %626 = arith.subi %c7_i32_187, %c0_i32_184 : i32
    %627 = arith.index_cast %626 : i32 to index
    %c0_188 = arith.constant 0 : index
    %c0_189 = arith.constant 0 : index
    %628 = vector.load %arg29[%627, %c0_188, %c0_189] : memref<8x8x96xf32, #tpu.memory_space<vmem>>, vector<1x8x96xf32>
    %629 = vector.shape_cast %628 : vector<1x8x96xf32> to vector<8x96xf32>
    %cst_190 = arith.constant dense<0.000000e+00> : vector<8x48xf32>
    %630 = tpu.matmul %622, %618, %cst_190 {dimension_numbers = #tpu.dot_dimension_numbers<[1], [0], [0], [1], [0, 0, 1, 1], [], []>} : vector<8x16xf32>, vector<16x48xf32>, vector<8x48xf32> -> vector<8x48xf32>
    %631 = vector.broadcast %620 : vector<1x48xf32> to vector<8x48xf32>
    %632 = arith.addf %630, %631 : vector<8x48xf32>
    %cst_191 = arith.constant dense<0.000000e+00> : vector<8x48xf32>
    %633 = tpu.matmul %622, %619, %cst_191 {dimension_numbers = #tpu.dot_dimension_numbers<[1], [0], [0], [1], [0, 0, 1, 1], [], []>} : vector<8x16xf32>, vector<16x48xf32>, vector<8x48xf32> -> vector<8x48xf32>
    %634 = vector.broadcast %621 : vector<1x48xf32> to vector<8x48xf32>
    %635 = arith.addf %633, %634 : vector<8x48xf32>
    %636 = vector.extract_strided_slice %625 {offsets = [0, 0], sizes = [8, 16], strides = [1, 1]} : vector<8x96xf32> to vector<8x16xf32>
    %637 = vector.extract_strided_slice %632 {offsets = [0, 0], sizes = [8, 16], strides = [1, 1]} : vector<8x48xf32> to vector<8x16xf32>
    %638 = arith.addf %636, %637 : vector<8x16xf32>
    %639 = arith.negf %638 : vector<8x16xf32>
    %640 = math.exp %639 : vector<8x16xf32>
    %cst_192 = arith.constant 1.000000e+00 : f32
    %641 = vector.broadcast %cst_192 : f32 to vector<8x16xf32>
    %642 = arith.addf %641, %640 : vector<8x16xf32>
    %643 = arith.divf %641, %642 : vector<8x16xf32>
    %644 = vector.extract_strided_slice %625 {offsets = [0, 16], sizes = [8, 16], strides = [1, 1]} : vector<8x96xf32> to vector<8x16xf32>
    %645 = vector.extract_strided_slice %632 {offsets = [0, 16], sizes = [8, 16], strides = [1, 1]} : vector<8x48xf32> to vector<8x16xf32>
    %646 = arith.addf %644, %645 : vector<8x16xf32>
    %647 = arith.negf %646 : vector<8x16xf32>
    %648 = math.exp %647 : vector<8x16xf32>
    %cst_193 = arith.constant 1.000000e+00 : f32
    %649 = vector.broadcast %cst_193 : f32 to vector<8x16xf32>
    %650 = arith.addf %649, %648 : vector<8x16xf32>
    %651 = arith.divf %649, %650 : vector<8x16xf32>
    %652 = vector.extract_strided_slice %625 {offsets = [0, 32], sizes = [8, 16], strides = [1, 1]} : vector<8x96xf32> to vector<8x16xf32>
    %653 = vector.extract_strided_slice %632 {offsets = [0, 32], sizes = [8, 16], strides = [1, 1]} : vector<8x48xf32> to vector<8x16xf32>
    %654 = arith.mulf %643, %653 : vector<8x16xf32>
    %655 = arith.addf %652, %654 : vector<8x16xf32>
    %656 = math.tanh %655 : vector<8x16xf32>
    %cst_194 = arith.constant 1.000000e+00 : f32
    %657 = vector.broadcast %cst_194 : f32 to vector<8x16xf32>
    %658 = arith.subf %657, %651 : vector<8x16xf32>
    %659 = arith.mulf %658, %656 : vector<8x16xf32>
    %660 = arith.mulf %651, %622 : vector<8x16xf32>
    %661 = arith.addf %659, %660 : vector<8x16xf32>
    %662 = vector.extract_strided_slice %629 {offsets = [0, 48], sizes = [8, 16], strides = [1, 1]} : vector<8x96xf32> to vector<8x16xf32>
    %663 = vector.extract_strided_slice %635 {offsets = [0, 0], sizes = [8, 16], strides = [1, 1]} : vector<8x48xf32> to vector<8x16xf32>
    %664 = arith.addf %662, %663 : vector<8x16xf32>
    %665 = arith.negf %664 : vector<8x16xf32>
    %666 = math.exp %665 : vector<8x16xf32>
    %cst_195 = arith.constant 1.000000e+00 : f32
    %667 = vector.broadcast %cst_195 : f32 to vector<8x16xf32>
    %668 = arith.addf %667, %666 : vector<8x16xf32>
    %669 = arith.divf %667, %668 : vector<8x16xf32>
    %670 = vector.extract_strided_slice %629 {offsets = [0, 64], sizes = [8, 16], strides = [1, 1]} : vector<8x96xf32> to vector<8x16xf32>
    %671 = vector.extract_strided_slice %635 {offsets = [0, 16], sizes = [8, 16], strides = [1, 1]} : vector<8x48xf32> to vector<8x16xf32>
    %672 = arith.addf %670, %671 : vector<8x16xf32>
    %673 = arith.negf %672 : vector<8x16xf32>
    %674 = math.exp %673 : vector<8x16xf32>
    %cst_196 = arith.constant 1.000000e+00 : f32
    %675 = vector.broadcast %cst_196 : f32 to vector<8x16xf32>
    %676 = arith.addf %675, %674 : vector<8x16xf32>
    %677 = arith.divf %675, %676 : vector<8x16xf32>
    %678 = vector.extract_strided_slice %629 {offsets = [0, 80], sizes = [8, 16], strides = [1, 1]} : vector<8x96xf32> to vector<8x16xf32>
    %679 = vector.extract_strided_slice %635 {offsets = [0, 32], sizes = [8, 16], strides = [1, 1]} : vector<8x48xf32> to vector<8x16xf32>
    %680 = arith.mulf %669, %679 : vector<8x16xf32>
    %681 = arith.addf %678, %680 : vector<8x16xf32>
    %682 = math.tanh %681 : vector<8x16xf32>
    %cst_197 = arith.constant 1.000000e+00 : f32
    %683 = vector.broadcast %cst_197 : f32 to vector<8x16xf32>
    %684 = arith.subf %683, %677 : vector<8x16xf32>
    %685 = arith.mulf %684, %682 : vector<8x16xf32>
    %686 = arith.mulf %677, %622 : vector<8x16xf32>
    %687 = arith.addf %685, %686 : vector<8x16xf32>
    %688 = arith.index_cast %c0_i32_184 : i32 to index
    %c0_198 = arith.constant 0 : index
    %c0_199 = arith.constant 0 : index
    %689 = vector.load %arg30[%688, %c0_198, %c0_199] : memref<8x8x32xf32, #tpu.memory_space<vmem>>, vector<1x8x16xf32>
    %690 = vector.shape_cast %689 : vector<1x8x16xf32> to vector<8x16xf32>
    %691 = vector.shape_cast %661 : vector<8x16xf32> to vector<1x8x16xf32>
    tpu.vector_store %arg30[%688, %c0_198, %c0_199], %691 {strides = array<i32>} : memref<8x8x32xf32, #tpu.memory_space<vmem>>, vector<1x8x16xf32>,
    %c7_i32_200 = arith.constant 7 : i32
    %692 = arith.subi %c7_i32_200, %c0_i32_184 : i32
    %693 = arith.index_cast %692 : i32 to index
    %c0_201 = arith.constant 0 : index
    %c16_202 = arith.constant 16 : index
    %694 = vector.load %arg30[%693, %c0_201, %c16_202] : memref<8x8x32xf32, #tpu.memory_space<vmem>>, vector<1x8x16xf32>
    %695 = vector.shape_cast %694 : vector<1x8x16xf32> to vector<8x16xf32>
    %696 = vector.shape_cast %687 : vector<8x16xf32> to vector<1x8x16xf32>
    tpu.vector_store %arg30[%693, %c0_201, %c16_202], %696 {strides = array<i32>} : memref<8x8x32xf32, #tpu.memory_space<vmem>>, vector<1x8x16xf32>,
    %c1_i32_203 = arith.constant 1 : i32
    %697 = arith.index_cast %c1_i32_203 : i32 to index
    %c0_204 = arith.constant 0 : index
    %c0_205 = arith.constant 0 : index
    %698 = vector.load %arg29[%697, %c0_204, %c0_205] : memref<8x8x96xf32, #tpu.memory_space<vmem>>, vector<1x8x96xf32>
    %699 = vector.shape_cast %698 : vector<1x8x96xf32> to vector<8x96xf32>
    %c7_i32_206 = arith.constant 7 : i32
    %700 = arith.subi %c7_i32_206, %c1_i32_203 : i32
    %701 = arith.index_cast %700 : i32 to index
    %c0_207 = arith.constant 0 : index
    %c0_208 = arith.constant 0 : index
    %702 = vector.load %arg29[%701, %c0_207, %c0_208] : memref<8x8x96xf32, #tpu.memory_space<vmem>>, vector<1x8x96xf32>
    %703 = vector.shape_cast %702 : vector<1x8x96xf32> to vector<8x96xf32>
    %cst_209 = arith.constant dense<0.000000e+00> : vector<8x48xf32>
    %704 = tpu.matmul %661, %618, %cst_209 {dimension_numbers = #tpu.dot_dimension_numbers<[1], [0], [0], [1], [0, 0, 1, 1], [], []>} : vector<8x16xf32>, vector<16x48xf32>, vector<8x48xf32> -> vector<8x48xf32>
    %705 = vector.broadcast %620 : vector<1x48xf32> to vector<8x48xf32>
    %706 = arith.addf %704, %705 : vector<8x48xf32>
    %cst_210 = arith.constant dense<0.000000e+00> : vector<8x48xf32>
    %707 = tpu.matmul %687, %619, %cst_210 {dimension_numbers = #tpu.dot_dimension_numbers<[1], [0], [0], [1], [0, 0, 1, 1], [], []>} : vector<8x16xf32>, vector<16x48xf32>, vector<8x48xf32> -> vector<8x48xf32>
    %708 = vector.broadcast %621 : vector<1x48xf32> to vector<8x48xf32>
    %709 = arith.addf %707, %708 : vector<8x48xf32>
    %710 = vector.extract_strided_slice %699 {offsets = [0, 0], sizes = [8, 16], strides = [1, 1]} : vector<8x96xf32> to vector<8x16xf32>
    %711 = vector.extract_strided_slice %706 {offsets = [0, 0], sizes = [8, 16], strides = [1, 1]} : vector<8x48xf32> to vector<8x16xf32>
    %712 = arith.addf %710, %711 : vector<8x16xf32>
    %713 = arith.negf %712 : vector<8x16xf32>
    %714 = math.exp %713 : vector<8x16xf32>
    %cst_211 = arith.constant 1.000000e+00 : f32
    %715 = vector.broadcast %cst_211 : f32 to vector<8x16xf32>
    %716 = arith.addf %715, %714 : vector<8x16xf32>
    %717 = arith.divf %715, %716 : vector<8x16xf32>
    %718 = vector.extract_strided_slice %699 {offsets = [0, 16], sizes = [8, 16], strides = [1, 1]} : vector<8x96xf32> to vector<8x16xf32>
    %719 = vector.extract_strided_slice %706 {offsets = [0, 16], sizes = [8, 16], strides = [1, 1]} : vector<8x48xf32> to vector<8x16xf32>
    %720 = arith.addf %718, %719 : vector<8x16xf32>
    %721 = arith.negf %720 : vector<8x16xf32>
    %722 = math.exp %721 : vector<8x16xf32>
    %cst_212 = arith.constant 1.000000e+00 : f32
    %723 = vector.broadcast %cst_212 : f32 to vector<8x16xf32>
    %724 = arith.addf %723, %722 : vector<8x16xf32>
    %725 = arith.divf %723, %724 : vector<8x16xf32>
    %726 = vector.extract_strided_slice %699 {offsets = [0, 32], sizes = [8, 16], strides = [1, 1]} : vector<8x96xf32> to vector<8x16xf32>
    %727 = vector.extract_strided_slice %706 {offsets = [0, 32], sizes = [8, 16], strides = [1, 1]} : vector<8x48xf32> to vector<8x16xf32>
    %728 = arith.mulf %717, %727 : vector<8x16xf32>
    %729 = arith.addf %726, %728 : vector<8x16xf32>
    %730 = math.tanh %729 : vector<8x16xf32>
    %cst_213 = arith.constant 1.000000e+00 : f32
    %731 = vector.broadcast %cst_213 : f32 to vector<8x16xf32>
    %732 = arith.subf %731, %725 : vector<8x16xf32>
    %733 = arith.mulf %732, %730 : vector<8x16xf32>
    %734 = arith.mulf %725, %661 : vector<8x16xf32>
    %735 = arith.addf %733, %734 : vector<8x16xf32>
    %736 = vector.extract_strided_slice %703 {offsets = [0, 48], sizes = [8, 16], strides = [1, 1]} : vector<8x96xf32> to vector<8x16xf32>
    %737 = vector.extract_strided_slice %709 {offsets = [0, 0], sizes = [8, 16], strides = [1, 1]} : vector<8x48xf32> to vector<8x16xf32>
    %738 = arith.addf %736, %737 : vector<8x16xf32>
    %739 = arith.negf %738 : vector<8x16xf32>
    %740 = math.exp %739 : vector<8x16xf32>
    %cst_214 = arith.constant 1.000000e+00 : f32
    %741 = vector.broadcast %cst_214 : f32 to vector<8x16xf32>
    %742 = arith.addf %741, %740 : vector<8x16xf32>
    %743 = arith.divf %741, %742 : vector<8x16xf32>
    %744 = vector.extract_strided_slice %703 {offsets = [0, 64], sizes = [8, 16], strides = [1, 1]} : vector<8x96xf32> to vector<8x16xf32>
    %745 = vector.extract_strided_slice %709 {offsets = [0, 16], sizes = [8, 16], strides = [1, 1]} : vector<8x48xf32> to vector<8x16xf32>
    %746 = arith.addf %744, %745 : vector<8x16xf32>
    %747 = arith.negf %746 : vector<8x16xf32>
    %748 = math.exp %747 : vector<8x16xf32>
    %cst_215 = arith.constant 1.000000e+00 : f32
    %749 = vector.broadcast %cst_215 : f32 to vector<8x16xf32>
    %750 = arith.addf %749, %748 : vector<8x16xf32>
    %751 = arith.divf %749, %750 : vector<8x16xf32>
    %752 = vector.extract_strided_slice %703 {offsets = [0, 80], sizes = [8, 16], strides = [1, 1]} : vector<8x96xf32> to vector<8x16xf32>
    %753 = vector.extract_strided_slice %709 {offsets = [0, 32], sizes = [8, 16], strides = [1, 1]} : vector<8x48xf32> to vector<8x16xf32>
    %754 = arith.mulf %743, %753 : vector<8x16xf32>
    %755 = arith.addf %752, %754 : vector<8x16xf32>
    %756 = math.tanh %755 : vector<8x16xf32>
    %cst_216 = arith.constant 1.000000e+00 : f32
    %757 = vector.broadcast %cst_216 : f32 to vector<8x16xf32>
    %758 = arith.subf %757, %751 : vector<8x16xf32>
    %759 = arith.mulf %758, %756 : vector<8x16xf32>
    %760 = arith.mulf %751, %687 : vector<8x16xf32>
    %761 = arith.addf %759, %760 : vector<8x16xf32>
    %762 = arith.index_cast %c1_i32_203 : i32 to index
    %c0_217 = arith.constant 0 : index
    %c0_218 = arith.constant 0 : index
    %763 = vector.load %arg30[%762, %c0_217, %c0_218] : memref<8x8x32xf32, #tpu.memory_space<vmem>>, vector<1x8x16xf32>
    %764 = vector.shape_cast %763 : vector<1x8x16xf32> to vector<8x16xf32>
    %765 = vector.shape_cast %735 : vector<8x16xf32> to vector<1x8x16xf32>
    tpu.vector_store %arg30[%762, %c0_217, %c0_218], %765 {strides = array<i32>} : memref<8x8x32xf32, #tpu.memory_space<vmem>>, vector<1x8x16xf32>,
    %c7_i32_219 = arith.constant 7 : i32
    %766 = arith.subi %c7_i32_219, %c1_i32_203 : i32
    %767 = arith.index_cast %766 : i32 to index
    %c0_220 = arith.constant 0 : index
    %c16_221 = arith.constant 16 : index
    %768 = vector.load %arg30[%767, %c0_220, %c16_221] : memref<8x8x32xf32, #tpu.memory_space<vmem>>, vector<1x8x16xf32>
    %769 = vector.shape_cast %768 : vector<1x8x16xf32> to vector<8x16xf32>
    %770 = vector.shape_cast %761 : vector<8x16xf32> to vector<1x8x16xf32>
    tpu.vector_store %arg30[%767, %c0_220, %c16_221], %770 {strides = array<i32>} : memref<8x8x32xf32, #tpu.memory_space<vmem>>, vector<1x8x16xf32>,
    %c2_i32_222 = arith.constant 2 : i32
    %771 = arith.index_cast %c2_i32_222 : i32 to index
    %c0_223 = arith.constant 0 : index
    %c0_224 = arith.constant 0 : index
    %772 = vector.load %arg29[%771, %c0_223, %c0_224] : memref<8x8x96xf32, #tpu.memory_space<vmem>>, vector<1x8x96xf32>
    %773 = vector.shape_cast %772 : vector<1x8x96xf32> to vector<8x96xf32>
    %c7_i32_225 = arith.constant 7 : i32
    %774 = arith.subi %c7_i32_225, %c2_i32_222 : i32
    %775 = arith.index_cast %774 : i32 to index
    %c0_226 = arith.constant 0 : index
    %c0_227 = arith.constant 0 : index
    %776 = vector.load %arg29[%775, %c0_226, %c0_227] : memref<8x8x96xf32, #tpu.memory_space<vmem>>, vector<1x8x96xf32>
    %777 = vector.shape_cast %776 : vector<1x8x96xf32> to vector<8x96xf32>
    %cst_228 = arith.constant dense<0.000000e+00> : vector<8x48xf32>
    %778 = tpu.matmul %735, %618, %cst_228 {dimension_numbers = #tpu.dot_dimension_numbers<[1], [0], [0], [1], [0, 0, 1, 1], [], []>} : vector<8x16xf32>, vector<16x48xf32>, vector<8x48xf32> -> vector<8x48xf32>
    %779 = vector.broadcast %620 : vector<1x48xf32> to vector<8x48xf32>
    %780 = arith.addf %778, %779 : vector<8x48xf32>
    %cst_229 = arith.constant dense<0.000000e+00> : vector<8x48xf32>
    %781 = tpu.matmul %761, %619, %cst_229 {dimension_numbers = #tpu.dot_dimension_numbers<[1], [0], [0], [1], [0, 0, 1, 1], [], []>} : vector<8x16xf32>, vector<16x48xf32>, vector<8x48xf32> -> vector<8x48xf32>
    %782 = vector.broadcast %621 : vector<1x48xf32> to vector<8x48xf32>
    %783 = arith.addf %781, %782 : vector<8x48xf32>
    %784 = vector.extract_strided_slice %773 {offsets = [0, 0], sizes = [8, 16], strides = [1, 1]} : vector<8x96xf32> to vector<8x16xf32>
    %785 = vector.extract_strided_slice %780 {offsets = [0, 0], sizes = [8, 16], strides = [1, 1]} : vector<8x48xf32> to vector<8x16xf32>
    %786 = arith.addf %784, %785 : vector<8x16xf32>
    %787 = arith.negf %786 : vector<8x16xf32>
    %788 = math.exp %787 : vector<8x16xf32>
    %cst_230 = arith.constant 1.000000e+00 : f32
    %789 = vector.broadcast %cst_230 : f32 to vector<8x16xf32>
    %790 = arith.addf %789, %788 : vector<8x16xf32>
    %791 = arith.divf %789, %790 : vector<8x16xf32>
    %792 = vector.extract_strided_slice %773 {offsets = [0, 16], sizes = [8, 16], strides = [1, 1]} : vector<8x96xf32> to vector<8x16xf32>
    %793 = vector.extract_strided_slice %780 {offsets = [0, 16], sizes = [8, 16], strides = [1, 1]} : vector<8x48xf32> to vector<8x16xf32>
    %794 = arith.addf %792, %793 : vector<8x16xf32>
    %795 = arith.negf %794 : vector<8x16xf32>
    %796 = math.exp %795 : vector<8x16xf32>
    %cst_231 = arith.constant 1.000000e+00 : f32
    %797 = vector.broadcast %cst_231 : f32 to vector<8x16xf32>
    %798 = arith.addf %797, %796 : vector<8x16xf32>
    %799 = arith.divf %797, %798 : vector<8x16xf32>
    %800 = vector.extract_strided_slice %773 {offsets = [0, 32], sizes = [8, 16], strides = [1, 1]} : vector<8x96xf32> to vector<8x16xf32>
    %801 = vector.extract_strided_slice %780 {offsets = [0, 32], sizes = [8, 16], strides = [1, 1]} : vector<8x48xf32> to vector<8x16xf32>
    %802 = arith.mulf %791, %801 : vector<8x16xf32>
    %803 = arith.addf %800, %802 : vector<8x16xf32>
    %804 = math.tanh %803 : vector<8x16xf32>
    %cst_232 = arith.constant 1.000000e+00 : f32
    %805 = vector.broadcast %cst_232 : f32 to vector<8x16xf32>
    %806 = arith.subf %805, %799 : vector<8x16xf32>
    %807 = arith.mulf %806, %804 : vector<8x16xf32>
    %808 = arith.mulf %799, %735 : vector<8x16xf32>
    %809 = arith.addf %807, %808 : vector<8x16xf32>
    %810 = vector.extract_strided_slice %777 {offsets = [0, 48], sizes = [8, 16], strides = [1, 1]} : vector<8x96xf32> to vector<8x16xf32>
    %811 = vector.extract_strided_slice %783 {offsets = [0, 0], sizes = [8, 16], strides = [1, 1]} : vector<8x48xf32> to vector<8x16xf32>
    %812 = arith.addf %810, %811 : vector<8x16xf32>
    %813 = arith.negf %812 : vector<8x16xf32>
    %814 = math.exp %813 : vector<8x16xf32>
    %cst_233 = arith.constant 1.000000e+00 : f32
    %815 = vector.broadcast %cst_233 : f32 to vector<8x16xf32>
    %816 = arith.addf %815, %814 : vector<8x16xf32>
    %817 = arith.divf %815, %816 : vector<8x16xf32>
    %818 = vector.extract_strided_slice %777 {offsets = [0, 64], sizes = [8, 16], strides = [1, 1]} : vector<8x96xf32> to vector<8x16xf32>
    %819 = vector.extract_strided_slice %783 {offsets = [0, 16], sizes = [8, 16], strides = [1, 1]} : vector<8x48xf32> to vector<8x16xf32>
    %820 = arith.addf %818, %819 : vector<8x16xf32>
    %821 = arith.negf %820 : vector<8x16xf32>
    %822 = math.exp %821 : vector<8x16xf32>
    %cst_234 = arith.constant 1.000000e+00 : f32
    %823 = vector.broadcast %cst_234 : f32 to vector<8x16xf32>
    %824 = arith.addf %823, %822 : vector<8x16xf32>
    %825 = arith.divf %823, %824 : vector<8x16xf32>
    %826 = vector.extract_strided_slice %777 {offsets = [0, 80], sizes = [8, 16], strides = [1, 1]} : vector<8x96xf32> to vector<8x16xf32>
    %827 = vector.extract_strided_slice %783 {offsets = [0, 32], sizes = [8, 16], strides = [1, 1]} : vector<8x48xf32> to vector<8x16xf32>
    %828 = arith.mulf %817, %827 : vector<8x16xf32>
    %829 = arith.addf %826, %828 : vector<8x16xf32>
    %830 = math.tanh %829 : vector<8x16xf32>
    %cst_235 = arith.constant 1.000000e+00 : f32
    %831 = vector.broadcast %cst_235 : f32 to vector<8x16xf32>
    %832 = arith.subf %831, %825 : vector<8x16xf32>
    %833 = arith.mulf %832, %830 : vector<8x16xf32>
    %834 = arith.mulf %825, %761 : vector<8x16xf32>
    %835 = arith.addf %833, %834 : vector<8x16xf32>
    %836 = arith.index_cast %c2_i32_222 : i32 to index
    %c0_236 = arith.constant 0 : index
    %c0_237 = arith.constant 0 : index
    %837 = vector.load %arg30[%836, %c0_236, %c0_237] : memref<8x8x32xf32, #tpu.memory_space<vmem>>, vector<1x8x16xf32>
    %838 = vector.shape_cast %837 : vector<1x8x16xf32> to vector<8x16xf32>
    %839 = vector.shape_cast %809 : vector<8x16xf32> to vector<1x8x16xf32>
    tpu.vector_store %arg30[%836, %c0_236, %c0_237], %839 {strides = array<i32>} : memref<8x8x32xf32, #tpu.memory_space<vmem>>, vector<1x8x16xf32>,
    %c7_i32_238 = arith.constant 7 : i32
    %840 = arith.subi %c7_i32_238, %c2_i32_222 : i32
    %841 = arith.index_cast %840 : i32 to index
    %c0_239 = arith.constant 0 : index
    %c16_240 = arith.constant 16 : index
    %842 = vector.load %arg30[%841, %c0_239, %c16_240] : memref<8x8x32xf32, #tpu.memory_space<vmem>>, vector<1x8x16xf32>
    %843 = vector.shape_cast %842 : vector<1x8x16xf32> to vector<8x16xf32>
    %844 = vector.shape_cast %835 : vector<8x16xf32> to vector<1x8x16xf32>
    tpu.vector_store %arg30[%841, %c0_239, %c16_240], %844 {strides = array<i32>} : memref<8x8x32xf32, #tpu.memory_space<vmem>>, vector<1x8x16xf32>,
    %c3_i32_241 = arith.constant 3 : i32
    %845 = arith.index_cast %c3_i32_241 : i32 to index
    %c0_242 = arith.constant 0 : index
    %c0_243 = arith.constant 0 : index
    %846 = vector.load %arg29[%845, %c0_242, %c0_243] : memref<8x8x96xf32, #tpu.memory_space<vmem>>, vector<1x8x96xf32>
    %847 = vector.shape_cast %846 : vector<1x8x96xf32> to vector<8x96xf32>
    %c7_i32_244 = arith.constant 7 : i32
    %848 = arith.subi %c7_i32_244, %c3_i32_241 : i32
    %849 = arith.index_cast %848 : i32 to index
    %c0_245 = arith.constant 0 : index
    %c0_246 = arith.constant 0 : index
    %850 = vector.load %arg29[%849, %c0_245, %c0_246] : memref<8x8x96xf32, #tpu.memory_space<vmem>>, vector<1x8x96xf32>
    %851 = vector.shape_cast %850 : vector<1x8x96xf32> to vector<8x96xf32>
    %cst_247 = arith.constant dense<0.000000e+00> : vector<8x48xf32>
    %852 = tpu.matmul %809, %618, %cst_247 {dimension_numbers = #tpu.dot_dimension_numbers<[1], [0], [0], [1], [0, 0, 1, 1], [], []>} : vector<8x16xf32>, vector<16x48xf32>, vector<8x48xf32> -> vector<8x48xf32>
    %853 = vector.broadcast %620 : vector<1x48xf32> to vector<8x48xf32>
    %854 = arith.addf %852, %853 : vector<8x48xf32>
    %cst_248 = arith.constant dense<0.000000e+00> : vector<8x48xf32>
    %855 = tpu.matmul %835, %619, %cst_248 {dimension_numbers = #tpu.dot_dimension_numbers<[1], [0], [0], [1], [0, 0, 1, 1], [], []>} : vector<8x16xf32>, vector<16x48xf32>, vector<8x48xf32> -> vector<8x48xf32>
    %856 = vector.broadcast %621 : vector<1x48xf32> to vector<8x48xf32>
    %857 = arith.addf %855, %856 : vector<8x48xf32>
    %858 = vector.extract_strided_slice %847 {offsets = [0, 0], sizes = [8, 16], strides = [1, 1]} : vector<8x96xf32> to vector<8x16xf32>
    %859 = vector.extract_strided_slice %854 {offsets = [0, 0], sizes = [8, 16], strides = [1, 1]} : vector<8x48xf32> to vector<8x16xf32>
    %860 = arith.addf %858, %859 : vector<8x16xf32>
    %861 = arith.negf %860 : vector<8x16xf32>
    %862 = math.exp %861 : vector<8x16xf32>
    %cst_249 = arith.constant 1.000000e+00 : f32
    %863 = vector.broadcast %cst_249 : f32 to vector<8x16xf32>
    %864 = arith.addf %863, %862 : vector<8x16xf32>
    %865 = arith.divf %863, %864 : vector<8x16xf32>
    %866 = vector.extract_strided_slice %847 {offsets = [0, 16], sizes = [8, 16], strides = [1, 1]} : vector<8x96xf32> to vector<8x16xf32>
    %867 = vector.extract_strided_slice %854 {offsets = [0, 16], sizes = [8, 16], strides = [1, 1]} : vector<8x48xf32> to vector<8x16xf32>
    %868 = arith.addf %866, %867 : vector<8x16xf32>
    %869 = arith.negf %868 : vector<8x16xf32>
    %870 = math.exp %869 : vector<8x16xf32>
    %cst_250 = arith.constant 1.000000e+00 : f32
    %871 = vector.broadcast %cst_250 : f32 to vector<8x16xf32>
    %872 = arith.addf %871, %870 : vector<8x16xf32>
    %873 = arith.divf %871, %872 : vector<8x16xf32>
    %874 = vector.extract_strided_slice %847 {offsets = [0, 32], sizes = [8, 16], strides = [1, 1]} : vector<8x96xf32> to vector<8x16xf32>
    %875 = vector.extract_strided_slice %854 {offsets = [0, 32], sizes = [8, 16], strides = [1, 1]} : vector<8x48xf32> to vector<8x16xf32>
    %876 = arith.mulf %865, %875 : vector<8x16xf32>
    %877 = arith.addf %874, %876 : vector<8x16xf32>
    %878 = math.tanh %877 : vector<8x16xf32>
    %cst_251 = arith.constant 1.000000e+00 : f32
    %879 = vector.broadcast %cst_251 : f32 to vector<8x16xf32>
    %880 = arith.subf %879, %873 : vector<8x16xf32>
    %881 = arith.mulf %880, %878 : vector<8x16xf32>
    %882 = arith.mulf %873, %809 : vector<8x16xf32>
    %883 = arith.addf %881, %882 : vector<8x16xf32>
    %884 = vector.extract_strided_slice %851 {offsets = [0, 48], sizes = [8, 16], strides = [1, 1]} : vector<8x96xf32> to vector<8x16xf32>
    %885 = vector.extract_strided_slice %857 {offsets = [0, 0], sizes = [8, 16], strides = [1, 1]} : vector<8x48xf32> to vector<8x16xf32>
    %886 = arith.addf %884, %885 : vector<8x16xf32>
    %887 = arith.negf %886 : vector<8x16xf32>
    %888 = math.exp %887 : vector<8x16xf32>
    %cst_252 = arith.constant 1.000000e+00 : f32
    %889 = vector.broadcast %cst_252 : f32 to vector<8x16xf32>
    %890 = arith.addf %889, %888 : vector<8x16xf32>
    %891 = arith.divf %889, %890 : vector<8x16xf32>
    %892 = vector.extract_strided_slice %851 {offsets = [0, 64], sizes = [8, 16], strides = [1, 1]} : vector<8x96xf32> to vector<8x16xf32>
    %893 = vector.extract_strided_slice %857 {offsets = [0, 16], sizes = [8, 16], strides = [1, 1]} : vector<8x48xf32> to vector<8x16xf32>
    %894 = arith.addf %892, %893 : vector<8x16xf32>
    %895 = arith.negf %894 : vector<8x16xf32>
    %896 = math.exp %895 : vector<8x16xf32>
    %cst_253 = arith.constant 1.000000e+00 : f32
    %897 = vector.broadcast %cst_253 : f32 to vector<8x16xf32>
    %898 = arith.addf %897, %896 : vector<8x16xf32>
    %899 = arith.divf %897, %898 : vector<8x16xf32>
    %900 = vector.extract_strided_slice %851 {offsets = [0, 80], sizes = [8, 16], strides = [1, 1]} : vector<8x96xf32> to vector<8x16xf32>
    %901 = vector.extract_strided_slice %857 {offsets = [0, 32], sizes = [8, 16], strides = [1, 1]} : vector<8x48xf32> to vector<8x16xf32>
    %902 = arith.mulf %891, %901 : vector<8x16xf32>
    %903 = arith.addf %900, %902 : vector<8x16xf32>
    %904 = math.tanh %903 : vector<8x16xf32>
    %cst_254 = arith.constant 1.000000e+00 : f32
    %905 = vector.broadcast %cst_254 : f32 to vector<8x16xf32>
    %906 = arith.subf %905, %899 : vector<8x16xf32>
    %907 = arith.mulf %906, %904 : vector<8x16xf32>
    %908 = arith.mulf %899, %835 : vector<8x16xf32>
    %909 = arith.addf %907, %908 : vector<8x16xf32>
    %910 = arith.index_cast %c3_i32_241 : i32 to index
    %c0_255 = arith.constant 0 : index
    %c0_256 = arith.constant 0 : index
    %911 = vector.load %arg30[%910, %c0_255, %c0_256] : memref<8x8x32xf32, #tpu.memory_space<vmem>>, vector<1x8x16xf32>
    %912 = vector.shape_cast %911 : vector<1x8x16xf32> to vector<8x16xf32>
    %913 = vector.shape_cast %883 : vector<8x16xf32> to vector<1x8x16xf32>
    tpu.vector_store %arg30[%910, %c0_255, %c0_256], %913 {strides = array<i32>} : memref<8x8x32xf32, #tpu.memory_space<vmem>>, vector<1x8x16xf32>,
    %c7_i32_257 = arith.constant 7 : i32
    %914 = arith.subi %c7_i32_257, %c3_i32_241 : i32
    %915 = arith.index_cast %914 : i32 to index
    %c0_258 = arith.constant 0 : index
    %c16_259 = arith.constant 16 : index
    %916 = vector.load %arg30[%915, %c0_258, %c16_259] : memref<8x8x32xf32, #tpu.memory_space<vmem>>, vector<1x8x16xf32>
    %917 = vector.shape_cast %916 : vector<1x8x16xf32> to vector<8x16xf32>
    %918 = vector.shape_cast %909 : vector<8x16xf32> to vector<1x8x16xf32>
    tpu.vector_store %arg30[%915, %c0_258, %c16_259], %918 {strides = array<i32>} : memref<8x8x32xf32, #tpu.memory_space<vmem>>, vector<1x8x16xf32>,
    %c4_i32_260 = arith.constant 4 : i32
    %919 = arith.index_cast %c4_i32_260 : i32 to index
    %c0_261 = arith.constant 0 : index
    %c0_262 = arith.constant 0 : index
    %920 = vector.load %arg29[%919, %c0_261, %c0_262] : memref<8x8x96xf32, #tpu.memory_space<vmem>>, vector<1x8x96xf32>
    %921 = vector.shape_cast %920 : vector<1x8x96xf32> to vector<8x96xf32>
    %c7_i32_263 = arith.constant 7 : i32
    %922 = arith.subi %c7_i32_263, %c4_i32_260 : i32
    %923 = arith.index_cast %922 : i32 to index
    %c0_264 = arith.constant 0 : index
    %c0_265 = arith.constant 0 : index
    %924 = vector.load %arg29[%923, %c0_264, %c0_265] : memref<8x8x96xf32, #tpu.memory_space<vmem>>, vector<1x8x96xf32>
    %925 = vector.shape_cast %924 : vector<1x8x96xf32> to vector<8x96xf32>
    %cst_266 = arith.constant dense<0.000000e+00> : vector<8x48xf32>
    %926 = tpu.matmul %883, %618, %cst_266 {dimension_numbers = #tpu.dot_dimension_numbers<[1], [0], [0], [1], [0, 0, 1, 1], [], []>} : vector<8x16xf32>, vector<16x48xf32>, vector<8x48xf32> -> vector<8x48xf32>
    %927 = vector.broadcast %620 : vector<1x48xf32> to vector<8x48xf32>
    %928 = arith.addf %926, %927 : vector<8x48xf32>
    %cst_267 = arith.constant dense<0.000000e+00> : vector<8x48xf32>
    %929 = tpu.matmul %909, %619, %cst_267 {dimension_numbers = #tpu.dot_dimension_numbers<[1], [0], [0], [1], [0, 0, 1, 1], [], []>} : vector<8x16xf32>, vector<16x48xf32>, vector<8x48xf32> -> vector<8x48xf32>
    %930 = vector.broadcast %621 : vector<1x48xf32> to vector<8x48xf32>
    %931 = arith.addf %929, %930 : vector<8x48xf32>
    %932 = vector.extract_strided_slice %921 {offsets = [0, 0], sizes = [8, 16], strides = [1, 1]} : vector<8x96xf32> to vector<8x16xf32>
    %933 = vector.extract_strided_slice %928 {offsets = [0, 0], sizes = [8, 16], strides = [1, 1]} : vector<8x48xf32> to vector<8x16xf32>
    %934 = arith.addf %932, %933 : vector<8x16xf32>
    %935 = arith.negf %934 : vector<8x16xf32>
    %936 = math.exp %935 : vector<8x16xf32>
    %cst_268 = arith.constant 1.000000e+00 : f32
    %937 = vector.broadcast %cst_268 : f32 to vector<8x16xf32>
    %938 = arith.addf %937, %936 : vector<8x16xf32>
    %939 = arith.divf %937, %938 : vector<8x16xf32>
    %940 = vector.extract_strided_slice %921 {offsets = [0, 16], sizes = [8, 16], strides = [1, 1]} : vector<8x96xf32> to vector<8x16xf32>
    %941 = vector.extract_strided_slice %928 {offsets = [0, 16], sizes = [8, 16], strides = [1, 1]} : vector<8x48xf32> to vector<8x16xf32>
    %942 = arith.addf %940, %941 : vector<8x16xf32>
    %943 = arith.negf %942 : vector<8x16xf32>
    %944 = math.exp %943 : vector<8x16xf32>
    %cst_269 = arith.constant 1.000000e+00 : f32
    %945 = vector.broadcast %cst_269 : f32 to vector<8x16xf32>
    %946 = arith.addf %945, %944 : vector<8x16xf32>
    %947 = arith.divf %945, %946 : vector<8x16xf32>
    %948 = vector.extract_strided_slice %921 {offsets = [0, 32], sizes = [8, 16], strides = [1, 1]} : vector<8x96xf32> to vector<8x16xf32>
    %949 = vector.extract_strided_slice %928 {offsets = [0, 32], sizes = [8, 16], strides = [1, 1]} : vector<8x48xf32> to vector<8x16xf32>
    %950 = arith.mulf %939, %949 : vector<8x16xf32>
    %951 = arith.addf %948, %950 : vector<8x16xf32>
    %952 = math.tanh %951 : vector<8x16xf32>
    %cst_270 = arith.constant 1.000000e+00 : f32
    %953 = vector.broadcast %cst_270 : f32 to vector<8x16xf32>
    %954 = arith.subf %953, %947 : vector<8x16xf32>
    %955 = arith.mulf %954, %952 : vector<8x16xf32>
    %956 = arith.mulf %947, %883 : vector<8x16xf32>
    %957 = arith.addf %955, %956 : vector<8x16xf32>
    %958 = vector.extract_strided_slice %925 {offsets = [0, 48], sizes = [8, 16], strides = [1, 1]} : vector<8x96xf32> to vector<8x16xf32>
    %959 = vector.extract_strided_slice %931 {offsets = [0, 0], sizes = [8, 16], strides = [1, 1]} : vector<8x48xf32> to vector<8x16xf32>
    %960 = arith.addf %958, %959 : vector<8x16xf32>
    %961 = arith.negf %960 : vector<8x16xf32>
    %962 = math.exp %961 : vector<8x16xf32>
    %cst_271 = arith.constant 1.000000e+00 : f32
    %963 = vector.broadcast %cst_271 : f32 to vector<8x16xf32>
    %964 = arith.addf %963, %962 : vector<8x16xf32>
    %965 = arith.divf %963, %964 : vector<8x16xf32>
    %966 = vector.extract_strided_slice %925 {offsets = [0, 64], sizes = [8, 16], strides = [1, 1]} : vector<8x96xf32> to vector<8x16xf32>
    %967 = vector.extract_strided_slice %931 {offsets = [0, 16], sizes = [8, 16], strides = [1, 1]} : vector<8x48xf32> to vector<8x16xf32>
    %968 = arith.addf %966, %967 : vector<8x16xf32>
    %969 = arith.negf %968 : vector<8x16xf32>
    %970 = math.exp %969 : vector<8x16xf32>
    %cst_272 = arith.constant 1.000000e+00 : f32
    %971 = vector.broadcast %cst_272 : f32 to vector<8x16xf32>
    %972 = arith.addf %971, %970 : vector<8x16xf32>
    %973 = arith.divf %971, %972 : vector<8x16xf32>
    %974 = vector.extract_strided_slice %925 {offsets = [0, 80], sizes = [8, 16], strides = [1, 1]} : vector<8x96xf32> to vector<8x16xf32>
    %975 = vector.extract_strided_slice %931 {offsets = [0, 32], sizes = [8, 16], strides = [1, 1]} : vector<8x48xf32> to vector<8x16xf32>
    %976 = arith.mulf %965, %975 : vector<8x16xf32>
    %977 = arith.addf %974, %976 : vector<8x16xf32>
    %978 = math.tanh %977 : vector<8x16xf32>
    %cst_273 = arith.constant 1.000000e+00 : f32
    %979 = vector.broadcast %cst_273 : f32 to vector<8x16xf32>
    %980 = arith.subf %979, %973 : vector<8x16xf32>
    %981 = arith.mulf %980, %978 : vector<8x16xf32>
    %982 = arith.mulf %973, %909 : vector<8x16xf32>
    %983 = arith.addf %981, %982 : vector<8x16xf32>
    %984 = arith.index_cast %c4_i32_260 : i32 to index
    %c0_274 = arith.constant 0 : index
    %c0_275 = arith.constant 0 : index
    %985 = vector.load %arg30[%984, %c0_274, %c0_275] : memref<8x8x32xf32, #tpu.memory_space<vmem>>, vector<1x8x16xf32>
    %986 = vector.shape_cast %985 : vector<1x8x16xf32> to vector<8x16xf32>
    %987 = vector.shape_cast %957 : vector<8x16xf32> to vector<1x8x16xf32>
    tpu.vector_store %arg30[%984, %c0_274, %c0_275], %987 {strides = array<i32>} : memref<8x8x32xf32, #tpu.memory_space<vmem>>, vector<1x8x16xf32>,
    %c7_i32_276 = arith.constant 7 : i32
    %988 = arith.subi %c7_i32_276, %c4_i32_260 : i32
    %989 = arith.index_cast %988 : i32 to index
    %c0_277 = arith.constant 0 : index
    %c16_278 = arith.constant 16 : index
    %990 = vector.load %arg30[%989, %c0_277, %c16_278] : memref<8x8x32xf32, #tpu.memory_space<vmem>>, vector<1x8x16xf32>
    %991 = vector.shape_cast %990 : vector<1x8x16xf32> to vector<8x16xf32>
    %992 = vector.shape_cast %983 : vector<8x16xf32> to vector<1x8x16xf32>
    tpu.vector_store %arg30[%989, %c0_277, %c16_278], %992 {strides = array<i32>} : memref<8x8x32xf32, #tpu.memory_space<vmem>>, vector<1x8x16xf32>,
    %c5_i32_279 = arith.constant 5 : i32
    %993 = arith.index_cast %c5_i32_279 : i32 to index
    %c0_280 = arith.constant 0 : index
    %c0_281 = arith.constant 0 : index
    %994 = vector.load %arg29[%993, %c0_280, %c0_281] : memref<8x8x96xf32, #tpu.memory_space<vmem>>, vector<1x8x96xf32>
    %995 = vector.shape_cast %994 : vector<1x8x96xf32> to vector<8x96xf32>
    %c7_i32_282 = arith.constant 7 : i32
    %996 = arith.subi %c7_i32_282, %c5_i32_279 : i32
    %997 = arith.index_cast %996 : i32 to index
    %c0_283 = arith.constant 0 : index
    %c0_284 = arith.constant 0 : index
    %998 = vector.load %arg29[%997, %c0_283, %c0_284] : memref<8x8x96xf32, #tpu.memory_space<vmem>>, vector<1x8x96xf32>
    %999 = vector.shape_cast %998 : vector<1x8x96xf32> to vector<8x96xf32>
    %cst_285 = arith.constant dense<0.000000e+00> : vector<8x48xf32>
    %1000 = tpu.matmul %957, %618, %cst_285 {dimension_numbers = #tpu.dot_dimension_numbers<[1], [0], [0], [1], [0, 0, 1, 1], [], []>} : vector<8x16xf32>, vector<16x48xf32>, vector<8x48xf32> -> vector<8x48xf32>
    %1001 = vector.broadcast %620 : vector<1x48xf32> to vector<8x48xf32>
    %1002 = arith.addf %1000, %1001 : vector<8x48xf32>
    %cst_286 = arith.constant dense<0.000000e+00> : vector<8x48xf32>
    %1003 = tpu.matmul %983, %619, %cst_286 {dimension_numbers = #tpu.dot_dimension_numbers<[1], [0], [0], [1], [0, 0, 1, 1], [], []>} : vector<8x16xf32>, vector<16x48xf32>, vector<8x48xf32> -> vector<8x48xf32>
    %1004 = vector.broadcast %621 : vector<1x48xf32> to vector<8x48xf32>
    %1005 = arith.addf %1003, %1004 : vector<8x48xf32>
    %1006 = vector.extract_strided_slice %995 {offsets = [0, 0], sizes = [8, 16], strides = [1, 1]} : vector<8x96xf32> to vector<8x16xf32>
    %1007 = vector.extract_strided_slice %1002 {offsets = [0, 0], sizes = [8, 16], strides = [1, 1]} : vector<8x48xf32> to vector<8x16xf32>
    %1008 = arith.addf %1006, %1007 : vector<8x16xf32>
    %1009 = arith.negf %1008 : vector<8x16xf32>
    %1010 = math.exp %1009 : vector<8x16xf32>
    %cst_287 = arith.constant 1.000000e+00 : f32
    %1011 = vector.broadcast %cst_287 : f32 to vector<8x16xf32>
    %1012 = arith.addf %1011, %1010 : vector<8x16xf32>
    %1013 = arith.divf %1011, %1012 : vector<8x16xf32>
    %1014 = vector.extract_strided_slice %995 {offsets = [0, 16], sizes = [8, 16], strides = [1, 1]} : vector<8x96xf32> to vector<8x16xf32>
    %1015 = vector.extract_strided_slice %1002 {offsets = [0, 16], sizes = [8, 16], strides = [1, 1]} : vector<8x48xf32> to vector<8x16xf32>
    %1016 = arith.addf %1014, %1015 : vector<8x16xf32>
    %1017 = arith.negf %1016 : vector<8x16xf32>
    %1018 = math.exp %1017 : vector<8x16xf32>
    %cst_288 = arith.constant 1.000000e+00 : f32
    %1019 = vector.broadcast %cst_288 : f32 to vector<8x16xf32>
    %1020 = arith.addf %1019, %1018 : vector<8x16xf32>
    %1021 = arith.divf %1019, %1020 : vector<8x16xf32>
    %1022 = vector.extract_strided_slice %995 {offsets = [0, 32], sizes = [8, 16], strides = [1, 1]} : vector<8x96xf32> to vector<8x16xf32>
    %1023 = vector.extract_strided_slice %1002 {offsets = [0, 32], sizes = [8, 16], strides = [1, 1]} : vector<8x48xf32> to vector<8x16xf32>
    %1024 = arith.mulf %1013, %1023 : vector<8x16xf32>
    %1025 = arith.addf %1022, %1024 : vector<8x16xf32>
    %1026 = math.tanh %1025 : vector<8x16xf32>
    %cst_289 = arith.constant 1.000000e+00 : f32
    %1027 = vector.broadcast %cst_289 : f32 to vector<8x16xf32>
    %1028 = arith.subf %1027, %1021 : vector<8x16xf32>
    %1029 = arith.mulf %1028, %1026 : vector<8x16xf32>
    %1030 = arith.mulf %1021, %957 : vector<8x16xf32>
    %1031 = arith.addf %1029, %1030 : vector<8x16xf32>
    %1032 = vector.extract_strided_slice %999 {offsets = [0, 48], sizes = [8, 16], strides = [1, 1]} : vector<8x96xf32> to vector<8x16xf32>
    %1033 = vector.extract_strided_slice %1005 {offsets = [0, 0], sizes = [8, 16], strides = [1, 1]} : vector<8x48xf32> to vector<8x16xf32>
    %1034 = arith.addf %1032, %1033 : vector<8x16xf32>
    %1035 = arith.negf %1034 : vector<8x16xf32>
    %1036 = math.exp %1035 : vector<8x16xf32>
    %cst_290 = arith.constant 1.000000e+00 : f32
    %1037 = vector.broadcast %cst_290 : f32 to vector<8x16xf32>
    %1038 = arith.addf %1037, %1036 : vector<8x16xf32>
    %1039 = arith.divf %1037, %1038 : vector<8x16xf32>
    %1040 = vector.extract_strided_slice %999 {offsets = [0, 64], sizes = [8, 16], strides = [1, 1]} : vector<8x96xf32> to vector<8x16xf32>
    %1041 = vector.extract_strided_slice %1005 {offsets = [0, 16], sizes = [8, 16], strides = [1, 1]} : vector<8x48xf32> to vector<8x16xf32>
    %1042 = arith.addf %1040, %1041 : vector<8x16xf32>
    %1043 = arith.negf %1042 : vector<8x16xf32>
    %1044 = math.exp %1043 : vector<8x16xf32>
    %cst_291 = arith.constant 1.000000e+00 : f32
    %1045 = vector.broadcast %cst_291 : f32 to vector<8x16xf32>
    %1046 = arith.addf %1045, %1044 : vector<8x16xf32>
    %1047 = arith.divf %1045, %1046 : vector<8x16xf32>
    %1048 = vector.extract_strided_slice %999 {offsets = [0, 80], sizes = [8, 16], strides = [1, 1]} : vector<8x96xf32> to vector<8x16xf32>
    %1049 = vector.extract_strided_slice %1005 {offsets = [0, 32], sizes = [8, 16], strides = [1, 1]} : vector<8x48xf32> to vector<8x16xf32>
    %1050 = arith.mulf %1039, %1049 : vector<8x16xf32>
    %1051 = arith.addf %1048, %1050 : vector<8x16xf32>
    %1052 = math.tanh %1051 : vector<8x16xf32>
    %cst_292 = arith.constant 1.000000e+00 : f32
    %1053 = vector.broadcast %cst_292 : f32 to vector<8x16xf32>
    %1054 = arith.subf %1053, %1047 : vector<8x16xf32>
    %1055 = arith.mulf %1054, %1052 : vector<8x16xf32>
    %1056 = arith.mulf %1047, %983 : vector<8x16xf32>
    %1057 = arith.addf %1055, %1056 : vector<8x16xf32>
    %1058 = arith.index_cast %c5_i32_279 : i32 to index
    %c0_293 = arith.constant 0 : index
    %c0_294 = arith.constant 0 : index
    %1059 = vector.load %arg30[%1058, %c0_293, %c0_294] : memref<8x8x32xf32, #tpu.memory_space<vmem>>, vector<1x8x16xf32>
    %1060 = vector.shape_cast %1059 : vector<1x8x16xf32> to vector<8x16xf32>
    %1061 = vector.shape_cast %1031 : vector<8x16xf32> to vector<1x8x16xf32>
    tpu.vector_store %arg30[%1058, %c0_293, %c0_294], %1061 {strides = array<i32>} : memref<8x8x32xf32, #tpu.memory_space<vmem>>, vector<1x8x16xf32>,
    %c7_i32_295 = arith.constant 7 : i32
    %1062 = arith.subi %c7_i32_295, %c5_i32_279 : i32
    %1063 = arith.index_cast %1062 : i32 to index
    %c0_296 = arith.constant 0 : index
    %c16_297 = arith.constant 16 : index
    %1064 = vector.load %arg30[%1063, %c0_296, %c16_297] : memref<8x8x32xf32, #tpu.memory_space<vmem>>, vector<1x8x16xf32>
    %1065 = vector.shape_cast %1064 : vector<1x8x16xf32> to vector<8x16xf32>
    %1066 = vector.shape_cast %1057 : vector<8x16xf32> to vector<1x8x16xf32>
    tpu.vector_store %arg30[%1063, %c0_296, %c16_297], %1066 {strides = array<i32>} : memref<8x8x32xf32, #tpu.memory_space<vmem>>, vector<1x8x16xf32>,
    %c6_i32_298 = arith.constant 6 : i32
    %1067 = arith.index_cast %c6_i32_298 : i32 to index
    %c0_299 = arith.constant 0 : index
    %c0_300 = arith.constant 0 : index
    %1068 = vector.load %arg29[%1067, %c0_299, %c0_300] : memref<8x8x96xf32, #tpu.memory_space<vmem>>, vector<1x8x96xf32>
    %1069 = vector.shape_cast %1068 : vector<1x8x96xf32> to vector<8x96xf32>
    %c7_i32_301 = arith.constant 7 : i32
    %1070 = arith.subi %c7_i32_301, %c6_i32_298 : i32
    %1071 = arith.index_cast %1070 : i32 to index
    %c0_302 = arith.constant 0 : index
    %c0_303 = arith.constant 0 : index
    %1072 = vector.load %arg29[%1071, %c0_302, %c0_303] : memref<8x8x96xf32, #tpu.memory_space<vmem>>, vector<1x8x96xf32>
    %1073 = vector.shape_cast %1072 : vector<1x8x96xf32> to vector<8x96xf32>
    %cst_304 = arith.constant dense<0.000000e+00> : vector<8x48xf32>
    %1074 = tpu.matmul %1031, %618, %cst_304 {dimension_numbers = #tpu.dot_dimension_numbers<[1], [0], [0], [1], [0, 0, 1, 1], [], []>} : vector<8x16xf32>, vector<16x48xf32>, vector<8x48xf32> -> vector<8x48xf32>
    %1075 = vector.broadcast %620 : vector<1x48xf32> to vector<8x48xf32>
    %1076 = arith.addf %1074, %1075 : vector<8x48xf32>
    %cst_305 = arith.constant dense<0.000000e+00> : vector<8x48xf32>
    %1077 = tpu.matmul %1057, %619, %cst_305 {dimension_numbers = #tpu.dot_dimension_numbers<[1], [0], [0], [1], [0, 0, 1, 1], [], []>} : vector<8x16xf32>, vector<16x48xf32>, vector<8x48xf32> -> vector<8x48xf32>
    %1078 = vector.broadcast %621 : vector<1x48xf32> to vector<8x48xf32>
    %1079 = arith.addf %1077, %1078 : vector<8x48xf32>
    %1080 = vector.extract_strided_slice %1069 {offsets = [0, 0], sizes = [8, 16], strides = [1, 1]} : vector<8x96xf32> to vector<8x16xf32>
    %1081 = vector.extract_strided_slice %1076 {offsets = [0, 0], sizes = [8, 16], strides = [1, 1]} : vector<8x48xf32> to vector<8x16xf32>
    %1082 = arith.addf %1080, %1081 : vector<8x16xf32>
    %1083 = arith.negf %1082 : vector<8x16xf32>
    %1084 = math.exp %1083 : vector<8x16xf32>
    %cst_306 = arith.constant 1.000000e+00 : f32
    %1085 = vector.broadcast %cst_306 : f32 to vector<8x16xf32>
    %1086 = arith.addf %1085, %1084 : vector<8x16xf32>
    %1087 = arith.divf %1085, %1086 : vector<8x16xf32>
    %1088 = vector.extract_strided_slice %1069 {offsets = [0, 16], sizes = [8, 16], strides = [1, 1]} : vector<8x96xf32> to vector<8x16xf32>
    %1089 = vector.extract_strided_slice %1076 {offsets = [0, 16], sizes = [8, 16], strides = [1, 1]} : vector<8x48xf32> to vector<8x16xf32>
    %1090 = arith.addf %1088, %1089 : vector<8x16xf32>
    %1091 = arith.negf %1090 : vector<8x16xf32>
    %1092 = math.exp %1091 : vector<8x16xf32>
    %cst_307 = arith.constant 1.000000e+00 : f32
    %1093 = vector.broadcast %cst_307 : f32 to vector<8x16xf32>
    %1094 = arith.addf %1093, %1092 : vector<8x16xf32>
    %1095 = arith.divf %1093, %1094 : vector<8x16xf32>
    %1096 = vector.extract_strided_slice %1069 {offsets = [0, 32], sizes = [8, 16], strides = [1, 1]} : vector<8x96xf32> to vector<8x16xf32>
    %1097 = vector.extract_strided_slice %1076 {offsets = [0, 32], sizes = [8, 16], strides = [1, 1]} : vector<8x48xf32> to vector<8x16xf32>
    %1098 = arith.mulf %1087, %1097 : vector<8x16xf32>
    %1099 = arith.addf %1096, %1098 : vector<8x16xf32>
    %1100 = math.tanh %1099 : vector<8x16xf32>
    %cst_308 = arith.constant 1.000000e+00 : f32
    %1101 = vector.broadcast %cst_308 : f32 to vector<8x16xf32>
    %1102 = arith.subf %1101, %1095 : vector<8x16xf32>
    %1103 = arith.mulf %1102, %1100 : vector<8x16xf32>
    %1104 = arith.mulf %1095, %1031 : vector<8x16xf32>
    %1105 = arith.addf %1103, %1104 : vector<8x16xf32>
    %1106 = vector.extract_strided_slice %1073 {offsets = [0, 48], sizes = [8, 16], strides = [1, 1]} : vector<8x96xf32> to vector<8x16xf32>
    %1107 = vector.extract_strided_slice %1079 {offsets = [0, 0], sizes = [8, 16], strides = [1, 1]} : vector<8x48xf32> to vector<8x16xf32>
    %1108 = arith.addf %1106, %1107 : vector<8x16xf32>
    %1109 = arith.negf %1108 : vector<8x16xf32>
    %1110 = math.exp %1109 : vector<8x16xf32>
    %cst_309 = arith.constant 1.000000e+00 : f32
    %1111 = vector.broadcast %cst_309 : f32 to vector<8x16xf32>
    %1112 = arith.addf %1111, %1110 : vector<8x16xf32>
    %1113 = arith.divf %1111, %1112 : vector<8x16xf32>
    %1114 = vector.extract_strided_slice %1073 {offsets = [0, 64], sizes = [8, 16], strides = [1, 1]} : vector<8x96xf32> to vector<8x16xf32>
    %1115 = vector.extract_strided_slice %1079 {offsets = [0, 16], sizes = [8, 16], strides = [1, 1]} : vector<8x48xf32> to vector<8x16xf32>
    %1116 = arith.addf %1114, %1115 : vector<8x16xf32>
    %1117 = arith.negf %1116 : vector<8x16xf32>
    %1118 = math.exp %1117 : vector<8x16xf32>
    %cst_310 = arith.constant 1.000000e+00 : f32
    %1119 = vector.broadcast %cst_310 : f32 to vector<8x16xf32>
    %1120 = arith.addf %1119, %1118 : vector<8x16xf32>
    %1121 = arith.divf %1119, %1120 : vector<8x16xf32>
    %1122 = vector.extract_strided_slice %1073 {offsets = [0, 80], sizes = [8, 16], strides = [1, 1]} : vector<8x96xf32> to vector<8x16xf32>
    %1123 = vector.extract_strided_slice %1079 {offsets = [0, 32], sizes = [8, 16], strides = [1, 1]} : vector<8x48xf32> to vector<8x16xf32>
    %1124 = arith.mulf %1113, %1123 : vector<8x16xf32>
    %1125 = arith.addf %1122, %1124 : vector<8x16xf32>
    %1126 = math.tanh %1125 : vector<8x16xf32>
    %cst_311 = arith.constant 1.000000e+00 : f32
    %1127 = vector.broadcast %cst_311 : f32 to vector<8x16xf32>
    %1128 = arith.subf %1127, %1121 : vector<8x16xf32>
    %1129 = arith.mulf %1128, %1126 : vector<8x16xf32>
    %1130 = arith.mulf %1121, %1057 : vector<8x16xf32>
    %1131 = arith.addf %1129, %1130 : vector<8x16xf32>
    %1132 = arith.index_cast %c6_i32_298 : i32 to index
    %c0_312 = arith.constant 0 : index
    %c0_313 = arith.constant 0 : index
    %1133 = vector.load %arg30[%1132, %c0_312, %c0_313] : memref<8x8x32xf32, #tpu.memory_space<vmem>>, vector<1x8x16xf32>
    %1134 = vector.shape_cast %1133 : vector<1x8x16xf32> to vector<8x16xf32>
    %1135 = vector.shape_cast %1105 : vector<8x16xf32> to vector<1x8x16xf32>
    tpu.vector_store %arg30[%1132, %c0_312, %c0_313], %1135 {strides = array<i32>} : memref<8x8x32xf32, #tpu.memory_space<vmem>>, vector<1x8x16xf32>,
    %c7_i32_314 = arith.constant 7 : i32
    %1136 = arith.subi %c7_i32_314, %c6_i32_298 : i32
    %1137 = arith.index_cast %1136 : i32 to index
    %c0_315 = arith.constant 0 : index
    %c16_316 = arith.constant 16 : index
    %1138 = vector.load %arg30[%1137, %c0_315, %c16_316] : memref<8x8x32xf32, #tpu.memory_space<vmem>>, vector<1x8x16xf32>
    %1139 = vector.shape_cast %1138 : vector<1x8x16xf32> to vector<8x16xf32>
    %1140 = vector.shape_cast %1131 : vector<8x16xf32> to vector<1x8x16xf32>
    tpu.vector_store %arg30[%1137, %c0_315, %c16_316], %1140 {strides = array<i32>} : memref<8x8x32xf32, #tpu.memory_space<vmem>>, vector<1x8x16xf32>,
    %c7_i32_317 = arith.constant 7 : i32
    %1141 = arith.index_cast %c7_i32_317 : i32 to index
    %c0_318 = arith.constant 0 : index
    %c0_319 = arith.constant 0 : index
    %1142 = vector.load %arg29[%1141, %c0_318, %c0_319] : memref<8x8x96xf32, #tpu.memory_space<vmem>>, vector<1x8x96xf32>
    %1143 = vector.shape_cast %1142 : vector<1x8x96xf32> to vector<8x96xf32>
    %c7_i32_320 = arith.constant 7 : i32
    %1144 = arith.subi %c7_i32_320, %c7_i32_317 : i32
    %1145 = arith.index_cast %1144 : i32 to index
    %c0_321 = arith.constant 0 : index
    %c0_322 = arith.constant 0 : index
    %1146 = vector.load %arg29[%1145, %c0_321, %c0_322] : memref<8x8x96xf32, #tpu.memory_space<vmem>>, vector<1x8x96xf32>
    %1147 = vector.shape_cast %1146 : vector<1x8x96xf32> to vector<8x96xf32>
    %cst_323 = arith.constant dense<0.000000e+00> : vector<8x48xf32>
    %1148 = tpu.matmul %1105, %618, %cst_323 {dimension_numbers = #tpu.dot_dimension_numbers<[1], [0], [0], [1], [0, 0, 1, 1], [], []>} : vector<8x16xf32>, vector<16x48xf32>, vector<8x48xf32> -> vector<8x48xf32>
    %1149 = vector.broadcast %620 : vector<1x48xf32> to vector<8x48xf32>
    %1150 = arith.addf %1148, %1149 : vector<8x48xf32>
    %cst_324 = arith.constant dense<0.000000e+00> : vector<8x48xf32>
    %1151 = tpu.matmul %1131, %619, %cst_324 {dimension_numbers = #tpu.dot_dimension_numbers<[1], [0], [0], [1], [0, 0, 1, 1], [], []>} : vector<8x16xf32>, vector<16x48xf32>, vector<8x48xf32> -> vector<8x48xf32>
    %1152 = vector.broadcast %621 : vector<1x48xf32> to vector<8x48xf32>
    %1153 = arith.addf %1151, %1152 : vector<8x48xf32>
    %1154 = vector.extract_strided_slice %1143 {offsets = [0, 0], sizes = [8, 16], strides = [1, 1]} : vector<8x96xf32> to vector<8x16xf32>
    %1155 = vector.extract_strided_slice %1150 {offsets = [0, 0], sizes = [8, 16], strides = [1, 1]} : vector<8x48xf32> to vector<8x16xf32>
    %1156 = arith.addf %1154, %1155 : vector<8x16xf32>
    %1157 = arith.negf %1156 : vector<8x16xf32>
    %1158 = math.exp %1157 : vector<8x16xf32>
    %cst_325 = arith.constant 1.000000e+00 : f32
    %1159 = vector.broadcast %cst_325 : f32 to vector<8x16xf32>
    %1160 = arith.addf %1159, %1158 : vector<8x16xf32>
    %1161 = arith.divf %1159, %1160 : vector<8x16xf32>
    %1162 = vector.extract_strided_slice %1143 {offsets = [0, 16], sizes = [8, 16], strides = [1, 1]} : vector<8x96xf32> to vector<8x16xf32>
    %1163 = vector.extract_strided_slice %1150 {offsets = [0, 16], sizes = [8, 16], strides = [1, 1]} : vector<8x48xf32> to vector<8x16xf32>
    %1164 = arith.addf %1162, %1163 : vector<8x16xf32>
    %1165 = arith.negf %1164 : vector<8x16xf32>
    %1166 = math.exp %1165 : vector<8x16xf32>
    %cst_326 = arith.constant 1.000000e+00 : f32
    %1167 = vector.broadcast %cst_326 : f32 to vector<8x16xf32>
    %1168 = arith.addf %1167, %1166 : vector<8x16xf32>
    %1169 = arith.divf %1167, %1168 : vector<8x16xf32>
    %1170 = vector.extract_strided_slice %1143 {offsets = [0, 32], sizes = [8, 16], strides = [1, 1]} : vector<8x96xf32> to vector<8x16xf32>
    %1171 = vector.extract_strided_slice %1150 {offsets = [0, 32], sizes = [8, 16], strides = [1, 1]} : vector<8x48xf32> to vector<8x16xf32>
    %1172 = arith.mulf %1161, %1171 : vector<8x16xf32>
    %1173 = arith.addf %1170, %1172 : vector<8x16xf32>
    %1174 = math.tanh %1173 : vector<8x16xf32>
    %cst_327 = arith.constant 1.000000e+00 : f32
    %1175 = vector.broadcast %cst_327 : f32 to vector<8x16xf32>
    %1176 = arith.subf %1175, %1169 : vector<8x16xf32>
    %1177 = arith.mulf %1176, %1174 : vector<8x16xf32>
    %1178 = arith.mulf %1169, %1105 : vector<8x16xf32>
    %1179 = arith.addf %1177, %1178 : vector<8x16xf32>
    %1180 = vector.extract_strided_slice %1147 {offsets = [0, 48], sizes = [8, 16], strides = [1, 1]} : vector<8x96xf32> to vector<8x16xf32>
    %1181 = vector.extract_strided_slice %1153 {offsets = [0, 0], sizes = [8, 16], strides = [1, 1]} : vector<8x48xf32> to vector<8x16xf32>
    %1182 = arith.addf %1180, %1181 : vector<8x16xf32>
    %1183 = arith.negf %1182 : vector<8x16xf32>
    %1184 = math.exp %1183 : vector<8x16xf32>
    %cst_328 = arith.constant 1.000000e+00 : f32
    %1185 = vector.broadcast %cst_328 : f32 to vector<8x16xf32>
    %1186 = arith.addf %1185, %1184 : vector<8x16xf32>
    %1187 = arith.divf %1185, %1186 : vector<8x16xf32>
    %1188 = vector.extract_strided_slice %1147 {offsets = [0, 64], sizes = [8, 16], strides = [1, 1]} : vector<8x96xf32> to vector<8x16xf32>
    %1189 = vector.extract_strided_slice %1153 {offsets = [0, 16], sizes = [8, 16], strides = [1, 1]} : vector<8x48xf32> to vector<8x16xf32>
    %1190 = arith.addf %1188, %1189 : vector<8x16xf32>
    %1191 = arith.negf %1190 : vector<8x16xf32>
    %1192 = math.exp %1191 : vector<8x16xf32>
    %cst_329 = arith.constant 1.000000e+00 : f32
    %1193 = vector.broadcast %cst_329 : f32 to vector<8x16xf32>
    %1194 = arith.addf %1193, %1192 : vector<8x16xf32>
    %1195 = arith.divf %1193, %1194 : vector<8x16xf32>
    %1196 = vector.extract_strided_slice %1147 {offsets = [0, 80], sizes = [8, 16], strides = [1, 1]} : vector<8x96xf32> to vector<8x16xf32>
    %1197 = vector.extract_strided_slice %1153 {offsets = [0, 32], sizes = [8, 16], strides = [1, 1]} : vector<8x48xf32> to vector<8x16xf32>
    %1198 = arith.mulf %1187, %1197 : vector<8x16xf32>
    %1199 = arith.addf %1196, %1198 : vector<8x16xf32>
    %1200 = math.tanh %1199 : vector<8x16xf32>
    %cst_330 = arith.constant 1.000000e+00 : f32
    %1201 = vector.broadcast %cst_330 : f32 to vector<8x16xf32>
    %1202 = arith.subf %1201, %1195 : vector<8x16xf32>
    %1203 = arith.mulf %1202, %1200 : vector<8x16xf32>
    %1204 = arith.mulf %1195, %1131 : vector<8x16xf32>
    %1205 = arith.addf %1203, %1204 : vector<8x16xf32>
    %1206 = arith.index_cast %c7_i32_317 : i32 to index
    %c0_331 = arith.constant 0 : index
    %c0_332 = arith.constant 0 : index
    %1207 = vector.load %arg30[%1206, %c0_331, %c0_332] : memref<8x8x32xf32, #tpu.memory_space<vmem>>, vector<1x8x16xf32>
    %1208 = vector.shape_cast %1207 : vector<1x8x16xf32> to vector<8x16xf32>
    %1209 = vector.shape_cast %1179 : vector<8x16xf32> to vector<1x8x16xf32>
    tpu.vector_store %arg30[%1206, %c0_331, %c0_332], %1209 {strides = array<i32>} : memref<8x8x32xf32, #tpu.memory_space<vmem>>, vector<1x8x16xf32>,
    %c7_i32_333 = arith.constant 7 : i32
    %1210 = arith.subi %c7_i32_333, %c7_i32_317 : i32
    %1211 = arith.index_cast %1210 : i32 to index
    %c0_334 = arith.constant 0 : index
    %c16_335 = arith.constant 16 : index
    %1212 = vector.load %arg30[%1211, %c0_334, %c16_335] : memref<8x8x32xf32, #tpu.memory_space<vmem>>, vector<1x8x16xf32>
    %1213 = vector.shape_cast %1212 : vector<1x8x16xf32> to vector<8x16xf32>
    %1214 = vector.shape_cast %1205 : vector<8x16xf32> to vector<1x8x16xf32>
    tpu.vector_store %arg30[%1211, %c0_334, %c16_335], %1214 {strides = array<i32>} : memref<8x8x32xf32, #tpu.memory_space<vmem>>, vector<1x8x16xf32>,
    %c8_i32_336 = arith.constant 8 : i32
    %c0_337 = arith.constant 0 : index
    %c0_338 = arith.constant 0 : index
    %c0_339 = arith.constant 0 : index
    %1215 = vector.load %arg30[%c0_337, %c0_338, %c0_339] : memref<8x8x32xf32, #tpu.memory_space<vmem>>, vector<8x8x32xf32>
    %c0_340 = arith.constant 0 : index
    %c0_341 = arith.constant 0 : index
    %c0_342 = arith.constant 0 : index
    %1216 = vector.load %arg27[%c0_340, %c0_341, %c0_342] : memref<8x8x32xf32, #tpu.memory_space<vmem>>, vector<8x8x32xf32>
    tpu.vector_store %arg27[%c0_340, %c0_341, %c0_342], %1215 {strides = array<i32>} : memref<8x8x32xf32, #tpu.memory_space<vmem>>, vector<8x8x32xf32>,
    %1217 = vector.broadcast %0 : vector<8x8x1xf32> to vector<8x8x32xf32>
    %1218 = arith.mulf %1215, %1217 : vector<8x8x32xf32>
    %cst_343 = arith.constant dense<0.000000e+00> : vector<8x32xf32>
    %1219 = vector.multi_reduction <add>, %1218, %cst_343 [0] : vector<8x8x32xf32> to vector<8x32xf32>
    %cst_344 = arith.constant dense<0.000000e+00> : vector<8x1xf32>
    %1220 = vector.multi_reduction <add>, %0, %cst_344 [0] : vector<8x8x1xf32> to vector<8x1xf32>
    %cst_345 = arith.constant 1.000000e-10 : f32
    %1221 = vector.broadcast %cst_345 : f32 to vector<8x1xf32>
    %1222 = arith.maximumf %1220, %1221 : vector<8x1xf32>
    %1223 = vector.broadcast %1222 : vector<8x1xf32> to vector<8x32xf32>
    %1224 = arith.divf %1219, %1223 : vector<8x32xf32>
    %c0_346 = arith.constant 0 : index
    %c0_347 = arith.constant 0 : index
    %1225 = vector.load %arg28[%c0_346, %c0_347] : memref<8x32xf32, #tpu.memory_space<vmem>>, vector<8x32xf32>
    tpu.vector_store %arg28[%c0_346, %c0_347], %1224 {strides = array<i32>} : memref<8x32xf32, #tpu.memory_space<vmem>>, vector<8x32xf32>,
    %c0_348 = arith.constant 0 : index
    %c0_349 = arith.constant 0 : index
    %1226 = vector.load %arg15[%c0_348, %c0_349] : memref<32x32xf32, #tpu.memory_space<vmem>>, vector<32x32xf32>
    %cst_350 = arith.constant dense<0.000000e+00> : vector<8x32xf32>
    %1227 = tpu.matmul %1224, %1226, %cst_350 {dimension_numbers = #tpu.dot_dimension_numbers<[1], [0], [0], [1], [0, 0, 1, 1], [], []>} : vector<8x32xf32>, vector<32x32xf32>, vector<8x32xf32> -> vector<8x32xf32>
    %c0_351 = arith.constant 0 : index
    %c0_352 = arith.constant 0 : index
    %1228 = vector.load %arg16[%c0_351, %c0_352] : memref<1x32xf32, #tpu.memory_space<vmem>>, vector<1x32xf32>
    %1229 = vector.broadcast %1228 : vector<1x32xf32> to vector<8x32xf32>
    %1230 = arith.addf %1227, %1229 : vector<8x32xf32>
    %1231 = vector.shape_cast %1215 : vector<8x8x32xf32> to vector<64x32xf32>
    %1232 = arith.truncf %1231 : vector<64x32xf32> to vector<64x32xbf16>
    %c0_353 = arith.constant 0 : index
    %c0_354 = arith.constant 0 : index
    %1233 = vector.load %arg17[%c0_353, %c0_354] : memref<32x64xbf16, #tpu.memory_space<vmem>>, vector<32x64xbf16>
    %cst_355 = arith.constant dense<0.000000e+00> : vector<64x64xf32>
    %1234 = tpu.matmul %1232, %1233, %cst_355 {dimension_numbers = #tpu.dot_dimension_numbers<[1], [0], [0], [1], [0, 0, 1, 1], [], []>} : vector<64x32xbf16>, vector<32x64xbf16>, vector<64x64xf32> -> vector<64x64xf32>
    %c0_356 = arith.constant 0 : index
    %c0_357 = arith.constant 0 : index
    %1235 = vector.load %arg18[%c0_356, %c0_357] : memref<1x64xf32, #tpu.memory_space<vmem>>, vector<1x64xf32>
    %1236 = vector.broadcast %1235 : vector<1x64xf32> to vector<64x64xf32>
    %1237 = arith.addf %1234, %1236 : vector<64x64xf32>
    %1238 = vector.shape_cast %1237 : vector<64x64xf32> to vector<8x8x64xf32>
    %1239 = vector.extract_strided_slice %1238 {offsets = [0, 0, 0], sizes = [8, 8, 32], strides = [1, 1, 1]} : vector<8x8x64xf32> to vector<8x8x32xf32>
    %1240 = vector.extract_strided_slice %1238 {offsets = [0, 0, 32], sizes = [8, 8, 32], strides = [1, 1, 1]} : vector<8x8x64xf32> to vector<8x8x32xf32>
    %1241 = vector.shape_cast %1230 : vector<8x32xf32> to vector<1x8x32xf32>
    %1242 = vector.broadcast %1241 : vector<1x8x32xf32> to vector<8x8x32xf32>
    %1243 = arith.mulf %1239, %1242 : vector<8x8x32xf32>
    %cst_358 = arith.constant dense<0.000000e+00> : vector<8x8xf32>
    %1244 = vector.multi_reduction <add>, %1243, %cst_358 [2] : vector<8x8x32xf32> to vector<8x8xf32>
    %1245 = vector.shape_cast %1244 : vector<8x8xf32> to vector<8x8x1xf32>
    %cst_359 = arith.constant dense<0xFF800000> : vector<8x1xf32>
    %1246 = vector.multi_reduction <maximumf>, %1245, %cst_359 [0] : vector<8x8x1xf32> to vector<8x1xf32>
    %1247 = vector.shape_cast %1246 : vector<8x1xf32> to vector<1x8x1xf32>
    %1248 = vector.broadcast %1247 : vector<1x8x1xf32> to vector<8x8x1xf32>
    %1249 = arith.subf %1245, %1248 : vector<8x8x1xf32>
    %1250 = math.exp %1249 : vector<8x8x1xf32>
    %cst_360 = arith.constant dense<0.000000e+00> : vector<8x1xf32>
    %1251 = vector.multi_reduction <add>, %1250, %cst_360 [0] : vector<8x8x1xf32> to vector<8x1xf32>
    %1252 = vector.shape_cast %1251 : vector<8x1xf32> to vector<1x8x1xf32>
    %1253 = vector.broadcast %1252 : vector<1x8x1xf32> to vector<8x8x1xf32>
    %1254 = arith.divf %1250, %1253 : vector<8x8x1xf32>
    %1255 = vector.broadcast %1254 : vector<8x8x1xf32> to vector<8x8x32xf32>
    %1256 = arith.mulf %1255, %1240 : vector<8x8x32xf32>
    %cst_361 = arith.constant dense<0.000000e+00> : vector<8x32xf32>
    %1257 = vector.multi_reduction <add>, %1256, %cst_361 [0] : vector<8x8x32xf32> to vector<8x32xf32>
    %c0_362 = arith.constant 0 : index
    %c0_363 = arith.constant 0 : index
    %1258 = vector.load %arg19[%c0_362, %c0_363] : memref<32x96xbf16, #tpu.memory_space<vmem>>, vector<32x96xbf16>
    %cst_364 = arith.constant dense<0.000000e+00> : vector<64x96xf32>
    %1259 = tpu.matmul %1232, %1258, %cst_364 {dimension_numbers = #tpu.dot_dimension_numbers<[1], [0], [0], [1], [0, 0, 1, 1], [], []>} : vector<64x32xbf16>, vector<32x96xbf16>, vector<64x96xf32> -> vector<64x96xf32>
    %1260 = vector.shape_cast %1259 : vector<64x96xf32> to vector<8x8x96xf32>
    %c0_365 = arith.constant 0 : index
    %c0_366 = arith.constant 0 : index
    %1261 = vector.load %arg20[%c0_365, %c0_366] : memref<32x32xf32, #tpu.memory_space<vmem>>, vector<32x32xf32>
    %cst_367 = arith.constant dense<0.000000e+00> : vector<8x32xf32>
    %1262 = tpu.matmul %1257, %1261, %cst_367 {dimension_numbers = #tpu.dot_dimension_numbers<[1], [0], [0], [1], [0, 0, 1, 1], [], []>} : vector<8x32xf32>, vector<32x32xf32>, vector<8x32xf32> -> vector<8x32xf32>
    %c0_368 = arith.constant 0 : index
    %c0_369 = arith.constant 0 : index
    %1263 = vector.load %arg21[%c0_368, %c0_369] : memref<32x32xf32, #tpu.memory_space<vmem>>, vector<32x32xf32>
    %cst_370 = arith.constant dense<0.000000e+00> : vector<8x32xf32>
    %1264 = tpu.matmul %1257, %1263, %cst_370 {dimension_numbers = #tpu.dot_dimension_numbers<[1], [0], [0], [1], [0, 0, 1, 1], [], []>} : vector<8x32xf32>, vector<32x32xf32>, vector<8x32xf32> -> vector<8x32xf32>
    %c0_371 = arith.constant 0 : index
    %c0_372 = arith.constant 0 : index
    %1265 = vector.load %arg22[%c0_371, %c0_372] : memref<32x32xf32, #tpu.memory_space<vmem>>, vector<32x32xf32>
    %cst_373 = arith.constant dense<0.000000e+00> : vector<8x32xf32>
    %1266 = tpu.matmul %1257, %1265, %cst_373 {dimension_numbers = #tpu.dot_dimension_numbers<[1], [0], [0], [1], [0, 0, 1, 1], [], []>} : vector<8x32xf32>, vector<32x32xf32>, vector<8x32xf32> -> vector<8x32xf32>
    %1267 = vector.extract_strided_slice %1260 {offsets = [0, 0, 32], sizes = [8, 8, 32], strides = [1, 1, 1]} : vector<8x8x96xf32> to vector<8x8x32xf32>
    %c0_374 = arith.constant 0 : index
    %c0_375 = arith.constant 0 : index
    %1268 = vector.load %arg23[%c0_374, %c0_375] : memref<1x32xf32, #tpu.memory_space<vmem>>, vector<1x32xf32>
    %1269 = vector.broadcast %1268 : vector<1x32xf32> to vector<8x32xf32>
    %1270 = arith.addf %1262, %1269 : vector<8x32xf32>
    %1271 = vector.shape_cast %1270 : vector<8x32xf32> to vector<1x8x32xf32>
    %1272 = vector.broadcast %1271 : vector<1x8x32xf32> to vector<8x8x32xf32>
    %1273 = arith.addf %1267, %1272 : vector<8x8x32xf32>
    %c0_376 = arith.constant 0 : index
    %c0_377 = arith.constant 0 : index
    %c0_378 = arith.constant 0 : index
    %1274 = vector.load %arg31[%c0_376, %c0_377, %c0_378] : memref<8x8x32xf32, #tpu.memory_space<vmem>>, vector<8x8x32xf32>
    tpu.vector_store %arg31[%c0_376, %c0_377, %c0_378], %1273 {strides = array<i32>} : memref<8x8x32xf32, #tpu.memory_space<vmem>>, vector<8x8x32xf32>,
    %c1 = arith.constant 1 : index
    %c0_379 = arith.constant 0 : index
    %c0_380 = arith.constant 0 : index
    %1275 = vector.load %arg31[%c1, %c0_379, %c0_380] : memref<8x8x32xf32, #tpu.memory_space<vmem>>, vector<7x8x32xf32>
    %1276 = vector.extract_strided_slice %1260 {offsets = [0, 0, 0], sizes = [7, 8, 32], strides = [1, 1, 1]} : vector<8x8x96xf32> to vector<7x8x32xf32>
    %1277 = arith.addf %1275, %1276 : vector<7x8x32xf32>
    %c1_381 = arith.constant 1 : index
    %c0_382 = arith.constant 0 : index
    %c0_383 = arith.constant 0 : index
    %1278 = vector.load %arg31[%c1_381, %c0_382, %c0_383] : memref<8x8x32xf32, #tpu.memory_space<vmem>>, vector<7x8x32xf32>
    tpu.vector_store %arg31[%c1_381, %c0_382, %c0_383], %1277 {strides = array<i32>} : memref<8x8x32xf32, #tpu.memory_space<vmem>>, vector<7x8x32xf32>,
    %c0_384 = arith.constant 0 : index
    %c0_385 = arith.constant 0 : index
    %c0_386 = arith.constant 0 : index
    %1279 = vector.load %arg31[%c0_384, %c0_385, %c0_386] : memref<8x8x32xf32, #tpu.memory_space<vmem>>, vector<7x8x32xf32>
    %1280 = vector.extract_strided_slice %1260 {offsets = [1, 0, 64], sizes = [7, 8, 32], strides = [1, 1, 1]} : vector<8x8x96xf32> to vector<7x8x32xf32>
    %1281 = arith.addf %1279, %1280 : vector<7x8x32xf32>
    %c0_387 = arith.constant 0 : index
    %c0_388 = arith.constant 0 : index
    %c0_389 = arith.constant 0 : index
    %1282 = vector.load %arg31[%c0_387, %c0_388, %c0_389] : memref<8x8x32xf32, #tpu.memory_space<vmem>>, vector<7x8x32xf32>
    tpu.vector_store %arg31[%c0_387, %c0_388, %c0_389], %1281 {strides = array<i32>} : memref<8x8x32xf32, #tpu.memory_space<vmem>>, vector<7x8x32xf32>,
    %c0_390 = arith.constant 0 : index
    %c0_391 = arith.constant 0 : index
    %c0_392 = arith.constant 0 : index
    %1283 = vector.load %arg31[%c0_390, %c0_391, %c0_392] : memref<8x8x32xf32, #tpu.memory_space<vmem>>, vector<1x8x32xf32>
    %1284 = vector.shape_cast %1283 : vector<1x8x32xf32> to vector<8x32xf32>
    %1285 = arith.subf %1284, %1264 : vector<8x32xf32>
    %c0_393 = arith.constant 0 : index
    %c0_394 = arith.constant 0 : index
    %c0_395 = arith.constant 0 : index
    %1286 = vector.load %arg31[%c0_393, %c0_394, %c0_395] : memref<8x8x32xf32, #tpu.memory_space<vmem>>, vector<1x8x32xf32>
    %1287 = vector.shape_cast %1286 : vector<1x8x32xf32> to vector<8x32xf32>
    %1288 = vector.shape_cast %1285 : vector<8x32xf32> to vector<1x8x32xf32>
    tpu.vector_store %arg31[%c0_393, %c0_394, %c0_395], %1288 {strides = array<i32>} : memref<8x8x32xf32, #tpu.memory_space<vmem>>, vector<1x8x32xf32>,
    %c7 = arith.constant 7 : index
    %c0_396 = arith.constant 0 : index
    %c0_397 = arith.constant 0 : index
    %1289 = vector.load %arg31[%c7, %c0_396, %c0_397] : memref<8x8x32xf32, #tpu.memory_space<vmem>>, vector<1x8x32xf32>
    %1290 = vector.shape_cast %1289 : vector<1x8x32xf32> to vector<8x32xf32>
    %1291 = arith.subf %1290, %1266 : vector<8x32xf32>
    %c7_398 = arith.constant 7 : index
    %c0_399 = arith.constant 0 : index
    %c0_400 = arith.constant 0 : index
    %1292 = vector.load %arg31[%c7_398, %c0_399, %c0_400] : memref<8x8x32xf32, #tpu.memory_space<vmem>>, vector<1x8x32xf32>
    %1293 = vector.shape_cast %1292 : vector<1x8x32xf32> to vector<8x32xf32>
    %1294 = vector.shape_cast %1291 : vector<8x32xf32> to vector<1x8x32xf32>
    tpu.vector_store %arg31[%c7_398, %c0_399, %c0_400], %1294 {strides = array<i32>} : memref<8x8x32xf32, #tpu.memory_space<vmem>>, vector<1x8x32xf32>,
    %c0_401 = arith.constant 0 : index
    %c0_402 = arith.constant 0 : index
    %c0_403 = arith.constant 0 : index
    %1295 = vector.load %arg31[%c0_401, %c0_402, %c0_403] : memref<8x8x32xf32, #tpu.memory_space<vmem>>, vector<8x8x32xf32>
    %cst_404 = arith.constant 0.000000e+00 : f32
    %1296 = vector.broadcast %cst_404 : f32 to vector<8x8x32xf32>
    %1297 = arith.maximumf %1295, %1296 : vector<8x8x32xf32>
    %1298 = vector.shape_cast %1297 : vector<8x8x32xf32> to vector<64x32xf32>
    %1299 = arith.truncf %1298 : vector<64x32xf32> to vector<64x32xbf16>
    %c0_405 = arith.constant 0 : index
    %c0_406 = arith.constant 0 : index
    %1300 = vector.load %arg24[%c0_405, %c0_406] : memref<32x2xbf16, #tpu.memory_space<vmem>>, vector<32x2xbf16>
    %cst_407 = arith.constant dense<0.000000e+00> : vector<64x2xf32>
    %1301 = tpu.matmul %1299, %1300, %cst_407 {dimension_numbers = #tpu.dot_dimension_numbers<[1], [0], [0], [1], [0, 0, 1, 1], [], []>} : vector<64x32xbf16>, vector<32x2xbf16>, vector<64x2xf32> -> vector<64x2xf32>
    %c0_408 = arith.constant 0 : index
    %c0_409 = arith.constant 0 : index
    %1302 = vector.load %arg25[%c0_408, %c0_409] : memref<1x2xf32, #tpu.memory_space<vmem>>, vector<1x2xf32>
    %1303 = vector.broadcast %1302 : vector<1x2xf32> to vector<64x2xf32>
    %1304 = arith.addf %1301, %1303 : vector<64x2xf32>
    %1305 = arith.negf %1304 : vector<64x2xf32>
    %1306 = math.exp %1305 : vector<64x2xf32>
    %cst_410 = arith.constant 1.000000e+00 : f32
    %1307 = vector.broadcast %cst_410 : f32 to vector<64x2xf32>
    %1308 = arith.addf %1307, %1306 : vector<64x2xf32>
    %1309 = arith.divf %1307, %1308 : vector<64x2xf32>
    %1310 = vector.shape_cast %1309 : vector<64x2xf32> to vector<8x8x2xf32>
    %c0_411 = arith.constant 0 : index
    %c0_412 = arith.constant 0 : index
    %c0_413 = arith.constant 0 : index
    %1311 = vector.load %arg26[%c0_411, %c0_412, %c0_413] : memref<8x8x2xf32, #tpu.memory_space<vmem>>, vector<8x8x2xf32>
    tpu.vector_store %arg26[%c0_411, %c0_412, %c0_413], %1310 {strides = array<i32>} : memref<8x8x2xf32, #tpu.memory_space<vmem>>, vector<8x8x2xf32>,
    return
  }
  func.func @transform_0(%arg0: i32) -> (i32, i32, i32) {
    %c0_i32 = arith.constant 0 : i32
    %c0_i32_0 = arith.constant 0 : i32
    %c0_i32_1 = arith.constant 0 : i32
    return %c0_i32, %arg0, %c0_i32_0 : i32, i32, i32
  }
  func.func @transform_1(%arg0: i32) -> (i32, i32, i32) {
    %c0_i32 = arith.constant 0 : i32
    %c0_i32_0 = arith.constant 0 : i32
    %c0_i32_1 = arith.constant 0 : i32
    return %c0_i32, %arg0, %c0_i32_0 : i32, i32, i32
  }
  func.func @transform_2(%arg0: i32) -> (i32, i32) {
    %c0_i32 = arith.constant 0 : i32
    %c0_i32_0 = arith.constant 0 : i32
    %c0_i32_1 = arith.constant 0 : i32
    return %c0_i32, %c0_i32_0 : i32, i32
  }
  func.func @transform_3(%arg0: i32) -> (i32, i32) {
    %c0_i32 = arith.constant 0 : i32
    %c0_i32_0 = arith.constant 0 : i32
    %c0_i32_1 = arith.constant 0 : i32
    return %c0_i32, %c0_i32_0 : i32, i32
  }
  func.func @transform_4(%arg0: i32) -> (i32, i32) {
    %c0_i32 = arith.constant 0 : i32
    %c0_i32_0 = arith.constant 0 : i32
    %c0_i32_1 = arith.constant 0 : i32
    return %c0_i32, %c0_i32_0 : i32, i32
  }
  func.func @transform_5(%arg0: i32) -> (i32, i32) {
    %c0_i32 = arith.constant 0 : i32
    %c0_i32_0 = arith.constant 0 : i32
    %c0_i32_1 = arith.constant 0 : i32
    return %c0_i32, %c0_i32_0 : i32, i32
  }
  func.func @transform_6(%arg0: i32) -> (i32, i32) {
    %c0_i32 = arith.constant 0 : i32
    %c0_i32_0 = arith.constant 0 : i32
    %c0_i32_1 = arith.constant 0 : i32
    return %c0_i32, %c0_i32_0 : i32, i32
  }
  func.func @transform_7(%arg0: i32) -> (i32, i32) {
    %c0_i32 = arith.constant 0 : i32
    %c0_i32_0 = arith.constant 0 : i32
    %c0_i32_1 = arith.constant 0 : i32
    return %c0_i32, %c0_i32_0 : i32, i32
  }
  func.func @transform_8(%arg0: i32) -> (i32, i32) {
    %c0_i32 = arith.constant 0 : i32
    %c0_i32_0 = arith.constant 0 : i32
    %c0_i32_1 = arith.constant 0 : i32
    return %c0_i32, %c0_i32_0 : i32, i32
  }
  func.func @transform_9(%arg0: i32) -> (i32, i32) {
    %c0_i32 = arith.constant 0 : i32
    %c0_i32_0 = arith.constant 0 : i32
    %c0_i32_1 = arith.constant 0 : i32
    return %c0_i32, %c0_i32_0 : i32, i32
  }
  func.func @transform_10(%arg0: i32) -> (i32, i32) {
    %c0_i32 = arith.constant 0 : i32
    %c0_i32_0 = arith.constant 0 : i32
    %c0_i32_1 = arith.constant 0 : i32
    return %c0_i32, %c0_i32_0 : i32, i32
  }
  func.func @transform_11(%arg0: i32) -> (i32, i32) {
    %c0_i32 = arith.constant 0 : i32
    %c0_i32_0 = arith.constant 0 : i32
    %c0_i32_1 = arith.constant 0 : i32
    return %c0_i32, %c0_i32_0 : i32, i32
  }
  func.func @transform_12(%arg0: i32) -> (i32, i32) {
    %c0_i32 = arith.constant 0 : i32
    %c0_i32_0 = arith.constant 0 : i32
    %c0_i32_1 = arith.constant 0 : i32
    return %c0_i32, %c0_i32_0 : i32, i32
  }
  func.func @transform_13(%arg0: i32) -> (i32, i32) {
    %c0_i32 = arith.constant 0 : i32
    %c0_i32_0 = arith.constant 0 : i32
    %c0_i32_1 = arith.constant 0 : i32
    return %c0_i32, %c0_i32_0 : i32, i32
  }
  func.func @transform_14(%arg0: i32) -> (i32, i32) {
    %c0_i32 = arith.constant 0 : i32
    %c0_i32_0 = arith.constant 0 : i32
    %c0_i32_1 = arith.constant 0 : i32
    return %c0_i32, %c0_i32_0 : i32, i32
  }
  func.func @transform_15(%arg0: i32) -> (i32, i32) {
    %c0_i32 = arith.constant 0 : i32
    %c0_i32_0 = arith.constant 0 : i32
    %c0_i32_1 = arith.constant 0 : i32
    return %c0_i32, %c0_i32_0 : i32, i32
  }
  func.func @transform_16(%arg0: i32) -> (i32, i32) {
    %c0_i32 = arith.constant 0 : i32
    %c0_i32_0 = arith.constant 0 : i32
    %c0_i32_1 = arith.constant 0 : i32
    return %c0_i32, %c0_i32_0 : i32, i32
  }
  func.func @transform_17(%arg0: i32) -> (i32, i32) {
    %c0_i32 = arith.constant 0 : i32
    %c0_i32_0 = arith.constant 0 : i32
    %c0_i32_1 = arith.constant 0 : i32
    return %c0_i32, %c0_i32_0 : i32, i32
  }
  func.func @transform_18(%arg0: i32) -> (i32, i32) {
    %c0_i32 = arith.constant 0 : i32
    %c0_i32_0 = arith.constant 0 : i32
    %c0_i32_1 = arith.constant 0 : i32
    return %c0_i32, %c0_i32_0 : i32, i32
  }
  func.func @transform_19(%arg0: i32) -> (i32, i32) {
    %c0_i32 = arith.constant 0 : i32
    %c0_i32_0 = arith.constant 0 : i32
    %c0_i32_1 = arith.constant 0 : i32
    return %c0_i32, %c0_i32_0 : i32, i32
  }
  func.func @transform_20(%arg0: i32) -> (i32, i32) {
    %c0_i32 = arith.constant 0 : i32
    %c0_i32_0 = arith.constant 0 : i32
    %c0_i32_1 = arith.constant 0 : i32
    return %c0_i32, %c0_i32_0 : i32, i32
  }
  func.func @transform_21(%arg0: i32) -> (i32, i32) {
    %c0_i32 = arith.constant 0 : i32
    %c0_i32_0 = arith.constant 0 : i32
    %c0_i32_1 = arith.constant 0 : i32
    return %c0_i32, %c0_i32_0 : i32, i32
  }
  func.func @transform_22(%arg0: i32) -> (i32, i32) {
    %c0_i32 = arith.constant 0 : i32
    %c0_i32_0 = arith.constant 0 : i32
    %c0_i32_1 = arith.constant 0 : i32
    return %c0_i32, %c0_i32_0 : i32, i32
  }
  func.func @transform_23(%arg0: i32) -> (i32, i32) {
    %c0_i32 = arith.constant 0 : i32
    %c0_i32_0 = arith.constant 0 : i32
    %c0_i32_1 = arith.constant 0 : i32
    return %c0_i32, %c0_i32_0 : i32, i32
  }
  func.func @transform_24(%arg0: i32) -> (i32, i32) {
    %c0_i32 = arith.constant 0 : i32
    %c0_i32_0 = arith.constant 0 : i32
    %c0_i32_1 = arith.constant 0 : i32
    return %c0_i32, %c0_i32_0 : i32, i32
  }
  func.func @transform_25(%arg0: i32) -> (i32, i32, i32) {
    %c0_i32 = arith.constant 0 : i32
    %c0_i32_0 = arith.constant 0 : i32
    %c0_i32_1 = arith.constant 0 : i32
    return %c0_i32, %arg0, %c0_i32_0 : i32, i32, i32
  }
  func.func @transform_26(%arg0: i32) -> (i32, i32, i32) {
    %c0_i32 = arith.constant 0 : i32
    %c0_i32_0 = arith.constant 0 : i32
    %c0_i32_1 = arith.constant 0 : i32
    return %c0_i32, %arg0, %c0_i32_0 : i32, i32, i32
  }
  func.func @transform_27(%arg0: i32) -> (i32, i32) {
    %c0_i32 = arith.constant 0 : i32
    %c0_i32_0 = arith.constant 0 : i32
    return %arg0, %c0_i32 : i32, i32
  }
}

</mosaic_0001>

<bundles_post_ra>
// kernel: s_model_forward.1
= control target key start
LH: loop header
LB: loop body
LE: loop exit
PB: predicated region body
PF: predicated region fallthrough
CT: control target
= control target key end

     0   :  { %vm127_vm0 = vcmask 261120   ;;  %v5791_v19 = vmov 0.0|0.0   ;;  %vm5792_vm1 = vmmov 0   ;;  %v5793_v21 = vmov 0.0   ;;  %s7032_s2 = inlined_call_operand.vmem [shape: bf16[32,96], index: 2, kind: input, shape index: {}]   ;;  %s7033_s0 = inlined_call_operand.vmem [shape: f32[8,8,32], index: 0, kind: input, shape index: {}]   ;;  %s7034_s4 = inlined_call_operand.vmem [shape: f32[16,48], index: 4, kind: input, shape index: {}]   ;;  %s7035_s5 = inlined_call_operand.vmem [shape: f32[16,48], index: 5, kind: input, shape index: {}]   ;;  %s7036_s3 = inlined_call_operand.vmem [shape: f32[1,96], index: 3, kind: input, shape index: {}]   ;;  %s7037_s7 = inlined_call_operand.vmem [shape: f32[1,48], index: 7, kind: input, shape index: {}]   ;;  %s7038_s6 = inlined_call_operand.vmem [shape: f32[1,48], index: 6, kind: input, shape index: {}]   ;;  %s7039_s10 = inlined_call_operand.vmem [shape: f32[16,48], index: 10, kind: input, shape index: {}]   ;;  %s7040_s11 = inlined_call_operand.vmem [shape: f32[16,48], index: 11, kind: input, shape index: {}]   ;;  %s7041_s8 = inlined_call_operand.vmem [shape: bf16[32,96], index: 8, kind: input, shape index: {}]   ;;  %s7042_s12 = inlined_call_operand.vmem [shape: f32[1,48], index: 12, kind: input, shape index: {}]   ;;  %s7043_s13 = inlined_call_operand.vmem [shape: f32[1,48], index: 13, kind: input, shape index: {}]   ;;  %s7044_s9 = inlined_call_operand.vmem [shape: f32[1,96], index: 9, kind: input, shape index: {}]   ;;  %s7045_s1 = inlined_call_operand.vmem [shape: f32[8,8,1], index: 1, kind: input, shape index: {}]   ;;  %s7046_s16 = inlined_call_operand.vmem [shape: bf16[32,64], index: 16, kind: input, shape index: {}]   ;;  %s7047_s14 = inlined_call_operand.vmem [shape: f32[32,32], index: 14, kind: input, shape index: {}]   ;;  %s7048_s26 = inlined_call_operand.vmem [shape: f32[8,8,32], index: 26, kind: output, shape index: {1}]   ;;  %s7049_s18 = inlined_call_operand.vmem [shape: bf16[32,96], index: 18, kind: input, shape index: {}]   ;;  %s7050_s27 = inlined_call_operand.vmem [shape: f32[8,32], index: 27, kind: output, shape index: {2}]   ;;  %s7051_s17 = inlined_call_operand.vmem [shape: f32[1,64], index: 17, kind: input, shape index: {}]   ;;  %s7052_s15 = inlined_call_operand.vmem [shape: f32[1,32], index: 15, kind: input, shape index: {}]   ;;  %s7053_s20 = inlined_call_operand.vmem [shape: f32[32,32], index: 20, kind: input, shape index: {}]   ;;  %s7054_s21 = inlined_call_operand.vmem [shape: f32[32,32], index: 21, kind: input, shape index: {}]   ;;  %s7055_s19 = inlined_call_operand.vmem [shape: f32[32,32], index: 19, kind: input, shape index: {}]   ;;  %s7056_s22 = inlined_call_operand.vmem [shape: f32[1,32], index: 22, kind: input, shape index: {}]   ;;  %s7057_s23 = inlined_call_operand.vmem [shape: bf16[32,2], index: 23, kind: input, shape index: {}]   ;;  %s7058_s24 = inlined_call_operand.vmem [shape: f32[1,2], index: 24, kind: input, shape index: {}]   ;;  %s7059_s25 = inlined_call_operand.vmem [shape: f32[8,8,2], index: 25, kind: output, shape index: {0}]  }
   0x1   :  { %7071 = sst [smem:[#allocation5_spill]] %s7032_s2  ;;  %vm205_vm2 = vcmask 785408   ;;  %vm229_vm3 = vcmask 130048   ;;  %vm444_vm4 = vcmask 261248   ;;  %vm3864_vm5 = vcmask 7168  }
   0x2   :  { %7072 = sst [smem:[#allocation6_spill]] %s7033_s0  ;;  %vm4164_vm6 = vcmask 523520   ;;  %vm4793_vm7 = vcmask 15360  }
   0x3   :  { %7073 = sst [smem:[#allocation7_spill]] %s7034_s4  ;;  %s7084_s0 = sld [smem:[#allocation6_spill]] }
   0x4   :  { %7074 = sst [smem:[#allocation8_spill]] %s7035_s5  ;;  %s7085_s2 = sld [smem:[#allocation7_spill]] }
   0x5   :  { %7075 = sst [smem:[#allocation9_spill]] %s7036_s3  ;;  %s7086_s5 = sld [smem:[#allocation8_spill]] }
   0x6   :  { %7076 = sst [smem:[#allocation10_spill]] %s7037_s7  ;;  %s5795_s3 = smov 16  }
   0x7   :  { %7077 = sst [smem:[#allocation11_spill]] %s7038_s6  ;;  %s7067_s4 = smov 64  }
   0x8   :  { %7078 = sst [smem:[#allocation12_spill]] %s7039_s10  ;;  %s7089_s6 = sld [smem:[#allocation11_spill]] }
   0x9   :  { %7079 = sst [smem:[#allocation13_spill]] %s7040_s11  ;;  %v92_v2 = vld [vmem:[%s7084_s0] sm:$0xff]  ;;  %v93_v3 = vld [vmem:[%s7084_s0 + $0x8] sm:$0xff]  ;;  %v94_v7 = vld [vmem:[%s7084_s0 + $0x10] sm:$0xff]  ;;  %s5798_s10 = smov 112  }
   0xa   :  { %7080 = sst [smem:[#allocation14_spill]] %s7041_s8  ;;  %s7083_s11 = sld [smem:[#allocation5_spill]]  ;;  %v96_v4 = vld [vmem:[%s7084_s0 + $0x20] sm:$0xff]  ;;  %v100_v5 = vpack.c.bf16 %v93_v3, %v92_v2  ;;  %v97_v6 = vld [vmem:[%s7084_s0 + $0x28] sm:$0xff]  ;;  %v95_v8 = vld [vmem:[%s7084_s0 + $0x18] sm:$0xff] }
   0xb   :  { %7081 = sst [smem:[#allocation15_spill]] %s7042_s12  ;;  %v102_v9 = vpack.c.bf16 %v97_v6, %v96_v4  ;;  %v98_v10 = vld [vmem:[%s7084_s0 + $0x30] sm:$0xff]  ;;  %v99_v11 = vld [vmem:[%s7084_s0 + $0x38] sm:$0xff]  ;;  %v214_v12 = vld [vmem:[%s7085_s2] sm:$0xff]  ;;  %v101_v14 = vpack.c.bf16 %v95_v8, %v94_v7  ;;  %s7087_s8 = sld [smem:[#allocation9_spill]] }
   0xc   :  { %7082 = sst [smem:[#allocation16_spill]] %s7043_s13  ;;  %5076 = vmatprep.mubr.msk.bf16.mxu0 %vm127_vm0, %v100_v5  ;;  %v215_v13 = vld [vmem:[%s7085_s2 + $0x8] sm:$0xff]  ;;  %v103_v15 = vpack.c.bf16 %v99_v11, %v98_v10  ;;  %v216_v17 = vld [vmem:[%s7086_s5] sm:$0xff]  ;;  %s7088_s12 = sld [smem:[#allocation10_spill]] }
   0xd   :  { %5080 = vmatprep.mubr.msk.bf16.mxu1 %vm127_vm0, %v102_v9  ;;  %v5980_v16 = vpack.c.bf16 %v215_v13, %v214_v12  ;;  %v217_v18 = vld [vmem:[%s7086_s5 + $0x8] sm:$0xff]  ;;  %s5794_s13 = smov 48   ;;  %s5796_s0 = smov 96  }
   0xe   :  { %v5992_v20 = vpack.c.bf16 %v217_v18, %v216_v17  ;;  %v6032_v45 = vld [vmem:[%s7089_s6] ss:$0 sm:$0xff]  ;;  %s7069_s5 = smov 32   ;;  %s7090_s7 = sld [smem:[#allocation12_spill]] }
   0xf   :  { %s7091_s6 = sld [smem:[#allocation13_spill]]  ;;  %s7092_s30 = sld [smem:[#allocation14_spill]] }
  0x10   :  { %v5537_v0 = vld [vmem:[%s7083_s11] sm:$0xff]   ;;  %v5538_v1 = vld [vmem:[%s7083_s11 + $0x8] sm:$0xff]   ;;  %s5800_s11 = smov 80   ;;  %s7093_s29 = sld [smem:[#allocation15_spill]] }
  0x11   :  { %5072 = vmatprep.subr.bf16.mxu0 %v5537_v0  ;;  %5520 = vmatprep.subr.bf16.mxu1 %v5537_v0  ;;  %v4814_v22 = vld [vmem:[%s7087_s8] ss:$0 sm:$0xff]  ;;  %s7096_s8 = smov 64  }
  0x12   :  { %5073 = vmatpush3.bf16.msra.mxu0 %v5537_v0  ;;  %5522 = vmatpush3.bf16.msra.mxu1 %v5537_v0  ;;  %v6026_v41 = vld [vmem:[%s7088_s12] ss:$0 sm:$0xff] }
  0x13   :  { %5074 = vmatprep.subr.bf16.mxu0 %v5538_v1  ;;  %5521 = vmatprep.subr.bf16.mxu1 %v5538_v1 }
  0x16   :  { %5075 = vmatpush3.bf16.msra.mxu0 %v5538_v1  ;;  %5523 = vmatpush3.bf16.msra.mxu1 %v5538_v1 }
  0x17   :  { %5400 = vmatprep.subr.bf16.mxu1 %v5791_v19  ;;  %5415 = vmatprep.subr.bf16.mxu0 %v5791_v19 }
  0x19   :  { %5077 = vmatmul.mubr.msk.bf16.vlgmr.msra.gmra.mrb[0].mxu0 %vm127_vm0, %v101_v14  ;;  %5081 = vmatmul.mubr.msk.bf16.vlgmr.msra.gmra.mrb[0].mxu1 %vm127_vm0, %v103_v15 }
  0x1a   :  { %5402 = vmatpush3.bf16.msra.mxu1 %v5980_v16  ;;  %5088 = vmatprep.mubr.msk.f32.mxu1 %vm5792_vm1, %v5793_v21 }
  0x1b   :  { %5403 = vmatprep.subr.bf16.mxu1 %v5791_v19  ;;  %5417 = vmatpush3.bf16.msra.mxu0 %v5992_v20 }
  0x1c   :  { %5123 = vmatprep.mubr.msk.f32.mxu0 %vm5792_vm1, %v5793_v21  ;;  %5421 = vmatprep.subr.bf16.mxu0 %v5791_v19 }
  0x21   :  { %5089 = vmatmul.mubr.f32.vlgmr.msra.gmra.mrb[4].mxu1 %v5793_v21 }
  0x22   :  { %5405 = vmatpush3.bf16.msra.mxu1 %v5992_v20  ;;  %5095 = vmatprep.mubr.msk.f32.mxu1 %vm5792_vm1, %v5793_v21 }
  0x23   :  { %5406 = vmatprep.subr.bf16.mxu1 %v5791_v19 }
  0x25   :  { %5096 = vmatmul.mubr.f32.vlgmr.msra.gmra.mrb[6].mxu1 %v5793_v21 }
  0x26   :  { %5408 = vmatpush3.bf16.msra.mxu1 %v5980_v16  ;;  %5102 = vmatprep.mubr.msk.f32.mxu1 %vm5792_vm1, %v5793_v21 }
  0x27   :  { %5409 = vmatprep.subr.bf16.mxu1 %v5791_v19 }
  0xec   :  { %v5078_v23 = vpop.f32.mrb[0].mxu0  ;;  %v5082_v24 = vpop.f32.mrb[0].mxu1 }
  0xed   :  { %v183_v25 = vadd.f32 %v5078_v23, %v4814_v22  ;;  %v199_v26 = vadd.f32 %v5082_v24, %v4814_v22  ;;  %v174_v27 = vpop.f32.mrb[1].mxu0  ;;  %v190_v28 = vpop.f32.mrb[1].mxu1 }
  0xee   :  { %v175_v29 = vadd.f32 %v4814_v22, %v174_v27  ;;  %v191_v30 = vadd.f32 %v4814_v22, %v190_v28  ;;  %v5083_v31 = vpop.f32.mrb[2].mxu1  ;;  %v5079_v32 = vpop.f32.mrb[2].mxu0 }
  0xef   :  { %208 = vst.msk [vmem:[#allocation2 + $0x10] sm:$0xff] %vm205_vm2, %v183_v25  ;;  %212 = vst.msk [vmem:[#allocation2 + $0x30] sm:$0xff] %vm205_vm2, %v199_v26  ;;  %v202_v33 = vadd.f32 %v5083_v31, %v4814_v22  ;;  %v193_v34 = vpop.f32.mrb[3].mxu1  ;;  %v186_v35 = vadd.f32 %v5079_v32, %v4814_v22  ;;  %v177_v36 = vpop.f32.mrb[3].mxu0 }
  0xf0   :  { %206 = vst.msk [vmem:[#allocation2] sm:$0xff] %vm205_vm2, %v175_v29  ;;  %210 = vst.msk [vmem:[#allocation2 + $0x20] sm:$0xff] %vm205_vm2, %v191_v30  ;;  %v194_v37 = vadd.f32 %v4814_v22, %v193_v34  ;;  %v178_v38 = vadd.f32 %v4814_v22, %v177_v36 }
  0xf1   :  { %213 = vst.msk [vmem:[#allocation2 + $0x38] sm:$0xff] %vm205_vm2, %v202_v33  ;;  %209 = vst.msk [vmem:[#allocation2 + $0x18] sm:$0xff] %vm205_vm2, %v186_v35 }
  0xf2   :  { %211 = vst.msk [vmem:[#allocation2 + $0x28] sm:$0xff] %vm205_vm2, %v194_v37  ;;  %207 = vst.msk [vmem:[#allocation2 + $0x8] sm:$0xff] %vm205_vm2, %v178_v38 }
  0xf4   :  { %v299_v39 = vpop.f32.mrb[4].mxu1 }
  0xf5   :  { %v5090_v40 = vpop.f32.mrb[5].mxu1  ;;  %v300_v46 = vadd.f32 %v6032_v45, %v299_v39 }
  0xf6   :  { %v6072_v27 = vld [vmem:[#allocation2 + $0x30] sm:$0xff] }
  0xf7   :  { %v6038_v47 = vld [vmem:[#allocation2] sm:$0xff] }
  0xf8   :  { %v375_v42 = vpop.f32.mrb[6].mxu1  ;;  %v379_v48 = vadd.f32 %v300_v46, %v6038_v47  ;;  %v6041_v52 = vld [vmem:[#allocation2 + $0x38] sm:$0xff] }
  0xf9   :  { %v376_v43 = vadd.f32 %v6026_v41, %v375_v42  ;;  %v5097_v44 = vpop.f32.mrb[7].mxu1  ;;  %v6078_v37 = vld [vmem:[#allocation2 + $0x8] sm:$0xff] }
  0xfa   :  { %v4823_v49 = vmul.f32 -1.442695, %v379_v48 }
  0xfb   :  { %406 = vrot.lane.b32.xlu0 %v376_v43, %s5794_s13  ;;  %416 = vrot.lane.b32.xlu1 %v376_v43, %s5795_s3 }
  0xfc   :  { %5547 = vpow2.f32 %v4823_v49 }
  0xff   :  { %387 = vrot.lane.b32.xlu0 %v300_v46, %s5796_s0 }
 0x106   :  { %v5548_v50 = vpop.eup %5547 }
 0x107   :  { %v383_v51 = vadd.f32 1.0, %v5548_v50 }
 0x109   :  { %5549 = vrcp.f32 %v383_v51 }
 0x113   :  { %v5550_v56 = vpop.eup %5549 }
 0x114   :  { %v397_v6 = vsub.f32 1.0, %v5550_v56  ;;  %v403_v8 = vmul.f32 0.0, %v5550_v56 }
 0x16d   :  { %v407_v53 = vpop.permute.xlu0 %406  ;;  %v417_v62 = vpop.permute.xlu1 %416 }
 0x16e   :  { %v409_v54 = vadd.f32 %v407_v53, %v6041_v52 }
 0x170   :  { %v4824_v55 = vmul.f32 -1.442695, %v409_v54 }
 0x171   :  { %v388_v57 = vpop.permute.xlu0 %387 }
 0x172   :  { %5551 = vpow2.f32 %v4824_v55  ;;  %v390_v58 = vmul.f32 %v5550_v56, %v388_v57 }
 0x174   :  { %392 = vrot.lane.b32.xlu1 %v390_v58, %s7069_s5 }
 0x17c   :  { %v5552_v59 = vpop.eup %5551 }
 0x17d   :  { %v413_v60 = vadd.f32 1.0, %v5552_v59 }
 0x17f   :  { %5553 = vrcp.f32 %v413_v60 }
 0x189   :  { %v5554_v61 = vpop.eup %5553 }
 0x18a   :  { %v419_v63 = vmul.f32 %v5554_v61, %v417_v62  ;;  %v426_v11 = vsub.f32 1.0, %v5554_v61  ;;  %v432_v13 = vmul.f32 0.0, %v5554_v61 }
 0x18c   :  { %421 = vrot.lane.b32.xlu0 %v419_v63, %s7069_s5 }
 0x1e6   :  { %v393_v0 = vpop.permute.xlu1 %392 }
 0x1e7   :  { %v395_v1 = vadd.f32 %v393_v0, %v6038_v47 }
 0x1e9   :  { %5555 = vtanh.f32 %v395_v1 }
 0x1f3   :  { %v5556_v2 = vpop.eup %5555 }
 0x1f4   :  { %399 = vrot.lane.b32.xlu1 %v5556_v2, %s5798_s10 }
 0x1fe   :  { %v422_v3 = vpop.permute.xlu0 %421 }
 0x1ff   :  { %v424_v4 = vadd.f32 %v422_v3, %v6041_v52 }
 0x201   :  { %5557 = vtanh.f32 %v424_v4 }
 0x20b   :  { %v5558_v5 = vpop.eup %5557 }
 0x20c   :  { %428 = vrot.lane.b32.xlu0 %v5558_v5, %s5798_s10 }
 0x266   :  { %v400_v7 = vpop.permute.xlu1 %399 }
 0x267   :  { %v402_v9 = vmul.f32 %v400_v7, %v397_v6  ;;  %v6110_v6 = vld [vmem:[#allocation2 + $0x28] sm:$0xff] }
 0x269   :  { %v6050_v10 = vadd.f32 %v403_v8, %v402_v9 }
 0x26b   :  { %435 = vrot.lane.b32.xlu1 %v6050_v10, %s5798_s10 }
 0x27e   :  { %v429_v12 = vpop.permute.xlu0 %428 }
 0x27f   :  { %v431_v14 = vmul.f32 %v429_v12, %v426_v11 }
 0x281   :  { %v6054_v15 = vadd.f32 %v432_v13, %v431_v14 }
 0x283   :  { %522 = vrot.lane.b32.xlu0 %v6054_v15, %s7067_s4 }
 0x2dd   :  { %v436_v17 = vpop.permute.xlu1 %435 }
 0x2de   :  { %438 = vst.msk [vmem:[#allocation3] sm:$0xff] %vm229_vm3, %v436_v17  ;;  %5103 = vmatmul.mubr.msk.f32.vlgmr.msra.gmra.mrb[8].mxu1 %vm229_vm3, %v436_v17 }
 0x2df   :  { %5411 = vmatpush3.bf16.msra.mxu1 %v5992_v20  ;;  %5109 = vmatprep.mubr.msk.f32.mxu1 %vm5792_vm1, %v5793_v21 }
 0x2e0   :  { %5412 = vmatprep.subr.bf16.mxu1 %v5791_v19 }
 0x2f5   :  { %v523_v18 = vpop.permute.xlu0 %522 }
 0x2f6   :  { %5110 = vmatmul.mubr.msk.f32.vlgmr.msra.gmra.mrb[10].mxu1 %vm229_vm3, %v523_v18 }
 0x2f7   :  { %5414 = vmatpush3.bf16.msra.mxu1 %v5980_v16  ;;  %5116 = vmatprep.mubr.msk.f32.mxu1 %vm5792_vm1, %v5793_v21 }
 0x2f8   :  { %5418 = vmatprep.subr.bf16.mxu1 %v5791_v19 }
 0x3b1   :  { %v518_v22 = vpop.f32.mrb[8].mxu1 }
 0x3b2   :  { %v5104_v23 = vpop.f32.mrb[9].mxu1  ;;  %v519_v36 = vadd.f32 %v6032_v45, %v518_v22 }
 0x3b3   :  { %v6116_v23 = vld [vmem:[#allocation2 + $0x10] sm:$0xff] }
 0x3b4   :  { %v596_v38 = vadd.f32 %v519_v36, %v6078_v37 }
 0x3b6   :  { %v4827_v39 = vmul.f32 -1.442695, %v596_v38 }
 0x3c9   :  { %v592_v24 = vpop.f32.mrb[10].mxu1 }
 0x3ca   :  { %v593_v25 = vadd.f32 %v6026_v41, %v592_v24  ;;  %v5111_v26 = vpop.f32.mrb[11].mxu1 }
 0x3cc   :  { %633 = vrot.lane.b32.xlu0 %v593_v25, %s5795_s3  ;;  %623 = vrot.lane.b32.xlu1 %v593_v25, %s5794_s13 }
 0x43e   :  { %v624_v28 = vpop.permute.xlu1 %623  ;;  %v634_v34 = vpop.permute.xlu0 %633 }
 0x43f   :  { %v626_v29 = vadd.f32 %v624_v28, %v6072_v27 }
 0x441   :  { %v4828_v30 = vmul.f32 -1.442695, %v626_v29 }
 0x443   :  { %5559 = vpow2.f32 %v4828_v30 }
 0x44d   :  { %v5560_v31 = vpop.eup %5559 }
 0x44e   :  { %v630_v32 = vadd.f32 1.0, %v5560_v31 }
 0x450   :  { %5561 = vrcp.f32 %v630_v32 }
 0x451   :  { %5563 = vpow2.f32 %v4827_v39 }
 0x45a   :  { %v5562_v33 = vpop.eup %5561 }
 0x45b   :  { %v636_v35 = vmul.f32 %v5562_v33, %v634_v34  ;;  %v5564_v40 = vpop.eup %5563  ;;  %v643_v54 = vsub.f32 1.0, %v5562_v33  ;;  %v649_v56 = vmul.f32 %v5562_v33, %v6054_v15 }
 0x45c   :  { %v600_v42 = vadd.f32 1.0, %v5564_v40 }
 0x45d   :  { %638 = vrot.lane.b32.xlu1 %v636_v35, %s7069_s5 }
 0x45e   :  { %5565 = vrcp.f32 %v600_v42 }
 0x461   :  { %604 = vrot.lane.b32.xlu1 %v519_v36, %s5796_s0 }
 0x468   :  { %v5566_v46 = vpop.eup %5565 }
 0x469   :  { %v614_v61 = vsub.f32 1.0, %v5566_v46  ;;  %v620_v63 = vmul.f32 %v5566_v46, %v6050_v10 }
 0x4cf   :  { %v639_v43 = vpop.permute.xlu1 %638 }
 0x4d0   :  { %v641_v44 = vadd.f32 %v639_v43, %v6072_v27 }
 0x4d2   :  { %5567 = vtanh.f32 %v641_v44 }
 0x4d3   :  { %v605_v48 = vpop.permute.xlu1 %604 }
 0x4d4   :  { %v607_v49 = vmul.f32 %v5566_v46, %v605_v48 }
 0x4d6   :  { %609 = vrot.lane.b32.xlu1 %v607_v49, %s7069_s5 }
 0x4dc   :  { %v5568_v50 = vpop.eup %5567 }
 0x4dd   :  { %645 = vrot.lane.b32.xlu0 %v5568_v50, %s5798_s10 }
 0x548   :  { %v610_v51 = vpop.permute.xlu1 %609 }
 0x549   :  { %v612_v53 = vadd.f32 %v610_v51, %v6078_v37 }
 0x54b   :  { %5569 = vtanh.f32 %v612_v53 }
 0x54f   :  { %v646_v55 = vpop.permute.xlu0 %645 }
 0x550   :  { %v648_v57 = vmul.f32 %v646_v55, %v643_v54 }
 0x552   :  { %v6086_v58 = vadd.f32 %v649_v56, %v648_v57 }
 0x554   :  { %739 = vrot.lane.b32.xlu0 %v6086_v58, %s7067_s4 }
 0x555   :  { %v5570_v59 = vpop.eup %5569 }
 0x558   :  { %616 = vrot.lane.b32.xlu0 %v5570_v59, %s5798_s10  ;;  %v6145_v59 = vld [vmem:[#allocation2 + $0x20] sm:$0xff] }
 0x5c6   :  { %v740_v60 = vpop.permute.xlu0 %739 }
 0x5c7   :  { %5124 = vmatmul.mubr.msk.f32.vlgmr.msra.gmra.mrb[4].mxu0 %vm229_vm3, %v740_v60 }
 0x5c8   :  { %5423 = vmatpush3.bf16.msra.mxu0 %v5992_v20  ;;  %5137 = vmatprep.mubr.msk.f32.mxu0 %vm5792_vm1, %v5793_v21 }
 0x5c9   :  { %5427 = vmatprep.subr.bf16.mxu0 %v5791_v19 }
 0x5ca   :  { %v617_v62 = vpop.permute.xlu0 %616 }
 0x5cb   :  { %v619_v0 = vmul.f32 %v617_v62, %v614_v61 }
 0x5cd   :  { %v6097_v1 = vadd.f32 %v620_v63, %v619_v0 }
 0x5cf   :  { %652 = vrot.lane.b32.xlu1 %v6097_v1, %s5798_s10 }
 0x641   :  { %v653_v2 = vpop.permute.xlu1 %652 }
 0x642   :  { %656 = vst.msk [vmem:[#allocation3 + $0x8] sm:$0xff] %vm229_vm3, %v653_v2  ;;  %5117 = vmatmul.mubr.msk.f32.vlgmr.msra.gmra.mrb[12].mxu1 %vm229_vm3, %v653_v2 }
 0x643   :  { %5420 = vmatpush3.bf16.msra.mxu1 %v5980_v16  ;;  %5130 = vmatprep.mubr.msk.f32.mxu1 %vm5792_vm1, %v5793_v21 }
 0x644   :  { %5424 = vmatprep.subr.bf16.mxu1 %v5791_v19 }
 0x69a   :  { %v809_v3 = vpop.f32.mrb[4].mxu0 }
 0x69b   :  { %v810_v4 = vadd.f32 %v6026_v41, %v809_v3  ;;  %v5125_v5 = vpop.f32.mrb[5].mxu0 }
 0x69d   :  { %840 = vrot.lane.b32.xlu0 %v810_v4, %s5794_s13  ;;  %850 = vrot.lane.b32.xlu1 %v810_v4, %s5795_s3 }
 0x70f   :  { %v841_v7 = vpop.permute.xlu0 %840  ;;  %v851_v17 = vpop.permute.xlu1 %850 }
 0x710   :  { %v843_v8 = vadd.f32 %v841_v7, %v6110_v6 }
 0x712   :  { %v4832_v9 = vmul.f32 -1.442695, %v843_v8  ;;  %v6151_v8 = vld [vmem:[#allocation2 + $0x18] sm:$0xff] }
 0x714   :  { %5571 = vpow2.f32 %v4832_v9 }
 0x715   :  { %v735_v10 = vpop.f32.mrb[12].mxu1 }
 0x716   :  { %v5118_v11 = vpop.f32.mrb[13].mxu1  ;;  %v736_v22 = vadd.f32 %v6032_v45, %v735_v10 }
 0x718   :  { %v813_v24 = vadd.f32 %v736_v22, %v6116_v23 }
 0x71a   :  { %v4831_v25 = vmul.f32 -1.442695, %v813_v24 }
 0x71e   :  { %v5572_v12 = vpop.eup %5571 }
 0x71f   :  { %v847_v13 = vadd.f32 1.0, %v5572_v12 }
 0x721   :  { %5573 = vrcp.f32 %v847_v13 }
 0x722   :  { %5575 = vpow2.f32 %v4831_v25 }
 0x72b   :  { %v5574_v14 = vpop.eup %5573 }
 0x72c   :  { %v853_v18 = vmul.f32 %v5574_v14, %v851_v17  ;;  %v5576_v26 = vpop.eup %5575  ;;  %v860_v38 = vsub.f32 1.0, %v5574_v14  ;;  %v866_v40 = vmul.f32 %v5574_v14, %v6086_v58 }
 0x72d   :  { %v817_v28 = vadd.f32 1.0, %v5576_v26 }
 0x72e   :  { %855 = vrot.lane.b32.xlu0 %v853_v18, %s7069_s5 }
 0x72f   :  { %5577 = vrcp.f32 %v817_v28 }
 0x732   :  { %821 = vrot.lane.b32.xlu0 %v736_v22, %s5796_s0 }
 0x739   :  { %v5578_v31 = vpop.eup %5577 }
 0x73a   :  { %v831_v48 = vsub.f32 1.0, %v5578_v31  ;;  %v837_v50 = vmul.f32 %v5578_v31, %v6097_v1 }
 0x7a0   :  { %v856_v29 = vpop.permute.xlu0 %855 }
 0x7a1   :  { %v858_v30 = vadd.f32 %v856_v29, %v6110_v6 }
 0x7a3   :  { %5579 = vtanh.f32 %v858_v30 }
 0x7a4   :  { %v822_v32 = vpop.permute.xlu0 %821 }
 0x7a5   :  { %v824_v33 = vmul.f32 %v5578_v31, %v822_v32 }
 0x7a7   :  { %826 = vrot.lane.b32.xlu0 %v824_v33, %s7069_s5 }
 0x7ad   :  { %v5580_v34 = vpop.eup %5579 }
 0x7ae   :  { %862 = vrot.lane.b32.xlu1 %v5580_v34, %s5798_s10 }
 0x819   :  { %v827_v35 = vpop.permute.xlu0 %826 }
 0x81a   :  { %v829_v36 = vadd.f32 %v827_v35, %v6116_v23 }
 0x81c   :  { %5581 = vtanh.f32 %v829_v36 }
 0x820   :  { %v863_v39 = vpop.permute.xlu1 %862 }
 0x821   :  { %v865_v42 = vmul.f32 %v863_v39, %v860_v38 }
 0x823   :  { %v6124_v43 = vadd.f32 %v866_v40, %v865_v42 }
 0x825   :  { %956 = vrot.lane.b32.xlu1 %v6124_v43, %s7067_s4 }
 0x826   :  { %v5582_v44 = vpop.eup %5581 }
 0x829   :  { %833 = vrot.lane.b32.xlu1 %v5582_v44, %s5798_s10 }
 0x897   :  { %v957_v46 = vpop.permute.xlu1 %956 }
 0x898   :  { %5138 = vmatmul.mubr.msk.f32.vlgmr.msra.gmra.mrb[6].mxu0 %vm229_vm3, %v957_v46 }
 0x899   :  { %5429 = vmatpush3.bf16.msra.mxu0 %v5992_v20  ;;  %5151 = vmatprep.mubr.msk.f32.mxu0 %vm5792_vm1, %v5793_v21 }
 0x89a   :  { %5433 = vmatprep.subr.bf16.mxu0 %v5791_v19 }
 0x89b   :  { %v834_v49 = vpop.permute.xlu1 %833 }
 0x89c   :  { %v836_v51 = vmul.f32 %v834_v49, %v831_v48 }
 0x89e   :  { %v838_v53 = vadd.f32 %v837_v50, %v836_v51 }
 0x8a0   :  { %869 = vrot.lane.b32.xlu0 %v838_v53, %s5798_s10 }
 0x912   :  { %v870_v54 = vpop.permute.xlu0 %869 }
 0x913   :  { %873 = vst.msk [vmem:[#allocation3 + $0x10] sm:$0xff] %vm229_vm3, %v870_v54  ;;  %5131 = vmatmul.mubr.msk.f32.vlgmr.msra.gmra.mrb[14].mxu1 %vm229_vm3, %v870_v54 }
 0x914   :  { %5426 = vmatpush3.bf16.msra.mxu1 %v5980_v16  ;;  %5144 = vmatprep.mubr.msk.f32.mxu1 %vm5792_vm1, %v5793_v21 }
 0x915   :  { %5430 = vmatprep.subr.bf16.mxu1 %v5791_v19 }
 0x96b   :  { %v1026_v55 = vpop.f32.mrb[6].mxu0 }
 0x96c   :  { %v1027_v56 = vadd.f32 %v6026_v41, %v1026_v55  ;;  %v5139_v57 = vpop.f32.mrb[7].mxu0 }
 0x96e   :  { %1057 = vrot.lane.b32.xlu1 %v1027_v56, %s5794_s13  ;;  %1067 = vrot.lane.b32.xlu0 %v1027_v56, %s5795_s3 }
 0x9e0   :  { %v1058_v60 = vpop.permute.xlu1 %1057  ;;  %v1068_v5 = vpop.permute.xlu0 %1067 }
 0x9e1   :  { %v1060_v61 = vadd.f32 %v1058_v60, %v6145_v59 }
 0x9e3   :  { %v4836_v62 = vmul.f32 -1.442695, %v1060_v61 }
 0x9e5   :  { %5583 = vpow2.f32 %v4836_v62 }
 0x9e6   :  { %v952_v63 = vpop.f32.mrb[14].mxu1 }
 0x9e7   :  { %v953_v0 = vadd.f32 %v6032_v45, %v952_v63  ;;  %v5132_v1 = vpop.f32.mrb[15].mxu1 }
 0x9e9   :  { %1038 = vrot.lane.b32.xlu0 %v953_v0, %s5796_s0  ;;  %v1030_v9 = vadd.f32 %v953_v0, %v6151_v8 }
 0x9eb   :  { %v4835_v10 = vmul.f32 -1.442695, %v1030_v9 }
 0x9ef   :  { %v5584_v2 = vpop.eup %5583 }
 0x9f0   :  { %v1064_v3 = vadd.f32 1.0, %v5584_v2 }
 0x9f2   :  { %5585 = vrcp.f32 %v1064_v3 }
 0x9f3   :  { %5587 = vpow2.f32 %v4835_v10 }
 0x9fc   :  { %v5586_v4 = vpop.eup %5585 }
 0x9fd   :  { %v1070_v7 = vmul.f32 %v5586_v4, %v1068_v5  ;;  %v5588_v11 = vpop.eup %5587  ;;  %v1077_v29 = vsub.f32 1.0, %v5586_v4  ;;  %v1083_v31 = vmul.f32 %v5586_v4, %v6124_v43 }
 0x9fe   :  { %v1034_v12 = vadd.f32 1.0, %v5588_v11 }
 0x9ff   :  { %1072 = vrot.lane.b32.xlu1 %v1070_v7, %s7069_s5 }
 0xa00   :  { %5589 = vrcp.f32 %v1034_v12 }
 0xa0a   :  { %v5590_v13 = vpop.eup %5589 }
 0xa0b   :  { %v1048_v34 = vsub.f32 1.0, %v5590_v13  ;;  %v1054_v36 = vmul.f32 %v5590_v13, %v838_v53 }
 0xa5b   :  { %v1039_v14 = vpop.permute.xlu0 %1038 }
 0xa5c   :  { %v1041_v17 = vmul.f32 %v5590_v13, %v1039_v14 }
 0xa5e   :  { %1043 = vrot.lane.b32.xlu0 %v1041_v17, %s7069_s5 }
 0xa71   :  { %v1073_v18 = vpop.permute.xlu1 %1072 }
 0xa72   :  { %v1075_v22 = vadd.f32 %v1073_v18, %v6145_v59 }
 0xa74   :  { %5591 = vtanh.f32 %v1075_v22 }
 0xa7e   :  { %v5592_v24 = vpop.eup %5591 }
 0xa7f   :  { %1079 = vrot.lane.b32.xlu1 %v5592_v24, %s5798_s10 }
 0xad0   :  { %v1044_v25 = vpop.permute.xlu0 %1043 }
 0xad1   :  { %v1046_v26 = vadd.f32 %v1044_v25, %v6151_v8 }
 0xad3   :  { %5593 = vtanh.f32 %v1046_v26 }
 0xadd   :  { %v5594_v28 = vpop.eup %5593 }
 0xade   :  { %1050 = vrot.lane.b32.xlu0 %v5594_v28, %s5798_s10 }
 0xaf1   :  { %v1080_v30 = vpop.permute.xlu1 %1079 }
 0xaf2   :  { %v1082_v32 = vmul.f32 %v1080_v30, %v1077_v29 }
 0xaf4   :  { %v6160_v33 = vadd.f32 %v1083_v31, %v1082_v32 }
 0xaf6   :  { %1171 = vrot.lane.b32.xlu1 %v6160_v33, %s7067_s4 }
 0xb50   :  { %v1051_v35 = vpop.permute.xlu0 %1050 }
 0xb51   :  { %v1053_v38 = vmul.f32 %v1051_v35, %v1048_v34 }
 0xb53   :  { %v1055_v39 = vadd.f32 %v1054_v36, %v1053_v38 }
 0xb55   :  { %1086 = vrot.lane.b32.xlu1 %v1055_v39, %s5798_s10 }
 0xb68   :  { %v1172_v40 = vpop.permute.xlu1 %1171 }
 0xb69   :  { %5152 = vmatmul.mubr.msk.f32.vlgmr.msra.gmra.mrb[8].mxu0 %vm229_vm3, %v1172_v40 }
 0xb6a   :  { %5435 = vmatpush3.bf16.msra.mxu0 %v5992_v20  ;;  %5165 = vmatprep.mubr.msk.f32.mxu0 %vm5792_vm1, %v5793_v21 }
 0xb6b   :  { %5439 = vmatprep.subr.bf16.mxu0 %v5791_v19 }
 0xbc7   :  { %v1087_v42 = vpop.permute.xlu1 %1086 }
 0xbc8   :  { %1090 = vst.msk [vmem:[#allocation3 + $0x18] sm:$0xff] %vm229_vm3, %v1087_v42  ;;  %5145 = vmatmul.mubr.msk.f32.vlgmr.msra.gmra.mrb[16].mxu1 %vm229_vm3, %v1087_v42 }
 0xbc9   :  { %5432 = vmatpush3.bf16.msra.mxu1 %v5980_v16  ;;  %5158 = vmatprep.mubr.msk.f32.mxu1 %vm5792_vm1, %v5793_v21 }
 0xbca   :  { %5436 = vmatprep.subr.bf16.mxu1 %v5791_v19 }
 0xc3c   :  { %v1241_v44 = vpop.f32.mrb[8].mxu0 }
 0xc3d   :  { %v1242_v46 = vadd.f32 %v6026_v41, %v1241_v44  ;;  %v5153_v48 = vpop.f32.mrb[9].mxu0 }
 0xc3f   :  { %1272 = vrot.lane.b32.xlu0 %v1242_v46, %s5794_s13  ;;  %1282 = vrot.lane.b32.xlu1 %v1242_v46, %s5795_s3 }
 0xc9b   :  { %v1167_v49 = vpop.f32.mrb[16].mxu1 }
 0xc9c   :  { %v1168_v50 = vadd.f32 %v6032_v45, %v1167_v49  ;;  %v5146_v51 = vpop.f32.mrb[17].mxu1 }
 0xc9e   :  { %1253 = vrot.lane.b32.xlu1 %v1168_v50, %s5796_s0  ;;  %v1245_v63 = vadd.f32 %v1168_v50, %v6145_v59 }
 0xca0   :  { %v4839_v0 = vmul.f32 -1.442695, %v1245_v63 }
 0xcb1   :  { %v1273_v53 = vpop.permute.xlu0 %1272  ;;  %v1283_v61 = vpop.permute.xlu1 %1282 }
 0xcb2   :  { %v1275_v54 = vadd.f32 %v1273_v53, %v6151_v8 }
 0xcb4   :  { %v4840_v55 = vmul.f32 -1.442695, %v1275_v54 }
 0xcb6   :  { %5595 = vpow2.f32 %v4840_v55 }
 0xcc0   :  { %v5596_v56 = vpop.eup %5595 }
 0xcc1   :  { %v1279_v57 = vadd.f32 1.0, %v5596_v56 }
 0xcc3   :  { %5597 = vrcp.f32 %v1279_v57 }
 0xcc4   :  { %5599 = vpow2.f32 %v4839_v0 }
 0xccd   :  { %v5598_v60 = vpop.eup %5597 }
 0xcce   :  { %v1285_v62 = vmul.f32 %v5598_v60, %v1283_v61  ;;  %v5600_v1 = vpop.eup %5599  ;;  %v1292_v14 = vsub.f32 1.0, %v5598_v60  ;;  %v1298_v18 = vmul.f32 %v5598_v60, %v6160_v33 }
 0xccf   :  { %v1249_v2 = vadd.f32 1.0, %v5600_v1 }
 0xcd0   :  { %1287 = vrot.lane.b32.xlu0 %v1285_v62, %s7069_s5 }
 0xcd1   :  { %5601 = vrcp.f32 %v1249_v2 }
 0xcdb   :  { %v5602_v3 = vpop.eup %5601 }
 0xcdc   :  { %v1269_v26 = vmul.f32 %v5602_v3, %v1055_v39 }
 0xd10   :  { %v1254_v4 = vpop.permute.xlu1 %1253 }
 0xd11   :  { %v1256_v5 = vmul.f32 %v5602_v3, %v1254_v4 }
 0xd13   :  { %1258 = vrot.lane.b32.xlu1 %v1256_v5, %s7069_s5 }
 0xd42   :  { %v1288_v7 = vpop.permute.xlu0 %1287 }
 0xd43   :  { %v1290_v9 = vadd.f32 %v1288_v7, %v6151_v8  ;;  %v1263_v8 = vsub.f32 1.0, %v5602_v3 }
 0xd45   :  { %5603 = vtanh.f32 %v1290_v9 }
 0xd4f   :  { %v5604_v10 = vpop.eup %5603 }
 0xd50   :  { %1294 = vrot.lane.b32.xlu0 %v5604_v10, %s5798_s10 }
 0xd85   :  { %v1259_v11 = vpop.permute.xlu1 %1258 }
 0xd86   :  { %v1261_v12 = vadd.f32 %v1259_v11, %v6145_v59 }
 0xd88   :  { %5605 = vtanh.f32 %v1261_v12 }
 0xd92   :  { %v5606_v13 = vpop.eup %5605 }
 0xd93   :  { %1265 = vrot.lane.b32.xlu1 %v5606_v13, %s5798_s10 }
 0xdc2   :  { %v1295_v17 = vpop.permute.xlu0 %1294 }
 0xdc3   :  { %v1297_v22 = vmul.f32 %v1295_v17, %v1292_v14 }
 0xdc5   :  { %v6190_v24 = vadd.f32 %v1298_v18, %v1297_v22 }
 0xdc7   :  { %1384 = vrot.lane.b32.xlu0 %v6190_v24, %s7067_s4 }
 0xe05   :  { %v1266_v25 = vpop.permute.xlu1 %1265 }
 0xe06   :  { %v1268_v28 = vmul.f32 %v1266_v25, %v1263_v8 }
 0xe08   :  { %v1270_v29 = vadd.f32 %v1269_v26, %v1268_v28 }
 0xe0a   :  { %1301 = vrot.lane.b32.xlu0 %v1270_v29, %s5798_s10 }
 0xe39   :  { %v1385_v59 = vpop.permute.xlu0 %1384 }
 0xe3a   :  { %5166 = vmatmul.mubr.msk.f32.vlgmr.msra.gmra.mrb[10].mxu0 %vm229_vm3, %v1385_v59 }
 0xe3b   :  { %5441 = vmatpush3.bf16.msra.mxu0 %v5992_v20  ;;  %5179 = vmatprep.mubr.msk.f32.mxu0 %vm5792_vm1, %v5793_v21 }
 0xe3c   :  { %5445 = vmatprep.subr.bf16.mxu0 %v5791_v19 }
 0xe7c   :  { %v6200_v30 = vpop.permute.xlu0 %1301 }
 0xe7d   :  { %5159 = vmatmul.mubr.msk.f32.vlgmr.msra.gmra.mrb[18].mxu1 %vm229_vm3, %v6200_v30 }
 0xe7e   :  { %5438 = vmatpush3.bf16.msra.mxu1 %v5980_v16  ;;  %5172 = vmatprep.mubr.msk.f32.mxu1 %vm5792_vm1, %v5793_v21 }
 0xe7f   :  { %5442 = vmatprep.subr.bf16.mxu1 %v5791_v19 }
 0xf0d   :  { %v1454_v31 = vpop.f32.mrb[10].mxu0 }
 0xf0e   :  { %v1455_v32 = vadd.f32 %v6026_v41, %v1454_v31  ;;  %v5167_v34 = vpop.f32.mrb[11].mxu0 }
 0xf10   :  { %1485 = vrot.lane.b32.xlu1 %v1455_v32, %s5794_s13  ;;  %1495 = vrot.lane.b32.xlu0 %v1455_v32, %s5795_s3 }
 0xf50   :  { %v1380_v35 = vpop.f32.mrb[18].mxu1 }
 0xf51   :  { %v1381_v36 = vadd.f32 %v6032_v45, %v1380_v35  ;;  %v5160_v38 = vpop.f32.mrb[19].mxu1 }
 0xf53   :  { %1466 = vrot.lane.b32.xlu0 %v1381_v36, %s5796_s0  ;;  %v1458_v51 = vadd.f32 %v1381_v36, %v6110_v6 }
 0xf55   :  { %v4843_v53 = vmul.f32 -1.442695, %v1458_v51 }
 0xf82   :  { %v1486_v39 = vpop.permute.xlu1 %1485  ;;  %v1496_v49 = vpop.permute.xlu0 %1495 }
 0xf83   :  { %v1488_v40 = vadd.f32 %v1486_v39, %v6116_v23 }
 0xf85   :  { %v4844_v42 = vmul.f32 -1.442695, %v1488_v40 }
 0xf87   :  { %5607 = vpow2.f32 %v4844_v42 }
 0xf91   :  { %v5608_v44 = vpop.eup %5607 }
 0xf92   :  { %v1492_v46 = vadd.f32 1.0, %v5608_v44 }
 0xf94   :  { %5609 = vrcp.f32 %v1492_v46 }
 0xf95   :  { %5611 = vpow2.f32 %v4843_v53 }
 0xf9e   :  { %v5610_v48 = vpop.eup %5609 }
 0xf9f   :  { %v1498_v50 = vmul.f32 %v5610_v48, %v1496_v49  ;;  %v5612_v54 = vpop.eup %5611  ;;  %v1505_v3 = vsub.f32 1.0, %v5610_v48  ;;  %v1511_v5 = vmul.f32 %v5610_v48, %v6190_v24 }
 0xfa0   :  { %v1462_v55 = vadd.f32 1.0, %v5612_v54 }
 0xfa1   :  { %1500 = vrot.lane.b32.xlu1 %v1498_v50, %s7069_s5 }
 0xfa2   :  { %5613 = vrcp.f32 %v1462_v55 }
 0xfac   :  { %v5614_v56 = vpop.eup %5613 }
 0xfad   :  { %v1482_v11 = vmul.f32 %v5614_v56, %v1270_v29 }
 0xfc5   :  { %v1467_v57 = vpop.permute.xlu0 %1466 }
 0xfc6   :  { %v1469_v60 = vmul.f32 %v5614_v56, %v1467_v57 }
 0xfc8   :  { %1471 = vrot.lane.b32.xlu1 %v1469_v60, %s7069_s5 }
0x1013   :  { %v1501_v61 = vpop.permute.xlu1 %1500 }
0x1014   :  { %v1503_v62 = vadd.f32 %v1501_v61, %v6116_v23  ;;  %v1476_v23 = vsub.f32 1.0, %v5614_v56 }
0x1016   :  { %5615 = vtanh.f32 %v1503_v62 }
0x1020   :  { %v5616_v63 = vpop.eup %5615 }
0x1021   :  { %1507 = vrot.lane.b32.xlu0 %v5616_v63, %s5798_s10 }
0x103a   :  { %v1472_v0 = vpop.permute.xlu1 %1471 }
0x103b   :  { %v1474_v1 = vadd.f32 %v1472_v0, %v6110_v6 }
0x103d   :  { %5617 = vtanh.f32 %v1474_v1 }
0x1047   :  { %v5618_v2 = vpop.eup %5617 }
0x1048   :  { %1478 = vrot.lane.b32.xlu0 %v5618_v2, %s5798_s10 }
0x1093   :  { %v1508_v4 = vpop.permute.xlu0 %1507 }
0x1094   :  { %v1510_v7 = vmul.f32 %v1508_v4, %v1505_v3 }
0x1096   :  { %v6222_v9 = vadd.f32 %v1511_v5, %v1510_v7 }
0x1098   :  { %1597 = vrot.lane.b32.xlu1 %v6222_v9, %s7067_s4 }
0x10ba   :  { %v1479_v10 = vpop.permute.xlu0 %1478 }
0x10bb   :  { %v1481_v12 = vmul.f32 %v1479_v10, %v1476_v23 }
0x10bd   :  { %v1483_v13 = vadd.f32 %v1482_v11, %v1481_v12 }
0x10bf   :  { %1514 = vrot.lane.b32.xlu1 %v1483_v13, %s5798_s10 }
0x110a   :  { %v1598_v6 = vpop.permute.xlu1 %1597 }
0x110b   :  { %5180 = vmatmul.mubr.msk.f32.vlgmr.msra.gmra.mrb[12].mxu0 %vm229_vm3, %v1598_v6 }
0x110c   :  { %5447 = vmatpush3.bf16.msra.mxu0 %v5992_v20  ;;  %5193 = vmatprep.mubr.msk.f32.mxu0 %vm5792_vm1, %v5793_v21 }
0x110d   :  { %5448 = vmatprep.subr.bf16.mxu0 %v5791_v19 }
0x1131   :  { %v6232_v14 = vpop.permute.xlu1 %1514 }
0x1132   :  { %5173 = vmatmul.mubr.msk.f32.vlgmr.msra.gmra.mrb[20].mxu1 %vm229_vm3, %v6232_v14 }
0x1133   :  { %5444 = vmatpush3.bf16.msra.mxu1 %v5980_v16  ;;  %5186 = vmatprep.mubr.msk.f32.mxu1 %vm5792_vm1, %v5793_v21 }
0x11de   :  { %v1667_v17 = vpop.f32.mrb[12].mxu0 }
0x11df   :  { %v1668_v18 = vadd.f32 %v6026_v41, %v1667_v17  ;;  %v5181_v22 = vpop.f32.mrb[13].mxu0 }
0x11e1   :  { %1708 = vrot.lane.b32.xlu1 %v1668_v18, %s5795_s3  ;;  %1698 = vrot.lane.b32.xlu0 %v1668_v18, %s5794_s13 }
0x1205   :  { %v1593_v20 = vpop.f32.mrb[20].mxu1 }
0x1206   :  { %v1594_v8 = vadd.f32 %v6032_v45, %v1593_v20  ;;  %v5174_v25 = vpop.f32.mrb[21].mxu1 }
0x1208   :  { %1679 = vrot.lane.b32.xlu0 %v1594_v8, %s5796_s0  ;;  %v1671_v29 = vadd.f32 %v1594_v8, %v6072_v27 }
0x120a   :  { %v4847_v59 = vmul.f32 -1.442695, %v1671_v29 }
0x1253   :  { %v1699_v26 = vpop.permute.xlu0 %1698  ;;  %v1709_v38 = vpop.permute.xlu1 %1708 }
0x1254   :  { %v1701_v16 = vadd.f32 %v1699_v26, %v6078_v37 }
0x1256   :  { %v4848_v28 = vmul.f32 -1.442695, %v1701_v16 }
0x1258   :  { %5619 = vpow2.f32 %v4848_v28 }
0x1259   :  { %5621 = vpow2.f32 %v4847_v59 }
0x1262   :  { %v5620_v31 = vpop.eup %5619 }
0x1263   :  { %v1705_v32 = vadd.f32 1.0, %v5620_v31  ;;  %v5622_v34 = vpop.eup %5621 }
0x1264   :  { %v1675_v35 = vadd.f32 1.0, %v5622_v34 }
0x1265   :  { %5623 = vrcp.f32 %v1705_v32 }
0x1266   :  { %5625 = vrcp.f32 %v1675_v35  ;;  %v2070_v35 = vld [vmem:[%s7090_s7 + $0x8] sm:$0xff] }
0x126f   :  { %v5624_v36 = vpop.eup %5623 }
0x1270   :  { %v1711_v39 = vmul.f32 %v5624_v36, %v1709_v38  ;;  %v5626_v40 = vpop.eup %5625  ;;  %v1718_v54 = vsub.f32 1.0, %v5624_v36  ;;  %v1724_v56 = vmul.f32 %v5624_v36, %v6222_v9  ;;  %v2072_v36 = vld [vmem:[%s7091_s6 + $0x8] sm:$0xff] }
0x1272   :  { %1713 = vrot.lane.b32.xlu1 %v1711_v39, %s7069_s5 }
0x127a   :  { %v1680_v42 = vpop.permute.xlu0 %1679 }
0x127b   :  { %v1682_v44 = vmul.f32 %v5626_v40, %v1680_v42 }
0x127d   :  { %1684 = vrot.lane.b32.xlu0 %v1682_v44, %s7069_s5 }
0x12e4   :  { %v1714_v46 = vpop.permute.xlu1 %1713 }
0x12e5   :  { %v1716_v48 = vadd.f32 %v1714_v46, %v6078_v37  ;;  %v1689_v37 = vsub.f32 1.0, %v5626_v40  ;;  %v5539_v46 = vld [vmem:[%s7092_s30] sm:$0xff]  }
0x12e6   :  { %5196 = vmatprep.subr.bf16.mxu1 %v5539_v46 }
0x12e7   :  { %5627 = vtanh.f32 %v1716_v48 }
0x12ef   :  { %v1685_v49 = vpop.permute.xlu0 %1684 }
0x12f0   :  { %v1687_v50 = vadd.f32 %v1685_v49, %v6072_v27  ;;  %v1695_v27 = vmul.f32 %v5626_v40, %v1483_v13 }
0x12f1   :  { %v5628_v51 = vpop.eup %5627 }
0x12f2   :  { %5629 = vtanh.f32 %v1687_v50  ;;  %1720 = vrot.lane.b32.xlu1 %v5628_v51, %s5798_s10 }
0x12fc   :  { %v5630_v53 = vpop.eup %5629 }
0x12fd   :  { %1691 = vrot.lane.b32.xlu0 %v5630_v53, %s5798_s10 }
0x1364   :  { %v1721_v55 = vpop.permute.xlu1 %1720 }
0x1365   :  { %v1723_v57 = vmul.f32 %v1721_v55, %v1718_v54 }
0x1367   :  { %v6253_v60 = vadd.f32 %v1724_v56, %v1723_v57 }
0x1369   :  { %1810 = vrot.lane.b32.xlu1 %v6253_v60, %s7067_s4 }
0x136f   :  { %v1692_v61 = vpop.permute.xlu0 %1691 }
0x1370   :  { %v1694_v62 = vmul.f32 %v1692_v61, %v1689_v37  ;;  %v6345_v37 = vld [vmem:[%s7093_s29] ss:$0 sm:$0xff] }
0x1372   :  { %v6257_v63 = vadd.f32 %v1695_v27, %v1694_v62 }
0x1374   :  { %1727 = vrot.lane.b32.xlu0 %v6257_v63, %s5798_s10 }
0x13db   :  { %v1811_v0 = vpop.permute.xlu1 %1810 }
0x13dc   :  { %5194 = vmatmul.mubr.msk.f32.vlgmr.msra.gmra.mrb[14].mxu0 %vm229_vm3, %v1811_v0 }
0x13dd   :  { %5212 = vmatprep.mubr.msk.f32.mxu0 %vm5792_vm1, %v5793_v21 }
0x13e6   :  { %v6264_v1 = vpop.permute.xlu0 %1727 }
0x13e7   :  { %5187 = vmatmul.mubr.msk.f32.vlgmr.msra.gmra.mrb[22].mxu1 %vm229_vm3, %v6264_v1 }
0x13e8   :  { %5197 = vmatpush3.bf16.msra.mxu1 %v5539_v46 }
0x14af   :  { %v1880_v2 = vpop.f32.mrb[14].mxu0 }
0x14b0   :  { %v1881_v3 = vadd.f32 %v6026_v41, %v1880_v2  ;;  %v5195_v4 = vpop.f32.mrb[15].mxu0 }
0x14b2   :  { %1911 = vrot.lane.b32.xlu1 %v1881_v3, %s5794_s13  ;;  %1921 = vrot.lane.b32.xlu0 %v1881_v3, %s5795_s3 }
0x14ba   :  { %v1806_v5 = vpop.f32.mrb[22].mxu1 }
0x14bb   :  { %v1807_v7 = vadd.f32 %v6032_v45, %v1806_v5  ;;  %v5188_v23 = vpop.f32.mrb[23].mxu1 }
0x14bd   :  { %1892 = vrot.lane.b32.xlu1 %v1807_v7, %s5796_s0  ;;  %v1884_v10 = vadd.f32 %v1807_v7, %v6041_v52 }
0x14bf   :  { %v4851_v11 = vmul.f32 -1.442695, %v1884_v10 }
0x14c1   :  { %5631 = vpow2.f32 %v4851_v11 }
0x14cb   :  { %v5632_v12 = vpop.eup %5631 }
0x14cc   :  { %v1888_v13 = vadd.f32 1.0, %v5632_v12 }
0x14ce   :  { %5633 = vrcp.f32 %v1888_v13 }
0x14d8   :  { %v5634_v18 = vpop.eup %5633 }
0x14d9   :  { %v1908_v40 = vmul.f32 %v5634_v18, %v6257_v63 }
0x1524   :  { %v1912_v6 = vpop.permute.xlu1 %1911  ;;  %v1922_v26 = vpop.permute.xlu0 %1921 }
0x1525   :  { %v1914_v41 = vadd.f32 %v1912_v6, %v6038_v47 }
0x1527   :  { %v4852_v17 = vmul.f32 -1.442695, %v1914_v41 }
0x1529   :  { %5635 = vpow2.f32 %v4852_v17 }
0x152f   :  { %v1893_v22 = vpop.permute.xlu1 %1892 }
0x1530   :  { %v1895_v20 = vmul.f32 %v5634_v18, %v1893_v22 }
0x1532   :  { %1897 = vrot.lane.b32.xlu1 %v1895_v20, %s7069_s5 }
0x1533   :  { %v5636_v45 = vpop.eup %5635 }
0x1534   :  { %v1918_v8 = vadd.f32 1.0, %v5636_v45 }
0x1536   :  { %5637 = vrcp.f32 %v1918_v8 }
0x1540   :  { %v5638_v25 = vpop.eup %5637 }
0x1541   :  { %v1924_v16 = vmul.f32 %v5638_v25, %v1922_v26  ;;  %v1931_v48 = vsub.f32 1.0, %v5638_v25  ;;  %v1937_v50 = vmul.f32 %v5638_v25, %v6253_v60 }
0x1543   :  { %1926 = vrot.lane.b32.xlu0 %v1924_v16, %s7069_s5  ;;  %s7094_s5 = sld [smem:[#allocation16_spill]] }
0x15a4   :  { %v1898_v28 = vpop.permute.xlu1 %1897 }
0x15a5   :  { %v1900_v29 = vadd.f32 %v1898_v28, %v6041_v52  ;;  %v2069_v52 = vld [vmem:[%s7090_s7] sm:$0xff] }
0x15a7   :  { %5639 = vtanh.f32 %v1900_v29 }
0x15b1   :  { %v5640_v59 = vpop.eup %5639 }
0x15b2   :  { %1904 = vrot.lane.b32.xlu1 %v5640_v59, %s5798_s10 }
0x15b5   :  { %v1927_v31 = vpop.permute.xlu0 %1926 }
0x15b6   :  { %v1929_v32 = vadd.f32 %v1927_v31, %v6038_v47  ;;  %1519 = vrot.lane.b32.xlu1 %v6222_v9, %s5800_s11  ;;  %v2071_v47 = vld [vmem:[%s7091_s6] sm:$0xff]  ;;  %v6294_v9 = vpack.c.bf16 %v2070_v35, %v2069_v52 }
0x15b7   :  { %v6300_v38 = vpack.c.bf16 %v2072_v36, %v2071_v47 }
0x15b8   :  { %5641 = vtanh.f32 %v1929_v32  ;;  %5450 = vmatpush3.bf16.msra.mxu0 %v6294_v9 }
0x15b9   :  { %5451 = vmatprep.subr.bf16.mxu0 %v5791_v19 }
0x15bb   :  { %5213 = vmatmul.mubr.f32.vlgmr.msra.gmra.mrb[16].mxu0 %v5793_v21 }
0x15bc   :  { %5453 = vmatpush3.bf16.msra.mxu0 %v6300_v38  ;;  %5219 = vmatprep.mubr.msk.f32.mxu0 %vm5792_vm1, %v5793_v21 }
0x15bd   :  { %5454 = vmatprep.subr.bf16.mxu0 %v5791_v19 }
0x15bf   :  { %5220 = vmatmul.mubr.f32.vlgmr.msra.gmra.mrb[18].mxu0 %v5793_v21 }
0x15c0   :  { %5456 = vmatpush3.bf16.msra.mxu0 %v6294_v9  ;;  %5226 = vmatprep.mubr.msk.f32.mxu0 %vm5792_vm1, %v5793_v21 }
0x15c1   :  { %5457 = vmatprep.subr.bf16.mxu0 %v5791_v19 }
0x15c2   :  { %v5642_v34 = vpop.eup %5641 }
0x15c3   :  { %1933 = vrot.lane.b32.xlu0 %v5642_v34, %s5798_s10 }
0x15c7   :  { %1732 = vrot.lane.b32.xlu0 %v6253_v60, %s5800_s11 }
0x15cb   :  { %1306 = vrot.lane.b32.xlu0 %v6190_v24, %s5800_s11  ;;  %v1902_v24 = vsub.f32 1.0, %v5634_v18 }
0x15cf   :  { %875 = vrot.lane.b32.xlu0 %v6124_v43, %s5800_s11 }
0x15d3   :  { %440 = vrot.lane.b32.xlu0 %v6054_v15, %s5800_s11  ;;  %v5540_v15 = vld [vmem:[%s7092_s30 + $0x8] sm:$0xff]  }
0x15d4   :  { %5198 = vmatprep.subr.bf16.mxu1 %v5540_v15 }
0x15d5   :  { %5199 = vmatpush3.bf16.msra.mxu1 %v5540_v15 }
0x15d6   :  { %5463 = vmatprep.subr.bf16.mxu1 %v5791_v19 }
0x1624   :  { %v1905_v39 = vpop.permute.xlu1 %1904 }
0x1625   :  { %v1907_v42 = vmul.f32 %v1905_v39, %v1902_v24 }
0x1627   :  { %v1909_v43 = vadd.f32 %v1908_v40, %v1907_v42 }
0x1628   :  { %v1520_v44 = vpop.permute.xlu1 %1519 }
0x1629   :  { %1522 = vst.msk [vmem:[#allocation3 + $0x10] sm:$0xff] %vm444_vm4, %v1520_v44  ;;  %1940 = vrot.lane.b32.xlu0 %v1909_v43, %s5798_s10 }
0x1630   :  { %v1951_v10 = vld [vmem:[#allocation3 + $0x10] sm:$0xff] }
0x1635   :  { %v1934_v49 = vpop.permute.xlu0 %1933 }
0x1636   :  { %v1936_v51 = vmul.f32 %v1934_v49, %v1931_v48 }
0x1638   :  { %v1938_v53 = vadd.f32 %v1937_v50, %v1936_v51 }
0x1639   :  { %v1733_v54 = vpop.permute.xlu0 %1732 }
0x163a   :  { %1735 = vst.msk [vmem:[#allocation3 + $0x8] sm:$0xff] %vm444_vm4, %v1733_v54  ;;  %1945 = vrot.lane.b32.xlu1 %v1938_v53, %s5800_s11 }
0x163d   :  { %v1307_v55 = vpop.permute.xlu0 %1306 }
0x163e   :  { %1309 = vst.msk [vmem:[#allocation3 + $0x18] sm:$0xff] %vm444_vm4, %v1307_v55  ;;  %1092 = vrot.lane.b32.xlu1 %v6160_v33, %s5800_s11 }
0x1641   :  { %v876_v56 = vpop.permute.xlu0 %875  ;;  %v1950_v7 = vld [vmem:[#allocation3 + $0x8] sm:$0xff] }
0x1642   :  { %879 = vst.msk [vmem:[#allocation3 + $0x28] sm:$0xff] %vm444_vm4, %v876_v56  ;;  %658 = vrot.lane.b32.xlu1 %v6086_v58, %s5800_s11  ;;  %v6351_v58 = vld [vmem:[%s7094_s5] ss:$0 sm:$0xff] }
0x1643   :  { %1517 = vst.msk [vmem:[#allocation3 + $0x28] sm:$0xff] %vm229_vm3, %v6232_v14 }
0x1645   :  { %v441_v57 = vpop.permute.xlu0 %440  ;;  %v1952_v3 = vld [vmem:[#allocation3 + $0x18] sm:$0xff] }
0x1646   :  { %445 = vst.msk [vmem:[#allocation3 + $0x38] sm:$0xff] %vm444_vm4, %v441_v57  ;;  %v1958_v11 = vpack.c.bf16 %v1952_v3, %v1951_v10 }
0x164a   :  { %v1954_v13 = vld [vmem:[#allocation3 + $0x28] sm:$0xff] }
0x168e   :  { %v2149_v33 = vpop.f32.mrb[16].mxu0 }
0x168f   :  { %v2150_v61 = vadd.f32 %v6345_v37, %v2149_v33  ;;  %v5214_v27 = vpop.f32.mrb[17].mxu0 }
0x1691   :  { %2237 = vrot.lane.b32.xlu0 %v2150_v61, %s5796_s0 }
0x1692   :  { %v2225_v14 = vpop.f32.mrb[18].mxu0 }
0x1693   :  { %v2226_v62 = vadd.f32 %v6351_v58, %v2225_v14  ;;  %v5221_v63 = vpop.f32.mrb[19].mxu0 }
0x1695   :  { %2256 = vrot.lane.b32.xlu1 %v2226_v62, %s5794_s13 }
0x1699   :  { %2266 = vrot.lane.b32.xlu1 %v2226_v62, %s5795_s3 }
0x169b   :  { %v1941_v60 = vpop.permute.xlu0 %1940 }
0x169c   :  { %1943 = vst.msk [vmem:[#allocation3 + $0x38] sm:$0xff] %vm229_vm3, %v1941_v60 }
0x16a3   :  { %v1956_v41 = vld [vmem:[#allocation3 + $0x38] sm:$0xff] }
0x16ac   :  { %v1946_v0 = vpop.permute.xlu1 %1945 }
0x16ad   :  { %1948 = vst.msk [vmem:[#allocation3] sm:$0xff] %vm444_vm4, %v1946_v0 }
0x16b0   :  { %v1093_v2 = vpop.permute.xlu1 %1092 }
0x16b1   :  { %1096 = vst.msk [vmem:[#allocation3 + $0x20] sm:$0xff] %vm444_vm4, %v1093_v2 }
0x16b2   :  { %1304 = vst.msk [vmem:[#allocation3 + $0x20] sm:$0xff] %vm229_vm3, %v6200_v30 }
0x16b4   :  { %v659_v4 = vpop.permute.xlu1 %658  ;;  %v1949_v5 = vld [vmem:[#allocation3] sm:$0xff] }
0x16b5   :  { %662 = vst.msk [vmem:[#allocation3 + $0x30] sm:$0xff] %vm444_vm4, %v659_v4  ;;  %v1957_v23 = vpack.c.bf16 %v1950_v7, %v1949_v5 }
0x16b6   :  { %1730 = vst.msk [vmem:[#allocation3 + $0x30] sm:$0xff] %vm229_vm3, %v6264_v1  ;;  %v4853_v1 = vld [vmem:[%s7044_s9] ss:$0 sm:$0xff]  ;;  %s7095_s9 = smov 32  }
0x16b7   :  { %5200 = vmatprep.mubr.msk.bf16.mxu1 %vm127_vm0, %v1957_v23 }
0x16b8   :  { %5201 = vmatmul.mubr.msk.bf16.vlgmr.msra.gmra.mrb[24].mxu1 %vm127_vm0, %v1958_v11 }
0x16b9   :  { %v1953_v12 = vld [vmem:[#allocation3 + $0x20] sm:$0xff]  ;;  %5465 = vmatpush3.bf16.msra.mxu1 %v6300_v38 }
0x16ba   :  { %v1959_v30 = vpack.c.bf16 %v1954_v13, %v1953_v12  ;;  %5469 = vmatprep.subr.bf16.mxu1 %v5791_v19 }
0x16bc   :  { %5204 = vmatprep.mubr.msk.bf16.mxu1 %vm127_vm0, %v1959_v30 }
0x16bd   :  { %v1955_v6 = vld [vmem:[#allocation3 + $0x30] sm:$0xff] }
0x16be   :  { %v1960_v17 = vpack.c.bf16 %v1956_v41, %v1955_v6 }
0x16c0   :  { %5205 = vmatmul.mubr.msk.bf16.gmra.mrb[28].mxu1 %vm127_vm0, %v1960_v17 }
0x16c1   :  { %5247 = vmatprep.mubr.msk.f32.mxu1 %vm5792_vm1, %v5793_v21 }
0x1703   :  { %v2238_v50 = vpop.permute.xlu0 %2237 }
0x1707   :  { %v2257_v39 = vpop.permute.xlu1 %2256 }
0x170b   :  { %v2267_v54 = vpop.permute.xlu1 %2266 }
0x178b   :  { %v5202_v18 = vpop.f32.mrb[24].mxu1 }
0x178c   :  { %v2039_v22 = vadd.f32 %v5202_v18, %v4853_v1  ;;  %v2030_v20 = vpop.f32.mrb[25].mxu1 }
0x178d   :  { %v2031_v45 = vadd.f32 %v4853_v1, %v2030_v20  ;;  %v5203_v8 = vpop.f32.mrb[26].mxu1 }
0x178e   :  { %2063 = vst.msk [vmem:[#allocation2 + $0x10] sm:$0xff] %vm205_vm2, %v2039_v22  ;;  %v2042_v25 = vadd.f32 %v5203_v8, %v4853_v1  ;;  %v2033_v26 = vpop.f32.mrb[27].mxu1 }
0x178f   :  { %2061 = vst.msk [vmem:[#allocation2] sm:$0xff] %vm205_vm2, %v2031_v45  ;;  %v2034_v16 = vadd.f32 %v4853_v1, %v2033_v26 }
0x1790   :  { %2064 = vst.msk [vmem:[#allocation2 + $0x18] sm:$0xff] %vm205_vm2, %v2042_v25 }
0x1791   :  { %2062 = vst.msk [vmem:[#allocation2 + $0x8] sm:$0xff] %vm205_vm2, %v2034_v16 }
0x1793   :  { %v5206_v28 = vpop.f32.mrb[28].mxu1 }
0x1794   :  { %v2055_v29 = vadd.f32 %v5206_v28, %v4853_v1  ;;  %v2046_v59 = vpop.f32.mrb[29].mxu1 }
0x1795   :  { %v2047_v31 = vadd.f32 %v4853_v1, %v2046_v59  ;;  %v5207_v32 = vpop.f32.mrb[30].mxu1 }
0x1796   :  { %2067 = vst.msk [vmem:[#allocation2 + $0x30] sm:$0xff] %vm205_vm2, %v2055_v29  ;;  %v2058_v34 = vadd.f32 %v5207_v32, %v4853_v1  ;;  %v2049_v52 = vpop.f32.mrb[31].mxu1  ;;  %v6380_v35 = vld [vmem:[#allocation2] sm:$0xff] }
0x1797   :  { %2065 = vst.msk [vmem:[#allocation2 + $0x20] sm:$0xff] %vm205_vm2, %v2047_v31  ;;  %v2050_v47 = vadd.f32 %v4853_v1, %v2049_v52  ;;  %v2229_v36 = vadd.f32 %v2150_v61, %v6380_v35 }
0x1798   :  { %2068 = vst.msk [vmem:[#allocation2 + $0x38] sm:$0xff] %vm205_vm2, %v2058_v34  ;;  %v6423_v28 = vld [vmem:[#allocation2 + $0x8] sm:$0xff] }
0x1799   :  { %2066 = vst.msk [vmem:[#allocation2 + $0x28] sm:$0xff] %vm205_vm2, %v2050_v47  ;;  %v4862_v24 = vmul.f32 -1.442695, %v2229_v36 }
0x179b   :  { %5643 = vpow2.f32 %v4862_v24 }
0x179d   :  { %v6417_v17 = vld [vmem:[#allocation2 + $0x30] sm:$0xff] }
0x179f   :  { %v6386_v40 = vld [vmem:[#allocation2 + $0x38] sm:$0xff] }
0x17a0   :  { %v2259_v42 = vadd.f32 %v2257_v39, %v6386_v40 }
0x17a2   :  { %v4863_v43 = vmul.f32 -1.442695, %v2259_v42 }
0x17a4   :  { %5645 = vpow2.f32 %v4863_v43 }
0x17a5   :  { %v5644_v44 = vpop.eup %5643 }
0x17a6   :  { %v2233_v46 = vadd.f32 1.0, %v5644_v44 }
0x17a8   :  { %5647 = vrcp.f32 %v2233_v46 }
0x17ae   :  { %v5646_v15 = vpop.eup %5645 }
0x17af   :  { %v2263_v48 = vadd.f32 1.0, %v5646_v15 }
0x17b1   :  { %5649 = vrcp.f32 %v2263_v48 }
0x17b2   :  { %v5648_v49 = vpop.eup %5647 }
0x17b3   :  { %v2240_v51 = vmul.f32 %v5648_v49, %v2238_v50  ;;  %v2247_v14 = vsub.f32 1.0, %v5648_v49  ;;  %v2253_v63 = vmul.f32 0.0, %v5648_v49 }
0x17b5   :  { %2242 = vrot.lane.b32.xlu0 %v2240_v51, %s7095_s9 }
0x17bb   :  { %v5650_v53 = vpop.eup %5649 }
0x17bc   :  { %v2269_v55 = vmul.f32 %v5650_v53, %v2267_v54  ;;  %v2276_v3 = vsub.f32 1.0, %v5650_v53  ;;  %v2282_v5 = vmul.f32 0.0, %v5650_v53 }
0x17be   :  { %2271 = vrot.lane.b32.xlu1 %v2269_v55, %s7095_s9 }
0x1827   :  { %v2243_v56 = vpop.permute.xlu0 %2242 }
0x1828   :  { %v2245_v57 = vadd.f32 %v2243_v56, %v6380_v35 }
0x182a   :  { %5651 = vtanh.f32 %v2245_v57 }
0x1830   :  { %v2272_v60 = vpop.permute.xlu1 %2271 }
0x1831   :  { %v2274_v33 = vadd.f32 %v2272_v60, %v6386_v40 }
0x1833   :  { %5653 = vtanh.f32 %v2274_v33 }
0x1834   :  { %v5652_v61 = vpop.eup %5651 }
0x1835   :  { %2249 = vrot.lane.b32.xlu0 %v5652_v61, %s5798_s10 }
0x183d   :  { %v5654_v27 = vpop.eup %5653 }
0x183e   :  { %2278 = vrot.lane.b32.xlu1 %v5654_v27, %s5798_s10 }
0x18a7   :  { %v2250_v62 = vpop.permute.xlu0 %2249 }
0x18a8   :  { %v2252_v0 = vmul.f32 %v2250_v62, %v2247_v14  ;;  %v6455_v14 = vld [vmem:[#allocation2 + $0x28] sm:$0xff] }
0x18aa   :  { %v6395_v2 = vadd.f32 %v2253_v63, %v2252_v0 }
0x18ac   :  { %2285 = vrot.lane.b32.xlu0 %v6395_v2, %s5798_s10 }
0x18b0   :  { %v2279_v4 = vpop.permute.xlu1 %2278 }
0x18b1   :  { %v2281_v7 = vmul.f32 %v2279_v4, %v2276_v3 }
0x18b3   :  { %v6399_v23 = vadd.f32 %v2282_v5, %v2281_v7 }
0x18b5   :  { %2368 = vrot.lane.b32.xlu1 %v6399_v23, %s7096_s8 }
0x191e   :  { %v2286_v10 = vpop.permute.xlu0 %2285 }
0x191f   :  { %2288 = vst.msk [vmem:[#allocation3] sm:$0xff] %vm229_vm3, %v2286_v10  ;;  %5227 = vmatmul.mubr.msk.f32.vlgmr.msra.gmra.mrb[20].mxu0 %vm229_vm3, %v2286_v10 }
0x1920   :  { %5459 = vmatpush3.bf16.msra.mxu0 %v6300_v38  ;;  %5233 = vmatprep.mubr.msk.f32.mxu0 %vm5792_vm1, %v5793_v21 }
0x1921   :  { %5460 = vmatprep.subr.bf16.mxu0 %v5791_v19 }
0x1927   :  { %v2369_v11 = vpop.permute.xlu1 %2368 }
0x1928   :  { %5234 = vmatmul.mubr.msk.f32.vlgmr.msra.gmra.mrb[22].mxu0 %vm229_vm3, %v2369_v11 }
0x1929   :  { %5462 = vmatpush3.bf16.msra.mxu0 %v6294_v9  ;;  %5240 = vmatprep.mubr.msk.f32.mxu0 %vm5792_vm1, %v5793_v21 }
0x192a   :  { %5466 = vmatprep.subr.bf16.mxu0 %v5791_v19 }
0x19f2   :  { %v2364_v12 = vpop.f32.mrb[20].mxu0 }
0x19f3   :  { %v5228_v13 = vpop.f32.mrb[21].mxu0  ;;  %v2365_v16 = vadd.f32 %v6345_v37, %v2364_v12 }
0x19f4   :  { %v6461_v13 = vld [vmem:[#allocation2 + $0x10] sm:$0xff] }
0x19f5   :  { %v2442_v29 = vadd.f32 %v2365_v16, %v6423_v28 }
0x19f7   :  { %v4866_v59 = vmul.f32 -1.442695, %v2442_v29 }
0x19fb   :  { %v2438_v30 = vpop.f32.mrb[22].mxu0 }
0x19fc   :  { %v2439_v6 = vadd.f32 %v6351_v58, %v2438_v30  ;;  %v5235_v41 = vpop.f32.mrb[23].mxu0 }
0x19fe   :  { %2479 = vrot.lane.b32.xlu1 %v2439_v6, %s5795_s3  ;;  %2469 = vrot.lane.b32.xlu0 %v2439_v6, %s5794_s13 }
0x1a70   :  { %v2470_v1 = vpop.permute.xlu0 %2469  ;;  %v2480_v25 = vpop.permute.xlu1 %2479 }
0x1a71   :  { %v2472_v18 = vadd.f32 %v2470_v1, %v6417_v17 }
0x1a73   :  { %v4867_v22 = vmul.f32 -1.442695, %v2472_v18 }
0x1a75   :  { %5655 = vpow2.f32 %v4867_v22 }
0x1a7f   :  { %v5656_v20 = vpop.eup %5655 }
0x1a80   :  { %v2476_v45 = vadd.f32 1.0, %v5656_v20 }
0x1a82   :  { %5657 = vrcp.f32 %v2476_v45 }
0x1a83   :  { %5659 = vpow2.f32 %v4866_v59 }
0x1a8c   :  { %v5658_v8 = vpop.eup %5657 }
0x1a8d   :  { %v2482_v26 = vmul.f32 %v5658_v8, %v2480_v25  ;;  %v5660_v31 = vpop.eup %5659  ;;  %v2489_v44 = vsub.f32 1.0, %v5658_v8  ;;  %v2495_v15 = vmul.f32 %v5658_v8, %v6399_v23 }
0x1a8e   :  { %v2446_v32 = vadd.f32 1.0, %v5660_v31 }
0x1a8f   :  { %2484 = vrot.lane.b32.xlu0 %v2482_v26, %s7095_s9 }
0x1a90   :  { %5661 = vrcp.f32 %v2446_v32 }
0x1a93   :  { %2450 = vrot.lane.b32.xlu0 %v2365_v16, %s5796_s0 }
0x1a9a   :  { %v5662_v47 = vpop.eup %5661 }
0x1a9b   :  { %v2460_v53 = vsub.f32 1.0, %v5662_v47  ;;  %v2466_v55 = vmul.f32 %v5662_v47, %v6395_v2 }
0x1b01   :  { %v2485_v34 = vpop.permute.xlu0 %2484 }
0x1b02   :  { %v2487_v52 = vadd.f32 %v2485_v34, %v6417_v17 }
0x1b04   :  { %5663 = vtanh.f32 %v2487_v52 }
0x1b05   :  { %v2451_v36 = vpop.permute.xlu0 %2450 }
0x1b06   :  { %v2453_v24 = vmul.f32 %v5662_v47, %v2451_v36 }
0x1b08   :  { %2455 = vrot.lane.b32.xlu0 %v2453_v24, %s7095_s9 }
0x1b0e   :  { %v5664_v39 = vpop.eup %5663 }
0x1b0f   :  { %2491 = vrot.lane.b32.xlu1 %v5664_v39, %s5798_s10 }
0x1b7a   :  { %v2456_v42 = vpop.permute.xlu0 %2455 }
0x1b7b   :  { %v2458_v43 = vadd.f32 %v2456_v42, %v6423_v28 }
0x1b7d   :  { %5665 = vtanh.f32 %v2458_v43 }
0x1b81   :  { %v2492_v46 = vpop.permute.xlu1 %2491 }
0x1b82   :  { %v2494_v48 = vmul.f32 %v2492_v46, %v2489_v44 }
0x1b84   :  { %v6431_v49 = vadd.f32 %v2495_v15, %v2494_v48 }
0x1b86   :  { %2581 = vrot.lane.b32.xlu1 %v6431_v49, %s7096_s8 }
0x1b87   :  { %v5666_v50 = vpop.eup %5665 }
0x1b8a   :  { %2462 = vrot.lane.b32.xlu1 %v5666_v50, %s5798_s10  ;;  %v6490_v50 = vld [vmem:[#allocation2 + $0x20] sm:$0xff] }
0x1bf8   :  { %v2582_v51 = vpop.permute.xlu1 %2581 }
0x1bf9   :  { %5248 = vmatmul.mubr.msk.f32.vlgmr.msra.gmra.mrb[32].mxu1 %vm229_vm3, %v2582_v51 }
0x1bfa   :  { %5471 = vmatpush3.bf16.msra.mxu1 %v6300_v38  ;;  %5261 = vmatprep.mubr.msk.f32.mxu1 %vm5792_vm1, %v5793_v21 }
0x1bfb   :  { %5475 = vmatprep.subr.bf16.mxu1 %v5791_v19 }
0x1bfc   :  { %v2463_v54 = vpop.permute.xlu1 %2462 }
0x1bfd   :  { %v2465_v56 = vmul.f32 %v2463_v54, %v2460_v53 }
0x1bff   :  { %v6442_v57 = vadd.f32 %v2466_v55, %v2465_v56 }
0x1c01   :  { %2498 = vrot.lane.b32.xlu0 %v6442_v57, %s5798_s10 }
0x1c73   :  { %v2499_v60 = vpop.permute.xlu0 %2498 }
0x1c74   :  { %2501 = vst.msk [vmem:[#allocation3 + $0x8] sm:$0xff] %vm229_vm3, %v2499_v60  ;;  %5241 = vmatmul.mubr.msk.f32.vlgmr.msra.gmra.mrb[24].mxu0 %vm229_vm3, %v2499_v60 }
0x1c75   :  { %5468 = vmatpush3.bf16.msra.mxu0 %v6294_v9  ;;  %5254 = vmatprep.mubr.msk.f32.mxu0 %vm5792_vm1, %v5793_v21 }
0x1c76   :  { %5472 = vmatprep.subr.bf16.mxu0 %v5791_v19 }
0x1ccc   :  { %v2651_v33 = vpop.f32.mrb[32].mxu1 }
0x1ccd   :  { %v2652_v61 = vadd.f32 %v6351_v58, %v2651_v33  ;;  %v5249_v27 = vpop.f32.mrb[33].mxu1 }
0x1ccf   :  { %2682 = vrot.lane.b32.xlu1 %v2652_v61, %s5794_s13  ;;  %2692 = vrot.lane.b32.xlu0 %v2652_v61, %s5795_s3 }
0x1d41   :  { %v2683_v62 = vpop.permute.xlu1 %2682  ;;  %v2693_v10 = vpop.permute.xlu0 %2692 }
0x1d42   :  { %v2685_v63 = vadd.f32 %v2683_v62, %v6455_v14 }
0x1d44   :  { %v4871_v0 = vmul.f32 -1.442695, %v2685_v63  ;;  %v6496_v63 = vld [vmem:[#allocation2 + $0x18] sm:$0xff] }
0x1d46   :  { %5667 = vpow2.f32 %v4871_v0 }
0x1d47   :  { %v2577_v2 = vpop.f32.mrb[24].mxu0 }
0x1d48   :  { %v5242_v3 = vpop.f32.mrb[25].mxu0  ;;  %v2578_v12 = vadd.f32 %v6345_v37, %v2577_v2 }
0x1d4a   :  { %v2655_v30 = vadd.f32 %v2578_v12, %v6461_v13 }
0x1d4c   :  { %v4870_v6 = vmul.f32 -1.442695, %v2655_v30 }
0x1d50   :  { %v5668_v4 = vpop.eup %5667 }
0x1d51   :  { %v2689_v5 = vadd.f32 1.0, %v5668_v4 }
0x1d53   :  { %5669 = vrcp.f32 %v2689_v5 }
0x1d54   :  { %5671 = vpow2.f32 %v4870_v6 }
0x1d5d   :  { %v5670_v7 = vpop.eup %5669 }
0x1d5e   :  { %v2695_v11 = vmul.f32 %v5670_v7, %v2693_v10  ;;  %v5672_v41 = vpop.eup %5671  ;;  %v2702_v29 = vsub.f32 1.0, %v5670_v7  ;;  %v2708_v31 = vmul.f32 %v5670_v7, %v6431_v49 }
0x1d5f   :  { %v2659_v1 = vadd.f32 1.0, %v5672_v41 }
0x1d60   :  { %2697 = vrot.lane.b32.xlu1 %v2695_v11, %s7095_s9 }
0x1d61   :  { %5673 = vrcp.f32 %v2659_v1 }
0x1d64   :  { %2663 = vrot.lane.b32.xlu1 %v2578_v12, %s5796_s0 }
0x1d6b   :  { %v5674_v20 = vpop.eup %5673 }
0x1d6c   :  { %v2673_v36 = vsub.f32 1.0, %v5674_v20  ;;  %v2679_v39 = vmul.f32 %v5674_v20, %v6442_v57 }
0x1dd2   :  { %v2698_v18 = vpop.permute.xlu1 %2697 }
0x1dd3   :  { %v2700_v22 = vadd.f32 %v2698_v18, %v6455_v14 }
0x1dd5   :  { %5675 = vtanh.f32 %v2700_v22 }
0x1dd6   :  { %v2664_v45 = vpop.permute.xlu1 %2663 }
0x1dd7   :  { %v2666_v8 = vmul.f32 %v5674_v20, %v2664_v45 }
0x1dd9   :  { %2668 = vrot.lane.b32.xlu1 %v2666_v8, %s7095_s9 }
0x1ddf   :  { %v5676_v25 = vpop.eup %5675 }
0x1de0   :  { %2704 = vrot.lane.b32.xlu0 %v5676_v25, %s5798_s10 }
0x1e4b   :  { %v2669_v26 = vpop.permute.xlu1 %2668 }
0x1e4c   :  { %v2671_v16 = vadd.f32 %v2669_v26, %v6461_v13 }
0x1e4e   :  { %5677 = vtanh.f32 %v2671_v16 }
0x1e52   :  { %v2705_v59 = vpop.permute.xlu0 %2704 }
0x1e53   :  { %v2707_v32 = vmul.f32 %v2705_v59, %v2702_v29 }
0x1e55   :  { %v6469_v34 = vadd.f32 %v2708_v31, %v2707_v32 }
0x1e57   :  { %2794 = vrot.lane.b32.xlu0 %v6469_v34, %s7096_s8 }
0x1e58   :  { %v5678_v52 = vpop.eup %5677 }
0x1e5b   :  { %2675 = vrot.lane.b32.xlu0 %v5678_v52, %s5798_s10 }
0x1ec9   :  { %v2795_v47 = vpop.permute.xlu0 %2794 }
0x1eca   :  { %5262 = vmatmul.mubr.msk.f32.vlgmr.msra.gmra.mrb[34].mxu1 %vm229_vm3, %v2795_v47 }
0x1ecb   :  { %5477 = vmatpush3.bf16.msra.mxu1 %v6300_v38  ;;  %5275 = vmatprep.mubr.msk.f32.mxu1 %vm5792_vm1, %v5793_v21 }
0x1ecc   :  { %5481 = vmatprep.subr.bf16.mxu1 %v5791_v19 }
0x1ecd   :  { %v2676_v24 = vpop.permute.xlu0 %2675 }
0x1ece   :  { %v2678_v42 = vmul.f32 %v2676_v24, %v2673_v36 }
0x1ed0   :  { %v2680_v43 = vadd.f32 %v2679_v39, %v2678_v42 }
0x1ed2   :  { %2711 = vrot.lane.b32.xlu1 %v2680_v43, %s5798_s10 }
0x1f44   :  { %v2712_v44 = vpop.permute.xlu1 %2711 }
0x1f45   :  { %2714 = vst.msk [vmem:[#allocation3 + $0x10] sm:$0xff] %vm229_vm3, %v2712_v44  ;;  %5255 = vmatmul.mubr.msk.f32.vlgmr.msra.gmra.mrb[26].mxu0 %vm229_vm3, %v2712_v44 }
0x1f46   :  { %5474 = vmatpush3.bf16.msra.mxu0 %v6294_v9  ;;  %5268 = vmatprep.mubr.msk.f32.mxu0 %vm5792_vm1, %v5793_v21 }
0x1f47   :  { %5478 = vmatprep.subr.bf16.mxu0 %v5791_v19 }
0x1f9d   :  { %v2864_v46 = vpop.f32.mrb[34].mxu1 }
0x1f9e   :  { %v2865_v15 = vadd.f32 %v6351_v58, %v2864_v46  ;;  %v5263_v48 = vpop.f32.mrb[35].mxu1 }
0x1fa0   :  { %2895 = vrot.lane.b32.xlu0 %v2865_v15, %s5794_s13  ;;  %2905 = vrot.lane.b32.xlu1 %v2865_v15, %s5795_s3 }
0x2012   :  { %v2896_v51 = vpop.permute.xlu0 %2895  ;;  %v2906_v27 = vpop.permute.xlu1 %2905 }
0x2013   :  { %v2898_v53 = vadd.f32 %v2896_v51, %v6490_v50 }
0x2015   :  { %v4875_v54 = vmul.f32 -1.442695, %v2898_v53 }
0x2017   :  { %5679 = vpow2.f32 %v4875_v54 }
0x2018   :  { %v2790_v55 = vpop.f32.mrb[26].mxu0 }
0x2019   :  { %v2791_v56 = vadd.f32 %v6345_v37, %v2790_v55  ;;  %v5256_v57 = vpop.f32.mrb[27].mxu0 }
0x201b   :  { %2876 = vrot.lane.b32.xlu1 %v2791_v56, %s5796_s0  ;;  %v2868_v0 = vadd.f32 %v2791_v56, %v6496_v63 }
0x201d   :  { %v4874_v2 = vmul.f32 -1.442695, %v2868_v0 }
0x2021   :  { %v5680_v60 = vpop.eup %5679 }
0x2022   :  { %v2902_v33 = vadd.f32 1.0, %v5680_v60 }
0x2024   :  { %5681 = vrcp.f32 %v2902_v33 }
0x2025   :  { %5683 = vpow2.f32 %v4874_v2 }
0x202e   :  { %v5682_v61 = vpop.eup %5681 }
0x202f   :  { %v2908_v62 = vmul.f32 %v5682_v61, %v2906_v27  ;;  %v5684_v3 = vpop.eup %5683  ;;  %v2915_v18 = vsub.f32 1.0, %v5682_v61  ;;  %v2921_v20 = vmul.f32 %v5682_v61, %v6469_v34 }
0x2030   :  { %v2872_v4 = vadd.f32 1.0, %v5684_v3 }
0x2031   :  { %2910 = vrot.lane.b32.xlu0 %v2908_v62, %s7095_s9 }
0x2032   :  { %5685 = vrcp.f32 %v2872_v4 }
0x203c   :  { %v5686_v5 = vpop.eup %5685 }
0x203d   :  { %v2886_v25 = vsub.f32 1.0, %v5686_v5  ;;  %v2892_v16 = vmul.f32 %v5686_v5, %v2680_v43 }
0x208d   :  { %v2877_v7 = vpop.permute.xlu1 %2876 }
0x208e   :  { %v2879_v10 = vmul.f32 %v5686_v5, %v2877_v7 }
0x2090   :  { %2881 = vrot.lane.b32.xlu1 %v2879_v10, %s7095_s9 }
0x20a3   :  { %v2911_v11 = vpop.permute.xlu0 %2910 }
0x20a4   :  { %v2913_v12 = vadd.f32 %v2911_v11, %v6490_v50 }
0x20a6   :  { %5687 = vtanh.f32 %v2913_v12 }
0x20b0   :  { %v5688_v30 = vpop.eup %5687 }
0x20b1   :  { %2917 = vrot.lane.b32.xlu0 %v5688_v30, %s5798_s10 }
0x2102   :  { %v2882_v6 = vpop.permute.xlu1 %2881 }
0x2103   :  { %v2884_v41 = vadd.f32 %v2882_v6, %v6496_v63 }
0x2105   :  { %5689 = vtanh.f32 %v2884_v41 }
0x210f   :  { %v5690_v1 = vpop.eup %5689 }
0x2110   :  { %2888 = vrot.lane.b32.xlu1 %v5690_v1, %s5798_s10 }
0x2123   :  { %v2918_v22 = vpop.permute.xlu0 %2917 }
0x2124   :  { %v2920_v45 = vmul.f32 %v2918_v22, %v2915_v18 }
0x2126   :  { %v6505_v8 = vadd.f32 %v2921_v20, %v2920_v45 }
0x2128   :  { %3007 = vrot.lane.b32.xlu0 %v6505_v8, %s7096_s8 }
0x2182   :  { %v2889_v26 = vpop.permute.xlu1 %2888 }
0x2183   :  { %v2891_v29 = vmul.f32 %v2889_v26, %v2886_v25 }
0x2185   :  { %v2893_v59 = vadd.f32 %v2892_v16, %v2891_v29 }
0x2187   :  { %2924 = vrot.lane.b32.xlu0 %v2893_v59, %s5798_s10 }
0x219a   :  { %v3008_v31 = vpop.permute.xlu0 %3007 }
0x219b   :  { %5276 = vmatmul.mubr.msk.f32.vlgmr.msra.gmra.mrb[36].mxu1 %vm229_vm3, %v3008_v31 }
0x219c   :  { %5483 = vmatpush3.bf16.msra.mxu1 %v6300_v38  ;;  %5289 = vmatprep.mubr.msk.f32.mxu1 %vm5792_vm1, %v5793_v21 }
0x219d   :  { %5487 = vmatprep.subr.bf16.mxu1 %v5791_v19 }
0x21f9   :  { %v2925_v32 = vpop.permute.xlu0 %2924 }
0x21fa   :  { %2927 = vst.msk [vmem:[#allocation3 + $0x18] sm:$0xff] %vm229_vm3, %v2925_v32  ;;  %5269 = vmatmul.mubr.msk.f32.vlgmr.msra.gmra.mrb[28].mxu0 %vm229_vm3, %v2925_v32 }
0x21fb   :  { %5480 = vmatpush3.bf16.msra.mxu0 %v6294_v9  ;;  %5282 = vmatprep.mubr.msk.f32.mxu0 %vm5792_vm1, %v5793_v21 }
0x21fc   :  { %5484 = vmatprep.subr.bf16.mxu0 %v5791_v19 }
0x226e   :  { %v3077_v52 = vpop.f32.mrb[36].mxu1 }
0x226f   :  { %v3078_v47 = vadd.f32 %v6351_v58, %v3077_v52  ;;  %v5277_v36 = vpop.f32.mrb[37].mxu1 }
0x2271   :  { %3108 = vrot.lane.b32.xlu1 %v3078_v47, %s5794_s13  ;;  %3118 = vrot.lane.b32.xlu0 %v3078_v47, %s5795_s3 }
0x22cd   :  { %v3003_v24 = vpop.f32.mrb[28].mxu0 }
0x22ce   :  { %v3004_v39 = vadd.f32 %v6345_v37, %v3003_v24  ;;  %v5270_v42 = vpop.f32.mrb[29].mxu0 }
0x22d0   :  { %3089 = vrot.lane.b32.xlu0 %v3004_v39, %s5796_s0  ;;  %v3081_v55 = vadd.f32 %v3004_v39, %v6490_v50 }
0x22d2   :  { %v4878_v56 = vmul.f32 -1.442695, %v3081_v55 }
0x22e3   :  { %v3109_v43 = vpop.permute.xlu1 %3108  ;;  %v3119_v53 = vpop.permute.xlu0 %3118 }
0x22e4   :  { %v3111_v44 = vadd.f32 %v3109_v43, %v6496_v63 }
0x22e6   :  { %v4879_v46 = vmul.f32 -1.442695, %v3111_v44 }
0x22e8   :  { %5691 = vpow2.f32 %v4879_v46 }
0x22f2   :  { %v5692_v15 = vpop.eup %5691 }
0x22f3   :  { %v3115_v48 = vadd.f32 1.0, %v5692_v15 }
0x22f5   :  { %5693 = vrcp.f32 %v3115_v48 }
0x22f6   :  { %5695 = vpow2.f32 %v4878_v56 }
0x22ff   :  { %v5694_v51 = vpop.eup %5693 }
0x2300   :  { %v3121_v54 = vmul.f32 %v5694_v51, %v3119_v53  ;;  %v5696_v57 = vpop.eup %5695  ;;  %v3128_v7 = vsub.f32 1.0, %v5694_v51  ;;  %v3134_v11 = vmul.f32 %v5694_v51, %v6505_v8 }
0x2301   :  { %v3085_v60 = vadd.f32 1.0, %v5696_v57 }
0x2302   :  { %3123 = vrot.lane.b32.xlu1 %v3121_v54, %s7095_s9 }
0x2303   :  { %5697 = vrcp.f32 %v3085_v60 }
0x230d   :  { %v5698_v33 = vpop.eup %5697 }
0x230e   :  { %v3105_v41 = vmul.f32 %v5698_v33, %v2893_v59 }
0x2342   :  { %v3090_v61 = vpop.permute.xlu0 %3089 }
0x2343   :  { %v3092_v27 = vmul.f32 %v5698_v33, %v3090_v61 }
0x2345   :  { %3094 = vrot.lane.b32.xlu0 %v3092_v27, %s7095_s9 }
0x2374   :  { %v3124_v62 = vpop.permute.xlu1 %3123 }
0x2375   :  { %v3126_v0 = vadd.f32 %v3124_v62, %v6496_v63  ;;  %v3099_v63 = vsub.f32 1.0, %v5698_v33 }
0x2377   :  { %5699 = vtanh.f32 %v3126_v0 }
0x2381   :  { %v5700_v2 = vpop.eup %5699 }
0x2382   :  { %3130 = vrot.lane.b32.xlu1 %v5700_v2, %s5798_s10 }
0x23b7   :  { %v3095_v3 = vpop.permute.xlu0 %3094 }
0x23b8   :  { %v3097_v4 = vadd.f32 %v3095_v3, %v6490_v50 }
0x23ba   :  { %5701 = vtanh.f32 %v3097_v4 }
0x23c4   :  { %v5702_v5 = vpop.eup %5701 }
0x23c5   :  { %3101 = vrot.lane.b32.xlu0 %v5702_v5, %s5798_s10 }
0x23f4   :  { %v3131_v10 = vpop.permute.xlu1 %3130 }
0x23f5   :  { %v3133_v12 = vmul.f32 %v3131_v10, %v3128_v7 }
0x23f7   :  { %v6535_v30 = vadd.f32 %v3134_v11, %v3133_v12 }
0x23f9   :  { %3220 = vrot.lane.b32.xlu1 %v6535_v30, %s7096_s8 }
0x2437   :  { %v3102_v6 = vpop.permute.xlu0 %3101 }
0x2438   :  { %v3104_v1 = vmul.f32 %v3102_v6, %v3099_v63 }
0x243a   :  { %v3106_v18 = vadd.f32 %v3105_v41, %v3104_v1 }
0x243c   :  { %3137 = vrot.lane.b32.xlu1 %v3106_v18, %s5798_s10 }
0x246b   :  { %v3221_v50 = vpop.permute.xlu1 %3220 }
0x246c   :  { %5290 = vmatmul.mubr.msk.f32.vlgmr.msra.gmra.mrb[38].mxu1 %vm229_vm3, %v3221_v50 }
0x246d   :  { %5489 = vmatpush3.bf16.msra.mxu1 %v6300_v38  ;;  %5303 = vmatprep.mubr.msk.f32.mxu1 %vm5792_vm1, %v5793_v21 }
0x246e   :  { %5493 = vmatprep.subr.bf16.mxu1 %v5791_v19 }
0x24ae   :  { %v6545_v22 = vpop.permute.xlu1 %3137 }
0x24af   :  { %5283 = vmatmul.mubr.msk.f32.vlgmr.msra.gmra.mrb[30].mxu0 %vm229_vm3, %v6545_v22 }
0x24b0   :  { %5486 = vmatpush3.bf16.msra.mxu0 %v6294_v9  ;;  %5296 = vmatprep.mubr.msk.f32.mxu0 %vm5792_vm1, %v5793_v21 }
0x24b1   :  { %5490 = vmatprep.subr.bf16.mxu0 %v5791_v19 }
0x253f   :  { %v3290_v20 = vpop.f32.mrb[38].mxu1 }
0x2540   :  { %v3291_v45 = vadd.f32 %v6351_v58, %v3290_v20  ;;  %v5291_v25 = vpop.f32.mrb[39].mxu1 }
0x2542   :  { %3321 = vrot.lane.b32.xlu0 %v3291_v45, %s5794_s13  ;;  %3331 = vrot.lane.b32.xlu1 %v3291_v45, %s5795_s3 }
0x2582   :  { %v3216_v26 = vpop.f32.mrb[30].mxu0 }
0x2583   :  { %v3217_v16 = vadd.f32 %v6345_v37, %v3216_v26  ;;  %v5284_v29 = vpop.f32.mrb[31].mxu0 }
0x2585   :  { %3302 = vrot.lane.b32.xlu1 %v3217_v16, %s5796_s0  ;;  %v3294_v42 = vadd.f32 %v3217_v16, %v6455_v14 }
0x2587   :  { %v4882_v43 = vmul.f32 -1.442695, %v3294_v42 }
0x25b4   :  { %v3322_v59 = vpop.permute.xlu0 %3321  ;;  %v3332_v24 = vpop.permute.xlu1 %3331 }
0x25b5   :  { %v3324_v31 = vadd.f32 %v3322_v59, %v6461_v13 }
0x25b7   :  { %v4883_v32 = vmul.f32 -1.442695, %v3324_v31 }
0x25b9   :  { %5703 = vpow2.f32 %v4883_v32 }
0x25c3   :  { %v5704_v52 = vpop.eup %5703 }
0x25c4   :  { %v3328_v47 = vadd.f32 1.0, %v5704_v52 }
0x25c6   :  { %5705 = vrcp.f32 %v3328_v47 }
0x25c7   :  { %5707 = vpow2.f32 %v4882_v43 }
0x25d0   :  { %v5706_v36 = vpop.eup %5705 }
0x25d1   :  { %v3334_v39 = vmul.f32 %v5706_v36, %v3332_v24  ;;  %v5708_v44 = vpop.eup %5707  ;;  %v3341_v33 = vsub.f32 1.0, %v5706_v36  ;;  %v3347_v27 = vmul.f32 %v5706_v36, %v6535_v30 }
0x25d2   :  { %v3298_v46 = vadd.f32 1.0, %v5708_v44 }
0x25d3   :  { %3336 = vrot.lane.b32.xlu0 %v3334_v39, %s7095_s9 }
0x25d4   :  { %5709 = vrcp.f32 %v3298_v46 }
0x25de   :  { %v5710_v15 = vpop.eup %5709 }
0x25df   :  { %v3318_v3 = vmul.f32 %v5710_v15, %v3106_v18 }
0x25f7   :  { %v3303_v48 = vpop.permute.xlu1 %3302 }
0x25f8   :  { %v3305_v51 = vmul.f32 %v5710_v15, %v3303_v48 }
0x25fa   :  { %3307 = vrot.lane.b32.xlu0 %v3305_v51, %s7095_s9 }
0x2645   :  { %v3337_v53 = vpop.permute.xlu0 %3336 }
0x2646   :  { %v3339_v54 = vadd.f32 %v3337_v53, %v6461_v13  ;;  %v3312_v13 = vsub.f32 1.0, %v5710_v15 }
0x2648   :  { %5711 = vtanh.f32 %v3339_v54 }
0x2652   :  { %v5712_v55 = vpop.eup %5711 }
0x2653   :  { %3343 = vrot.lane.b32.xlu1 %v5712_v55, %s5798_s10 }
0x266c   :  { %v3308_v56 = vpop.permute.xlu0 %3307 }
0x266d   :  { %v3310_v57 = vadd.f32 %v3308_v56, %v6455_v14 }
0x266f   :  { %5713 = vtanh.f32 %v3310_v57 }
0x2679   :  { %v5714_v60 = vpop.eup %5713 }
0x267a   :  { %3314 = vrot.lane.b32.xlu1 %v5714_v60, %s5798_s10 }
0x26c5   :  { %v3344_v61 = vpop.permute.xlu1 %3343 }
0x26c6   :  { %v3346_v62 = vmul.f32 %v3344_v61, %v3341_v33 }
0x26c8   :  { %v6567_v0 = vadd.f32 %v3347_v27, %v3346_v62 }
0x26ca   :  { %3433 = vrot.lane.b32.xlu0 %v6567_v0, %s7096_s8 }
0x26ec   :  { %v3315_v2 = vpop.permute.xlu1 %3314 }
0x26ed   :  { %v3317_v4 = vmul.f32 %v3315_v2, %v3312_v13 }
0x26ef   :  { %v3319_v5 = vadd.f32 %v3318_v3, %v3317_v4 }
0x26f1   :  { %3350 = vrot.lane.b32.xlu0 %v3319_v5, %s5798_s10 }
0x273c   :  { %v3434_v14 = vpop.permute.xlu0 %3433 }
0x273d   :  { %5304 = vmatmul.mubr.msk.f32.vlgmr.msra.gmra.mrb[40].mxu1 %vm229_vm3, %v3434_v14 }
0x273e   :  { %5495 = vmatpush3.bf16.msra.mxu1 %v6300_v38  ;;  %5317 = vmatprep.mubr.msk.f32.mxu1 %vm5792_vm1, %v5793_v21 }
0x2763   :  { %v6576_v7 = vpop.permute.xlu0 %3350 }
0x2764   :  { %5297 = vmatmul.mubr.msk.f32.vlgmr.msra.gmra.mrb[32].mxu0 %vm229_vm3, %v6576_v7 }
0x2765   :  { %5492 = vmatpush3.bf16.msra.mxu0 %v6294_v9  ;;  %5310 = vmatprep.mubr.msk.f32.mxu0 %vm5792_vm1, %v5793_v21 }
0x2766   :  { %5496 = vmatprep.subr.bf16.mxu0 %v5791_v19 }
0x2810   :  { %v3503_v10 = vpop.f32.mrb[40].mxu1 }
0x2811   :  { %v3504_v11 = vadd.f32 %v6351_v58, %v3503_v10  ;;  %v5305_v12 = vpop.f32.mrb[41].mxu1 }
0x2813   :  { %3544 = vrot.lane.b32.xlu0 %v3504_v11, %s5795_s3  ;;  %3534 = vrot.lane.b32.xlu1 %v3504_v11, %s5794_s13 }
0x2837   :  { %v3429_v38 = vpop.f32.mrb[32].mxu0 }
0x2838   :  { %v3430_v63 = vadd.f32 %v6345_v37, %v3429_v38  ;;  %v5298_v6 = vpop.f32.mrb[33].mxu0 }
0x283a   :  { %3515 = vrot.lane.b32.xlu1 %v3430_v63, %s5796_s0  ;;  %v3507_v18 = vadd.f32 %v3430_v63, %v6417_v17  ;;  %v5801_v63 = vmov 0  }
0x283b   :  { %5536 = vset.pattern.permute.xlu0 %v5801_v63  ;;  %5535 = vset.pattern.permute.xlu1 %v5801_v63 }
0x283c   :  { %v4886_v50 = vmul.f32 -1.442695, %v3507_v18 }
0x2885   :  { %v3535_v9 = vpop.permute.xlu1 %3534  ;;  %v3545_v29 = vpop.permute.xlu0 %3544 }
0x2886   :  { %v3537_v41 = vadd.f32 %v3535_v9, %v6423_v28 }
0x2888   :  { %v4887_v1 = vmul.f32 -1.442695, %v3537_v41 }
0x288a   :  { %5715 = vpow2.f32 %v4887_v1 }
0x288b   :  { %5717 = vpow2.f32 %v4886_v50 }
0x2894   :  { %v5716_v20 = vpop.eup %5715 }
0x2895   :  { %v3541_v45 = vadd.f32 1.0, %v5716_v20  ;;  %v5718_v25 = vpop.eup %5717 }
0x2896   :  { %v3511_v26 = vadd.f32 1.0, %v5718_v25 }
0x2897   :  { %5719 = vrcp.f32 %v3541_v45  ;;  %v85_v45 = vld [vmem:[%s7045_s1 + $0x8] sm:$0xff] }
0x2898   :  { %5721 = vrcp.f32 %v3511_v26 }
0x28a1   :  { %v5720_v16 = vpop.eup %5719 }
0x28a2   :  { %v3547_v59 = vmul.f32 %v5720_v16, %v3545_v29  ;;  %v5722_v31 = vpop.eup %5721  ;;  %v3554_v44 = vsub.f32 1.0, %v5720_v16  ;;  %v3560_v15 = vmul.f32 %v5720_v16, %v6567_v0  ;;  %v84_v16 = vld [vmem:[%s7045_s1] sm:$0xff]  ;;  %v3866_v29 = vsel %vm3864_vm5, %v85_v45, 0.0 }
0x28a4   :  { %3549 = vrot.lane.b32.xlu0 %v3547_v59, %s7095_s9  ;;  %v3865_v59 = vsel %vm3864_vm5, %v84_v16, 0.0 }
0x28ac   :  { %v3516_v32 = vpop.permute.xlu1 %3515 }
0x28ad   :  { %v3518_v52 = vmul.f32 %v5722_v31, %v3516_v32  ;;  %v88_v32 = vld [vmem:[%s7045_s1 + $0x20] sm:$0xff] }
0x28af   :  { %3520 = vrot.lane.b32.xlu1 %v3518_v52, %s7095_s9 }
0x2916   :  { %v3550_v47 = vpop.permute.xlu0 %3549 }
0x2917   :  { %v3552_v36 = vadd.f32 %v3550_v47, %v6423_v28  ;;  %v3525_v28 = vsub.f32 1.0, %v5722_v31 }
0x2919   :  { %5723 = vtanh.f32 %v3552_v36 }
0x2921   :  { %v3521_v24 = vpop.permute.xlu1 %3520 }
0x2922   :  { %v3523_v39 = vadd.f32 %v3521_v24, %v6417_v17  ;;  %v3531_v17 = vmul.f32 %v5722_v31, %v3319_v5  ;;  %v3867_v31 = vadd.f32 %v3866_v29, %v3865_v59 }
0x2923   :  { %v5724_v42 = vpop.eup %5723 }
0x2924   :  { %5725 = vtanh.f32 %v3523_v39  ;;  %3556 = vrot.lane.b32.xlu0 %v5724_v42, %s5798_s10  ;;  %v3872_v39 = vsel %vm3864_vm5, %v88_v32, 0.0  ;;  %v89_v42 = vld [vmem:[%s7045_s1 + $0x28] sm:$0xff] }
0x292e   :  { %v5726_v43 = vpop.eup %5725 }
0x292f   :  { %3527 = vrot.lane.b32.xlu1 %v5726_v43, %s5798_s10 }
0x2996   :  { %v3557_v46 = vpop.permute.xlu0 %3556 }
0x2997   :  { %v3559_v48 = vmul.f32 %v3557_v46, %v3554_v44  ;;  %v3874_v44 = vsel %vm3864_vm5, %v89_v42, 0.0  ;;  %v90_v46 = vld [vmem:[%s7045_s1 + $0x30] sm:$0xff] }
0x2999   :  { %v6598_v51 = vadd.f32 %v3560_v15, %v3559_v48  ;;  %v3876_v48 = vsel %vm3864_vm5, %v90_v46, 0.0 }
0x299b   :  { %3646 = vrot.lane.b32.xlu0 %v6598_v51, %s7096_s8 }
0x29a1   :  { %v3528_v53 = vpop.permute.xlu1 %3527 }
0x29a2   :  { %v3530_v54 = vmul.f32 %v3528_v53, %v3525_v28  ;;  %v91_v28 = vld [vmem:[%s7045_s1 + $0x38] sm:$0xff] }
0x29a4   :  { %v6602_v55 = vadd.f32 %v3531_v17, %v3530_v54  ;;  %v3878_v17 = vsel %vm3864_vm5, %v91_v28, 0.0 }
0x29a6   :  { %3563 = vrot.lane.b32.xlu1 %v6602_v55, %s5798_s10 }
0x2a0d   :  { %v3647_v56 = vpop.permute.xlu0 %3646 }
0x2a0e   :  { %5318 = vmatmul.mubr.msk.f32.vlgmr.msra.gmra.mrb[42].mxu1 %vm229_vm3, %v3647_v56 }
0x2a18   :  { %v6607_v57 = vpop.permute.xlu1 %3563 }
0x2a19   :  { %5311 = vmatmul.mubr.msk.f32.vlgmr.msra.gmra.mrb[34].mxu0 %vm229_vm3, %v6607_v57 }
0x2a1a   :  { %5328 = vmatprep.mubr.msk.f32.mxu0 %vm5792_vm1, %v5793_v21 }
0x2ae1   :  { %v3716_v60 = vpop.f32.mrb[42].mxu1 }
0x2ae2   :  { %v3717_v33 = vadd.f32 %v6351_v58, %v3716_v60  ;;  %v5319_v61 = vpop.f32.mrb[43].mxu1 }
0x2ae4   :  { %3747 = vrot.lane.b32.xlu0 %v3717_v33, %s5794_s13  ;;  %3757 = vrot.lane.b32.xlu1 %v3717_v33, %s5795_s3 }
0x2aec   :  { %v3642_v27 = vpop.f32.mrb[34].mxu0 }
0x2aed   :  { %v3643_v62 = vadd.f32 %v6345_v37, %v3642_v27  ;;  %v5312_v13 = vpop.f32.mrb[35].mxu0 }
0x2aef   :  { %3728 = vrot.lane.b32.xlu0 %v3643_v62, %s5796_s0  ;;  %v3720_v2 = vadd.f32 %v3643_v62, %v6386_v40 }
0x2af1   :  { %v4890_v3 = vmul.f32 -1.442695, %v3720_v2 }
0x2af3   :  { %5727 = vpow2.f32 %v4890_v3 }
0x2afd   :  { %v5728_v4 = vpop.eup %5727 }
0x2afe   :  { %v3724_v5 = vadd.f32 1.0, %v5728_v4  ;;  %v3889_v4 = vld [vmem:[%s7047_s14] sm:$0xff] }
0x2b00   :  { %5729 = vrcp.f32 %v3724_v5 }
0x2b0a   :  { %v6620_v11 = vpop.eup %5729 }
0x2b0b   :  { %v3738_v5 = vsub.f32 1.0, %v6620_v11 }
0x2b56   :  { %v3748_v14 = vpop.permute.xlu0 %3747  ;;  %v3758_v41 = vpop.permute.xlu1 %3757 }
0x2b57   :  { %v3750_v58 = vadd.f32 %v3748_v14, %v6380_v35 }
0x2b59   :  { %v4891_v10 = vmul.f32 -1.442695, %v3750_v58 }
0x2b5b   :  { %5731 = vpow2.f32 %v4891_v10 }
0x2b61   :  { %v3729_v12 = vpop.permute.xlu0 %3728 }
0x2b62   :  { %v3731_v37 = vmul.f32 %v6620_v11, %v3729_v12 }
0x2b64   :  { %3733 = vrot.lane.b32.xlu0 %v3731_v37, %s7095_s9  ;;  %v3891_v37 = vld [vmem:[%s7047_s14 + $0x10] sm:$0xff] }
0x2b65   :  { %v5732_v38 = vpop.eup %5731 }
0x2b66   :  { %v3754_v6 = vadd.f32 1.0, %v5732_v38  ;;  %v3744_v38 = vmul.f32 %v6620_v11, %v6602_v55  ;;  %v6720_v55 = vld [vmem:[%s7049_s18] sm:$0xff]  }
0x2b68   :  { %5733 = vrcp.f32 %v3754_v6 }
0x2b72   :  { %v6624_v9 = vpop.eup %5733 }
0x2b73   :  { %v3760_v1 = vmul.f32 %v6624_v9, %v3758_v41  ;;  %v3767_v33 = vsub.f32 1.0, %v6624_v9  ;;  %v3773_v27 = vmul.f32 %v6624_v9, %v6598_v51 }
0x2b75   :  { %3762 = vrot.lane.b32.xlu1 %v3760_v1, %s7095_s9 }
0x2bd6   :  { %v3734_v18 = vpop.permute.xlu0 %3733 }
0x2bd7   :  { %v3736_v50 = vadd.f32 %v3734_v18, %v6386_v40  ;;  %v87_v40 = vld [vmem:[%s7045_s1 + $0x18] sm:$0xff] }
0x2bd8   :  { %v3870_v36 = vsel %vm3864_vm5, %v87_v40, 0.0 }
0x2bd9   :  { %5735 = vtanh.f32 %v3736_v50 }
0x2be3   :  { %v5736_v20 = vpop.eup %5735 }
0x2be4   :  { %3740 = vrot.lane.b32.xlu0 %v5736_v20, %s5798_s10 }
0x2be7   :  { %v3763_v25 = vpop.permute.xlu1 %3762 }
0x2be8   :  { %v3765_v26 = vadd.f32 %v3763_v25, %v6380_v35  ;;  %3808 = vperm.xlu0 %5536, %v85_v45   ;;  %v86_v35 = vld [vmem:[%s7045_s1 + $0x10] sm:$0xff] }
0x2bea   :  { %5737 = vtanh.f32 %v3765_v26 }
0x2bec   :  { %3142 = vrot.lane.b32.xlu0 %v6535_v30, %s5800_s11  ;;  %v3868_v30 = vsel %vm3864_vm5, %v86_v35, 0.0 }
0x2bed   :  { %v3869_v47 = vadd.f32 %v3868_v30, %v3867_v31 }
0x2bef   :  { %v3871_v24 = vadd.f32 %v3870_v36, %v3869_v47 }
0x2bf0   :  { %3818 = vperm.xlu0 %5536, %v87_v40  }
0x2bf1   :  { %v3873_v43 = vadd.f32 %v3872_v39, %v3871_v24 }
0x2bf3   :  { %v3875_v15 = vadd.f32 %v3874_v44, %v3873_v43 }
0x2bf4   :  { %v5738_v52 = vpop.eup %5737  ;;  %3823 = vperm.xlu0 %5536, %v88_v32  }
0x2bf5   :  { %3769 = vrot.lane.b32.xlu1 %v5738_v52, %s5798_s10  ;;  %v3877_v53 = vadd.f32 %v3876_v48, %v3875_v15 }
0x2bf7   :  { %v3879_v54 = vadd.f32 %v3878_v17, %v3877_v53 }
0x2bf9   :  { %3568 = vrot.lane.b32.xlu1 %v6598_v51, %s5800_s11  ;;  %v3880_v56 = vmax.f32 %v3879_v54, 1e-10  ;;  %v3890_v51 = vld [vmem:[%s7047_s14 + $0x8] sm:$0xff] }
0x2bfa   :  { %v5497_v14 = vpack.c.bf16 %v3890_v51, %v3889_v4  ;;  %v5544_v51 = vld [vmem:[%s7049_s18 + $0x8] sm:$0xff]  }
0x2bfc   :  { %5498 = vmatpush3.bf16.msra.mxu0 %v5497_v14 }
0x2bfd   :  { %3803 = vperm.xlu1 %5535, %v84_v16   ;;  %5499 = vmatprep.subr.bf16.mxu0 %v5791_v19 }
0x2c01   :  { %3355 = vrot.lane.b32.xlu1 %v6567_v0, %s5800_s11  ;;  %v5541_v0 = vld [vmem:[%s7046_s16] sm:$0xff]  }
0x2c02   :  { %5331 = vmatprep.subr.bf16.mxu1 %v5541_v0 }
0x2c03   :  { %5332 = vmatpush3.bf16.msra.mxu1 %v5541_v0 }
0x2c05   :  { %3813 = vperm.xlu1 %5535, %v86_v35  }
0x2c09   :  { %2929 = vrot.lane.b32.xlu1 %v6505_v8, %s5800_s11  ;;  %v5542_v8 = vld [vmem:[%s7046_s16 + $0x8] sm:$0xff]  }
0x2c0a   :  { %5333 = vmatprep.subr.bf16.mxu1 %v5542_v8 }
0x2c0b   :  { %5334 = vmatpush3.bf16.msra.mxu1 %v5542_v8 }
0x2c0c   :  { %5502 = vmatprep.subr.bf16.mxu1 %v5791_v19 }
0x2c0d   :  { %2716 = vrot.lane.b32.xlu1 %v6469_v34, %s5800_s11 }
0x2c11   :  { %3883 = vperm.xlu1 %5535, %v3880_v56  }
0x2c15   :  { %3828 = vperm.xlu1 %5535, %v89_v42  }
0x2c19   :  { %3833 = vperm.xlu1 %5535, %v90_v46  }
0x2c1d   :  { %3838 = vperm.xlu1 %5535, %v91_v28  }
0x2c56   :  { %v3741_v60 = vpop.permute.xlu0 %3740 }
0x2c57   :  { %v3743_v58 = vmul.f32 %v3741_v60, %v3738_v5 }
0x2c59   :  { %v3745_v6 = vadd.f32 %v3744_v38, %v3743_v58 }
0x2c67   :  { %v3770_v34 = vpop.permute.xlu1 %3769  ;;  %v6681_v61 = vpop.permute.xlu0 %3808 }
0x2c68   :  { %v3772_v62 = vmul.f32 %v3770_v34, %v3767_v33 }
0x2c6a   :  { %v3774_v13 = vadd.f32 %v3773_v27, %v3772_v62 }
0x2c6b   :  { %v3569_v2 = vpop.permute.xlu1 %3568  ;;  %v3143_v3 = vpop.permute.xlu0 %3142 }
0x2c6c   :  { %3571 = vst.msk [vmem:[#allocation3 + $0x8] sm:$0xff] %vm444_vm4, %v3569_v2  ;;  %3145 = vst.msk [vmem:[#allocation3 + $0x18] sm:$0xff] %vm444_vm4, %v3143_v3  ;;  %3781 = vrot.lane.b32.xlu0 %v3774_v13, %s5800_s11 }
0x2c70   :  { %2503 = vrot.lane.b32.xlu0 %v6431_v49, %s5800_s11  ;;  %v3892_v49 = vld [vmem:[%s7047_s14 + $0x18] sm:$0xff] }
0x2c71   :  { %v5500_v63 = vpack.c.bf16 %v3892_v49, %v3891_v37  ;;  %v4894_v49 = vld [vmem:[%s7051_s17] ss:$0 sm:$0xff] }
0x2c73   :  { %v3788_v10 = vld [vmem:[#allocation3 + $0x18] sm:$0xff]  ;;  %v3786_v12 = vld [vmem:[#allocation3 + $0x8] sm:$0xff]  ;;  %5501 = vmatpush3.bf16.msra.mxu0 %v5500_v63 }
0x2c74   :  { %3796 = vst.msk [vmem:[%s7048_s26 + $0x18] sm:$0xff] %vm127_vm0, %v3788_v10  ;;  %2290 = vrot.lane.b32.xlu0 %v6399_v23, %s5800_s11  ;;  %3794 = vst.msk [vmem:[%s7048_s26 + $0x8] sm:$0xff] %vm127_vm0, %v3786_v12  ;;  %5343 = vmatprep.subr.bf16.mxu0 %v6720_v55  ;;  %v3842_v59 = vmul.f32 %v6681_v61, %v3786_v12 }
0x2c76   :  { %v3850_v24 = vsel %vm127_vm0, %v3842_v59, 0.0 }
0x2c78   :  { %3776 = vrot.lane.b32.xlu0 %v3745_v6, %s5798_s10  ;;  %v4892_v6 = vld [vmem:[%s7052_s15] ss:$0 sm:$0xff] }
0x2c7c   :  { %v3804_v23 = vpop.permute.xlu1 %3803 }
0x2c80   :  { %v3356_v11 = vpop.permute.xlu1 %3355 }
0x2c81   :  { %3358 = vst.msk [vmem:[#allocation3 + $0x10] sm:$0xff] %vm444_vm4, %v3356_v11 }
0x2c84   :  { %v3814_v9 = vpop.permute.xlu1 %3813 }
0x2c88   :  { %v3787_v41 = vld [vmem:[#allocation3 + $0x10] sm:$0xff]  ;;  %v2930_v1 = vpop.permute.xlu1 %2929 }
0x2c89   :  { %3795 = vst.msk [vmem:[%s7048_s26 + $0x10] sm:$0xff] %vm127_vm0, %v3787_v41  ;;  %v3843_v18 = vmul.f32 %v3814_v9, %v3787_v41  ;;  %v6729_v50 = vpack.c.bf16 %v3788_v10, %v3787_v41 }
0x2c8a   :  { %2932 = vst.msk [vmem:[#allocation3 + $0x20] sm:$0xff] %vm444_vm4, %v2930_v1 }
0x2c8b   :  { %3140 = vst.msk [vmem:[#allocation3 + $0x20] sm:$0xff] %vm229_vm3, %v6545_v22  ;;  %v3819_v22 = vpop.permute.xlu0 %3818  ;;  %v3852_v42 = vsel %vm127_vm0, %v3843_v18, 0.0 }
0x2c8c   :  { %v2717_v20 = vpop.permute.xlu1 %2716  ;;  %v3844_v47 = vmul.f32 %v3819_v22, %v3788_v10 }
0x2c8d   :  { %2719 = vst.msk [vmem:[#allocation3 + $0x28] sm:$0xff] %vm444_vm4, %v2717_v20 }
0x2c8e   :  { %3353 = vst.msk [vmem:[#allocation3 + $0x28] sm:$0xff] %vm229_vm3, %v6576_v7  ;;  %v3854_v48 = vsel %vm127_vm0, %v3844_v47, 0.0 }
0x2c8f   :  { %v3824_v40 = vpop.permute.xlu0 %3823 }
0x2c90   :  { %v3884_v7 = vpop.permute.xlu1 %3883 }
0x2c91   :  { %5739 = vrcp.f32 %v3884_v7 }
0x2c92   :  { %v3789_v45 = vld [vmem:[#allocation3 + $0x20] sm:$0xff] }
0x2c93   :  { %3797 = vst.msk [vmem:[%s7048_s26 + $0x20] sm:$0xff] %vm127_vm0, %v3789_v45  ;;  %v3845_v43 = vmul.f32 %v3824_v40, %v3789_v45 }
0x2c94   :  { %v3829_v52 = vpop.permute.xlu1 %3828 }
0x2c95   :  { %v3790_v25 = vld [vmem:[#allocation3 + $0x28] sm:$0xff]  ;;  %v3856_v17 = vsel %vm127_vm0, %v3845_v43, 0.0 }
0x2c96   :  { %3798 = vst.msk [vmem:[%s7048_s26 + $0x28] sm:$0xff] %vm127_vm0, %v3790_v25  ;;  %v6745_v26 = vpack.c.bf16 %v3790_v25, %v3789_v45  ;;  %v3846_v28 = vmul.f32 %v3829_v52, %v3790_v25 }
0x2c98   :  { %v3834_v46 = vpop.permute.xlu1 %3833  ;;  %v3858_v0 = vsel %vm127_vm0, %v3846_v28, 0.0 }
0x2c9b   :  { %v5740_v3 = vpop.eup %5739 }
0x2c9c   :  { %v3839_v60 = vpop.permute.xlu1 %3838 }
0x2cde   :  { %v3782_v16 = vpop.permute.xlu0 %3781 }
0x2cdf   :  { %3784 = vst.msk [vmem:[#allocation3] sm:$0xff] %vm444_vm4, %v3782_v16 }
0x2ce2   :  { %v2504_v29 = vpop.permute.xlu0 %2503 }
0x2ce3   :  { %2506 = vst.msk [vmem:[#allocation3 + $0x30] sm:$0xff] %vm444_vm4, %v2504_v29 }
0x2ce4   :  { %3566 = vst.msk [vmem:[#allocation3 + $0x30] sm:$0xff] %vm229_vm3, %v6607_v57 }
0x2ce6   :  { %v2291_v35 = vpop.permute.xlu0 %2290  ;;  %v3785_v31 = vld [vmem:[#allocation3] sm:$0xff] }
0x2ce7   :  { %2293 = vst.msk [vmem:[#allocation3 + $0x38] sm:$0xff] %vm444_vm4, %v2291_v35  ;;  %v3841_v30 = vmul.f32 %v3804_v23, %v3785_v31  ;;  %v3973_v32 = vpack.c.bf16 %v3786_v12, %v3785_v31 }
0x2ce8   :  { %3793 = vst.msk [vmem:[%s7048_s26] sm:$0xff] %vm127_vm0, %v3785_v31 }
0x2ce9   :  { %v3849_v36 = vsel %vm127_vm0, %v3841_v30, 0.0  ;;  %5335 = vmatprep.mubr.msk.bf16.mxu1 %vm127_vm0, %v3973_v32 }
0x2cea   :  { %v3851_v57 = vadd.f32 %v3850_v24, %v3849_v36  ;;  %v3777_v39 = vpop.permute.xlu0 %3776  ;;  %5336 = vmatmul.mubr.msk.bf16.vlgmr.msra.gmra.mrb[44].mxu1 %vm127_vm0, %v6729_v50 }
0x2ceb   :  { %3779 = vst.msk [vmem:[#allocation3 + $0x38] sm:$0xff] %vm229_vm3, %v3777_v39  ;;  %5339 = vmatprep.mubr.msk.bf16.mxu1 %vm127_vm0, %v6745_v26  ;;  %v3791_v44 = vld [vmem:[#allocation3 + $0x30] sm:$0xff] }
0x2cec   :  { %v3853_v15 = vadd.f32 %v3852_v42, %v3851_v57  ;;  %3799 = vst.msk [vmem:[%s7048_s26 + $0x30] sm:$0xff] %vm127_vm0, %v3791_v44  ;;  %v3847_v54 = vmul.f32 %v3834_v46, %v3791_v44 }
0x2cee   :  { %v3855_v53 = vadd.f32 %v3854_v48, %v3853_v15  ;;  %v3860_v61 = vsel %vm127_vm0, %v3847_v54, 0.0  ;;  %v4267_v54 = vld [vmem:[%s7053_s20 + $0x10] sm:$0xff] }
0x2cf0   :  { %v3857_v56 = vadd.f32 %v3856_v17, %v3855_v53  ;;  %v4265_v53 = vld [vmem:[%s7053_s20] sm:$0xff]  ;;  %v4266_v17 = vld [vmem:[%s7053_s20 + $0x8] sm:$0xff] }
0x2cf2   :  { %v3792_v8 = vld [vmem:[#allocation3 + $0x38] sm:$0xff]  ;;  %v3859_v33 = vadd.f32 %v3858_v0, %v3857_v56  ;;  %v5503_v56 = vpack.c.bf16 %v4266_v17, %v4265_v53 }
0x2cf3   :  { %3800 = vst.msk [vmem:[%s7048_s26 + $0x38] sm:$0xff] %vm127_vm0, %v3792_v8  ;;  %v3848_v34 = vmul.f32 %v3839_v60, %v3792_v8  ;;  %v3976_v27 = vpack.c.bf16 %v3792_v8, %v3791_v44  ;;  %v4268_v0 = vld [vmem:[%s7053_s20 + $0x18] sm:$0xff]  ;;  %v4344_v60 = vld [vmem:[%s7054_s21] sm:$0xff]  ;;  %v4345_v8 = vld [vmem:[%s7054_s21 + $0x8] sm:$0xff] }
0x2cf4   :  { %v3861_v62 = vadd.f32 %v3860_v61, %v3859_v33  ;;  %v5509_v33 = vpack.c.bf16 %v4345_v8, %v4344_v60  ;;  %v4347_v61 = vld [vmem:[%s7054_s21 + $0x18] sm:$0xff]  ;;  %5504 = vmatpush3.bf16.msra.mxu1 %v5503_v56 }
0x2cf5   :  { %v3862_v13 = vsel %vm127_vm0, %v3848_v34, 0.0  ;;  %5340 = vmatmul.mubr.msk.bf16.gmra.mrb[48].mxu1 %vm127_vm0, %v3976_v27  ;;  %v4346_v34 = vld [vmem:[%s7054_s21 + $0x10] sm:$0xff]  ;;  %5505 = vmatprep.subr.bf16.mxu1 %v5791_v19 }
0x2cf6   :  { %v3863_v2 = vadd.f32 %v3862_v13, %v3861_v62  ;;  %5363 = vmatprep.mubr.msk.f32.mxu1 %vm5792_vm1, %v5793_v21  ;;  %v5512_v62 = vpack.c.bf16 %v4347_v61, %v4346_v34 }
0x2cf8   :  { %v3887_v4 = vmul.f32 %v5740_v3, %v3863_v2 }
0x2cfa   :  { %3888 = vst.msk [vmem:[%s7050_s27] sm:$0xff] %vm127_vm0, %v3887_v4  ;;  %5329 = vmatmul.mubr.msk.f32.vlgmr.msra.gmra.mrb[36].mxu0 %vm127_vm0, %v3887_v4 }
0x2cfb   :  { %5344 = vmatpush3.bf16.msra.mxu0 %v6720_v55  ;;  %5347 = vmatprep.mubr.msk.bf16.mxu0 %vm127_vm0, %v3973_v32 }
0x2cfc   :  { %5345 = vmatprep.subr.bf16.mxu0 %v5544_v51 }
0x2cff   :  { %5346 = vmatpush3.bf16.msra.mxu0 %v5544_v51 }
0x2d00   :  { %5508 = vmatprep.subr.bf16.mxu0 %v5791_v19 }
0x2d02   :  { %5348 = vmatmul.mubr.msk.bf16.vlgmr.msra.gmra.mrb[40].mxu0 %vm127_vm0, %v6729_v50 }
0x2d03   :  { %5351 = vmatprep.mubr.msk.bf16.mxu0 %vm127_vm0, %v6745_v26  ;;  %5510 = vmatpush3.bf16.msra.mxu0 %v5509_v33 }
0x2d04   :  { %5511 = vmatprep.subr.bf16.mxu0 %v5791_v19 }
0x2d07   :  { %5513 = vmatpush3.bf16.msra.mxu0 %v5512_v62 }
0x2d0a   :  { %5352 = vmatmul.mubr.msk.bf16.gmra.mrb[44].mxu0 %vm127_vm0, %v3976_v27  ;;  %v5506_v27 = vpack.c.bf16 %v4268_v0, %v4267_v54 }
0x2d0b   :  { %5374 = vmatprep.mubr.msk.f32.mxu0 %vm5792_vm1, %v5793_v21 }
0x2d0c   :  { %5507 = vmatpush3.bf16.msra.mxu1 %v5506_v27 }
0x2d0d   :  { %5514 = vmatprep.subr.bf16.mxu1 %v5791_v19 }
0x2dbd   :  { %v5337_v5 = vpop.f32.mrb[44].mxu1 }
0x2dbe   :  { %v4046_v14 = vpop.f32.mrb[45].mxu1  ;;  %v6810_v1 = vadd.f32 %v5337_v5, %v4894_v49 }
0x2dbf   :  { %v5338_v58 = vpop.f32.mrb[46].mxu1  ;;  %v6806_v23 = vadd.f32 %v4894_v49, %v4046_v14 }
0x2dc0   :  { %v4049_v10 = vpop.f32.mrb[47].mxu1  ;;  %v6820_v40 = vadd.f32 %v5338_v58, %v4894_v49 }
0x2dc1   :  { %v6808_v11 = vadd.f32 %v4894_v49, %v4049_v10 }
0x2dc8   :  { %v5341_v12 = vpop.f32.mrb[48].mxu1 }
0x2dc9   :  { %v4062_v37 = vpop.f32.mrb[49].mxu1  ;;  %v6822_v16 = vadd.f32 %v5341_v12, %v4894_v49 }
0x2dca   :  { %v5342_v38 = vpop.f32.mrb[50].mxu1  ;;  %v6812_v18 = vadd.f32 %v4894_v49, %v4062_v37 }
0x2dcb   :  { %v4065_v63 = vpop.f32.mrb[51].mxu1  ;;  %v6841_v39 = vadd.f32 %v5342_v38, %v4894_v49 }
0x2dcc   :  { %v6834_v52 = vadd.f32 %v4894_v49, %v4065_v63 }
0x2dcd   :  { %v3969_v55 = vpop.f32.mrb[36].mxu0 }
0x2dce   :  { %v3970_v9 = vadd.f32 %v4892_v6, %v3969_v55  ;;  %v5330_v41 = vpop.f32.mrb[37].mxu0 }
0x2dd0   :  { %v4078_v50 = vmul.f32 %v6808_v11, %v3970_v9  ;;  %v4077_v20 = vmul.f32 %v6806_v23, %v3970_v9  ;;  %v4081_v26 = vmul.f32 %v6812_v18, %v3970_v9  ;;  %v4079_v22 = vmul.f32 %v6810_v1, %v3970_v9 }
0x2dd1   :  { %v4083_v31 = vmul.f32 %v6822_v16, %v3970_v9  ;;  %v4080_v30 = vmul.f32 %v6820_v40, %v3970_v9  ;;  %v4082_v57 = vmul.f32 %v6834_v52, %v3970_v9  ;;  %v4084_v46 = vmul.f32 %v6841_v39, %v3970_v9 }
0x2dd2   :  { %v4088_v45 = vsel %vm127_vm0, %v4078_v50, 0.0  ;;  %v4085_v25 = vsel %vm127_vm0, %v4077_v20, 0.0  ;;  %v4097_v59 = vsel %vm127_vm0, %v4081_v26, 0.0  ;;  %v4091_v35 = vsel %vm127_vm0, %v4079_v22, 0.0 }
0x2dd3   :  { %4089 = vadd.xlane.f32.xlu1 %v4088_v45  ;;  %4086 = vadd.xlane.f32.xlu0 %v4085_v25  ;;  %v4103_v36 = vsel %vm127_vm0, %v4083_v31, 0.0  ;;  %v4094_v24 = vsel %vm127_vm0, %v4080_v30, 0.0  ;;  %v4100_v44 = vsel %vm127_vm0, %v4082_v57, 0.0  ;;  %v4106_v28 = vsel %vm127_vm0, %v4084_v46, 0.0 }
0x2dd5   :  { %v6824_v7 = vpop.f32.mrb[40].mxu0 }
0x2dd6   :  { %v6826_v29 = vpop.f32.mrb[41].mxu0 }
0x2dd7   :  { %v6832_v32 = vpop.f32.mrb[42].mxu0  ;;  %4098 = vadd.xlane.f32.xlu1 %v4097_v59  ;;  %4092 = vadd.xlane.f32.xlu0 %v4091_v35 }
0x2dd8   :  { %v6836_v47 = vpop.f32.mrb[43].mxu0 }
0x2ddb   :  { %4104 = vadd.xlane.f32.xlu1 %v4103_v36  ;;  %4095 = vadd.xlane.f32.xlu0 %v4094_v24 }
0x2ddd   :  { %v6843_v42 = vpop.f32.mrb[44].mxu0 }
0x2dde   :  { %v6845_v43 = vpop.f32.mrb[45].mxu0 }
0x2ddf   :  { %v6849_v15 = vpop.f32.mrb[46].mxu0  ;;  %4101 = vadd.xlane.f32.xlu0 %v4100_v44 }
0x2de0   :  { %v6851_v48 = vpop.f32.mrb[47].mxu0 }
0x2de3   :  { %4107 = vadd.xlane.f32.xlu0 %v4106_v28 }
0x2e60   :  { %v4087_v13 = vpop.xlane.xlu0 %4086  ;;  %v4090_v2 = vpop.xlane.xlu1 %4089 }
0x2e64   :  { %v4093_v3 = vpop.xlane.xlu0 %4092  ;;  %v4099_v4 = vpop.xlane.xlu1 %4098 }
0x2e65   :  { %v4109_v12 = vmax.f32 %v4087_v13, %v4099_v4 }
0x2e68   :  { %v4096_v51 = vpop.xlane.xlu0 %4095  ;;  %v4105_v14 = vpop.xlane.xlu1 %4104 }
0x2e69   :  { %v4111_v37 = vmax.f32 %v4093_v3, %v4105_v14 }
0x2e6c   :  { %v4102_v5 = vpop.xlane.xlu0 %4101 }
0x2e6d   :  { %v4110_v58 = vmax.f32 %v4090_v2, %v4102_v5 }
0x2e6f   :  { %v4113_v49 = vmax.f32 %v4109_v12, %v4110_v58 }
0x2e70   :  { %v4108_v10 = vpop.xlane.xlu0 %4107 }
0x2e71   :  { %v4112_v38 = vmax.f32 %v4096_v51, %v4108_v10 }
0x2e73   :  { %v4114_v63 = vmax.f32 %v4111_v37, %v4112_v38 }
0x2e75   :  { %v4115_v6 = vmax.f32 %v4113_v49, %v4114_v63 }
0x2e77   :  { %v4116_v55 = vsub.f32 %v4087_v13, %v4115_v6  ;;  %v4117_v9 = vsub.f32 %v4090_v2, %v4115_v6  ;;  %v4118_v41 = vsub.f32 %v4093_v3, %v4115_v6  ;;  %v4119_v50 = vsub.f32 %v4096_v51, %v4115_v6 }
0x2e78   :  { %v4120_v25 = vsub.f32 %v4099_v4, %v4115_v6  ;;  %v4121_v22 = vsub.f32 %v4102_v5, %v4115_v6  ;;  %v4122_v35 = vsub.f32 %v4105_v14, %v4115_v6  ;;  %v4123_v30 = vsub.f32 %v4108_v10, %v4115_v6 }
0x2e79   :  { %v4124_v20 = vmul.f32 1.442695, %v4116_v55  ;;  %v4126_v45 = vmul.f32 1.442695, %v4117_v9  ;;  %v4128_v26 = vmul.f32 1.442695, %v4118_v41 }
0x2e7a   :  { %v4130_v59 = vmul.f32 1.442695, %v4119_v50  ;;  %v4132_v31 = vmul.f32 1.442695, %v4120_v25  ;;  %v4134_v36 = vmul.f32 1.442695, %v4121_v22 }
0x2e7b   :  { %5741 = vpow2.f32 %v4124_v20  ;;  %v4136_v24 = vmul.f32 1.442695, %v4122_v35  ;;  %v4138_v57 = vmul.f32 1.442695, %v4123_v30  ;;  %v4263_v30 = vld [vmem:[%s7055_s19 + $0x10] sm:$0xff] }
0x2e7c   :  { %5743 = vpow2.f32 %v4126_v45 }
0x2e7d   :  { %5745 = vpow2.f32 %v4128_v26 }
0x2e7e   :  { %5747 = vpow2.f32 %v4130_v59 }
0x2e7f   :  { %5749 = vpow2.f32 %v4132_v31 }
0x2e80   :  { %5751 = vpow2.f32 %v4134_v36  ;;  %v4264_v36 = vld [vmem:[%s7055_s19 + $0x18] sm:$0xff] }
0x2e81   :  { %5753 = vpow2.f32 %v4136_v24 }
0x2e82   :  { %5755 = vpow2.f32 %v4138_v57  ;;  %v5518_v57 = vpack.c.bf16 %v4264_v36, %v4263_v30 }
0x2e85   :  { %v5742_v44 = vpop.eup %5741 }
0x2e86   :  { %v5744_v46 = vpop.eup %5743 }
0x2e87   :  { %v4140_v28 = vadd.f32 %v5744_v46, %v5742_v44  ;;  %v5746_v53 = vpop.eup %5745 }
0x2e88   :  { %v5748_v54 = vpop.eup %5747 }
0x2e89   :  { %v4141_v17 = vadd.f32 %v5746_v53, %v4140_v28  ;;  %v5750_v0 = vpop.eup %5749 }
0x2e8a   :  { %v5752_v8 = vpop.eup %5751 }
0x2e8b   :  { %v4142_v56 = vadd.f32 %v5748_v54, %v4141_v17  ;;  %v5754_v34 = vpop.eup %5753  ;;  %v4909_v17 = vld [vmem:[%s7056_s22] ss:$0 sm:$0xff] }
0x2e8c   :  { %v5756_v27 = vpop.eup %5755 }
0x2e8d   :  { %v4143_v60 = vadd.f32 %v5750_v0, %v4142_v56 }
0x2e8f   :  { %v4144_v33 = vadd.f32 %v5752_v8, %v4143_v60 }
0x2e91   :  { %v4145_v61 = vadd.f32 %v5754_v34, %v4144_v33 }
0x2e93   :  { %v4146_v62 = vadd.f32 %v5756_v27, %v4145_v61 }
0x2e95   :  { %5757 = vrcp.f32 %v4146_v62 }
0x2e9f   :  { %v5758_v13 = vpop.eup %5757 }
0x2ea0   :  { %v4148_v2 = vmul.f32 %v5758_v13, %v5742_v44  ;;  %v4149_v3 = vmul.f32 %v5758_v13, %v5744_v46  ;;  %v4150_v4 = vmul.f32 %v5758_v13, %v5746_v53  ;;  %v4151_v51 = vmul.f32 %v5758_v13, %v5748_v54 }
0x2ea1   :  { %v4152_v5 = vmul.f32 %v5758_v13, %v5750_v0  ;;  %v4153_v12 = vmul.f32 %v5758_v13, %v5752_v8  ;;  %v4154_v6 = vmul.f32 %v5758_v13, %v5754_v34  ;;  %v4155_v50 = vmul.f32 %v5758_v13, %v5756_v27  ;;  %v5545_v13 = vld [vmem:[%s7057_s23] sm:$0xff]  }
0x2ea2   :  { %v4156_v14 = vmul.f32 %v4148_v2, %v6806_v23  ;;  %v4157_v58 = vmul.f32 %v4149_v3, %v6808_v11  ;;  %v4158_v10 = vmul.f32 %v4150_v4, %v6810_v1  ;;  %v4159_v37 = vmul.f32 %v4151_v51, %v6820_v40  ;;  %v5546_v2 = vld [vmem:[%s7057_s23 + $0x8] sm:$0xff]   ;;  %5388 = vmatprep.subr.bf16.mxu0 %v5545_v13 }
0x2ea3   :  { %v4160_v55 = vmul.f32 %v4152_v5, %v6812_v18  ;;  %v4161_v23 = vmul.f32 %v4153_v12, %v6834_v52  ;;  %v4162_v20 = vmul.f32 %v4154_v6, %v6822_v16  ;;  %v4163_v25 = vmul.f32 %v4155_v50, %v6841_v39  ;;  %v4261_v16 = vld [vmem:[%s7055_s19] sm:$0xff]  ;;  %v4262_v52 = vld [vmem:[%s7055_s19 + $0x8] sm:$0xff] }
0x2ea4   :  { %v4165_v38 = vsel %vm4164_vm6, %v4156_v14, 0.0  ;;  %v4166_v49 = vsel %vm4164_vm6, %v4157_v58, 0.0  ;;  %v4168_v9 = vsel %vm4164_vm6, %v4158_v10, 0.0  ;;  %v4170_v11 = vsel %vm4164_vm6, %v4159_v37, 0.0 }
0x2ea5   :  { %v4167_v63 = vadd.f32 %v4166_v49, %v4165_v38  ;;  %v4172_v40 = vsel %vm4164_vm6, %v4160_v55, 0.0  ;;  %v4174_v26 = vsel %vm4164_vm6, %v4161_v23, 0.0  ;;  %v4176_v18 = vsel %vm4164_vm6, %v4162_v20, 0.0 }
0x2ea6   :  { %v4178_v35 = vsel %vm4164_vm6, %v4163_v25, 0.0  ;;  %v5515_v39 = vpack.c.bf16 %v4262_v52, %v4261_v16 }
0x2ea7   :  { %v4169_v41 = vadd.f32 %v4168_v9, %v4167_v63 }
0x2ea9   :  { %v4171_v1 = vadd.f32 %v4170_v11, %v4169_v41 }
0x2eab   :  { %v4173_v45 = vadd.f32 %v4172_v40, %v4171_v1 }
0x2ead   :  { %v4175_v22 = vadd.f32 %v4174_v26, %v4173_v45 }
0x2eaf   :  { %v4177_v59 = vadd.f32 %v4176_v18, %v4175_v22 }
0x2eb1   :  { %v4179_v31 = vadd.f32 %v4178_v35, %v4177_v59 }
0x2eb3   :  { %4270 = vrot.lane.b32.xlu1 %v4179_v31, %s5796_s0 }
0x2f25   :  { %v4271_v24 = vpop.permute.xlu1 %4270 }
0x2f26   :  { %5364 = vmatmul.mubr.msk.f32.vlgmr.msra.gmra.mrb[52].mxu1 %vm127_vm0, %v4271_v24  ;;  %5375 = vmatmul.mubr.msk.f32.vlgmr.msra.gmra.mrb[38].mxu0 %vm127_vm0, %v4271_v24 }
0x2f27   :  { %5516 = vmatpush3.bf16.msra.mxu1 %v5515_v39  ;;  %5385 = vmatprep.mubr.msk.f32.mxu1 %vm5792_vm1, %v5793_v21 }
0x2f28   :  { %5517 = vmatprep.subr.bf16.mxu1 %v5791_v19  ;;  %5389 = vmatpush3.bf16.msra.mxu0 %v5545_v13 }
0x2f29   :  { %5390 = vmatprep.subr.bf16.mxu0 %v5546_v2 }
0x2f2b   :  { %5519 = vmatpush3.bf16.msra.mxu1 %v5518_v57 }
0x2f2c   :  { %5391 = vmatpush3.bf16.msra.mxu0 %v5546_v2 }
0x2f2e   :  { %5386 = vmatmul.mubr.msk.f32.vlgmr.msra.gmra.mrb[54].mxu1 %vm127_vm0, %v4271_v24 }
0x2ff9   :  { %v6916_v44 = vpop.f32.mrb[52].mxu1  ;;  %v6918_v46 = vpop.f32.mrb[38].mxu0 }
0x2ffa   :  { %v5365_v28 = vpop.f32.mrb[53].mxu1  ;;  %v5376_v53 = vpop.f32.mrb[39].mxu0 }
0x3001   :  { %v4491_v54 = vpop.f32.mrb[54].mxu1 }
0x3002   :  { %v4492_v56 = vadd.f32 %v4909_v17, %v4491_v54  ;;  %v5387_v0 = vpop.f32.mrb[55].mxu1 }
0x3004   :  { %4496 = vrot.lane.b32.xlu0 %v4492_v56, %s7095_s9 }
0x3008   :  { %4583 = vrot.lane.b32.xlu0 %v6836_v47, %s7096_s8 }
0x3076   :  { %v4497_v19 = vpop.permute.xlu0 %4496 }
0x3077   :  { %v4499_v21 = vadd.f32 %v4497_v19, %v6826_v29  ;;  %v4501_v60 = vadd.f32 %v6824_v7, %v4497_v19  ;;  %v4500_v8 = vadd.f32 %v4497_v19, %v6836_v47  ;;  %v4503_v33 = vadd.f32 %v4497_v19, %v6845_v43 }
0x3078   :  { %v4502_v34 = vadd.f32 %v6832_v32, %v4497_v19  ;;  %v4506_v61 = vadd.f32 %v6849_v15, %v4497_v19  ;;  %v4504_v27 = vadd.f32 %v4497_v19, %v6851_v48  ;;  %v4505_v62 = vadd.f32 %v6843_v42, %v4497_v19 }
0x3079   :  { %4515 = vrot.lane.b32.xlu1 %v4499_v21, %s5796_s0  ;;  %4519 = vrot.lane.b32.xlu0 %v4501_v60, %s5796_s0 }
0x307d   :  { %4517 = vrot.lane.b32.xlu1 %v4500_v8, %s5796_s0  ;;  %4523 = vrot.lane.b32.xlu0 %v4503_v33, %s5796_s0 }
0x3081   :  { %4521 = vrot.lane.b32.xlu1 %v4502_v34, %s5796_s0  ;;  %4529 = vrot.lane.b32.xlu0 %v4506_v61, %s5796_s0 }
0x3085   :  { %4587 = vrot.lane.b32.xlu0 %v6832_v32, %s7096_s8  ;;  %4525 = vrot.lane.b32.xlu1 %v4504_v27, %s5796_s0 }
0x3089   :  { %4591 = vrot.lane.b32.xlu0 %v6851_v48, %s7096_s8  ;;  %4527 = vrot.lane.b32.xlu1 %v4505_v62, %s5796_s0 }
0x308d   :  { %4595 = vrot.lane.b32.xlu0 %v6849_v15, %s7096_s8  ;;  %4585 = vrot.lane.b32.xlu1 %v6824_v7, %s7096_s8  ;;  %v4584_v15 = vpop.permute.xlu0 %4583 }
0x3091   :  { %4589 = vrot.lane.b32.xlu1 %v6845_v43, %s7096_s8 }
0x3095   :  { %4593 = vrot.lane.b32.xlu1 %v6843_v42, %s7096_s8 }
0x30eb   :  { %v4516_v3 = vpop.permute.xlu1 %4515  ;;  %v4520_v4 = vpop.permute.xlu0 %4519 }
0x30ec   :  { %4539 = vst.msk [vmem:[#allocation4] sm:$0xff] %vm127_vm0, %v4516_v3  ;;  %4541 = vst.msk [vmem:[#allocation4 + $0x10] sm:$0xff] %vm127_vm0, %v4520_v4 }
0x30ef   :  { %v4518_v51 = vpop.permute.xlu1 %4517  ;;  %v4524_v5 = vpop.permute.xlu0 %4523 }
0x30f0   :  { %4540 = vst.msk [vmem:[#allocation4 + $0x8] sm:$0xff] %vm127_vm0, %v4518_v51  ;;  %4543 = vst.msk [vmem:[#allocation4 + $0x20] sm:$0xff] %vm127_vm0, %v4524_v5  ;;  %v4911_v51 = vld [vmem:[%s7058_s24] ss:$0 sm:$0xff] }
0x30f3   :  { %v4569_v14 = vld [vmem:[#allocation4] sm:$0xff]  ;;  %v4549_v58 = vld [vmem:[#allocation4 + $0x10] sm:$0xff]  ;;  %v4522_v10 = vpop.permute.xlu1 %4521  ;;  %v4530_v12 = vpop.permute.xlu0 %4529 }
0x30f4   :  { %v4604_v37 = vadd.f32 %v4584_v15, %v4569_v14  ;;  %v4556_v38 = vadd.f32 %v4549_v58, %v6836_v47  ;;  %4542 = vst.msk [vmem:[#allocation4 + $0x18] sm:$0xff] %vm127_vm0, %v4522_v10  ;;  %4546 = vst.msk [vmem:[#allocation4 + $0x38] sm:$0xff] %vm127_vm0, %v4530_v12 }
0x30f6   :  { %4611 = vst.msk [vmem:[#allocation4] sm:$0xff] %vm127_vm0, %v4604_v37  ;;  %4563 = vst.msk [vmem:[#allocation4 + $0x10] sm:$0xff] %vm127_vm0, %v4556_v38 }
0x30f7   :  { %v4548_v49 = vld [vmem:[#allocation4 + $0x8] sm:$0xff]  ;;  %v4551_v63 = vld [vmem:[#allocation4 + $0x20] sm:$0xff]  ;;  %v4526_v6 = vpop.permute.xlu1 %4525  ;;  %v4588_v50 = vpop.permute.xlu0 %4587 }
0x30f8   :  { %v4555_v55 = vadd.f32 %v4548_v49, %v6826_v29  ;;  %v4558_v9 = vadd.f32 %v6832_v32, %v4551_v63  ;;  %4544 = vst.msk [vmem:[#allocation4 + $0x28] sm:$0xff] %vm127_vm0, %v4526_v6 }
0x30fa   :  { %4562 = vst.msk [vmem:[#allocation4 + $0x8] sm:$0xff] %vm127_vm0, %v4555_v55  ;;  %4565 = vst.msk [vmem:[#allocation4 + $0x20] sm:$0xff] %vm127_vm0, %v4558_v9 }
0x30fb   :  { %v4550_v47 = vld [vmem:[#allocation4 + $0x18] sm:$0xff]  ;;  %v4528_v23 = vpop.permute.xlu1 %4527  ;;  %v4592_v26 = vpop.permute.xlu0 %4591 }
0x30fc   :  { %v4554_v41 = vld [vmem:[#allocation4 + $0x38] sm:$0xff]  ;;  %v4557_v11 = vadd.f32 %v6824_v7, %v4550_v47  ;;  %4545 = vst.msk [vmem:[#allocation4 + $0x30] sm:$0xff] %vm127_vm0, %v4528_v23 }
0x30fd   :  { %v4561_v1 = vadd.f32 %v6843_v42, %v4554_v41  ;;  %v4618_v20 = vld [vmem:[#allocation4] sm:$0xff]  ;;  %v4571_v29 = vld [vmem:[#allocation4 + $0x10] sm:$0xff] }
0x30fe   :  { %v4619_v32 = vsub.f32 %v4618_v20, %v6916_v44  ;;  %4564 = vst.msk [vmem:[#allocation4 + $0x18] sm:$0xff] %vm127_vm0, %v4557_v11  ;;  %v4606_v40 = vadd.f32 %v4588_v50, %v4571_v29 }
0x30ff   :  { %4568 = vst.msk [vmem:[#allocation4 + $0x38] sm:$0xff] %vm127_vm0, %v4561_v1  ;;  %v4552_v45 = vld [vmem:[#allocation4 + $0x28] sm:$0xff]  ;;  %v4586_v25 = vpop.permute.xlu1 %4585  ;;  %v4596_v17 = vpop.permute.xlu0 %4595 }
0x3100   :  { %4620 = vst.msk [vmem:[#allocation4] sm:$0xff] %vm127_vm0, %v4619_v32  ;;  %4613 = vst.msk [vmem:[#allocation4 + $0x10] sm:$0xff] %vm127_vm0, %v4606_v40  ;;  %v4559_v7 = vadd.f32 %v4552_v45, %v6845_v43 }
0x3101   :  { %v4573_v42 = vld [vmem:[#allocation4 + $0x20] sm:$0xff]  ;;  %v4570_v22 = vld [vmem:[#allocation4 + $0x8] sm:$0xff] }
0x3102   :  { %4566 = vst.msk [vmem:[#allocation4 + $0x28] sm:$0xff] %vm127_vm0, %v4559_v7  ;;  %v4608_v18 = vadd.f32 %v4592_v26, %v4573_v42  ;;  %v4605_v59 = vadd.f32 %v4586_v25, %v4570_v22 }
0x3103   :  { %v4553_v35 = vld [vmem:[#allocation4 + $0x30] sm:$0xff]  ;;  %v4590_v31 = vpop.permute.xlu1 %4589 }
0x3104   :  { %4615 = vst.msk [vmem:[#allocation4 + $0x20] sm:$0xff] %vm127_vm0, %v4608_v18  ;;  %v4560_v16 = vadd.f32 %v4553_v35, %v6851_v48  ;;  %4612 = vst.msk [vmem:[#allocation4 + $0x8] sm:$0xff] %vm127_vm0, %v4605_v59 }
0x3105   :  { %v4572_v39 = vld [vmem:[#allocation4 + $0x18] sm:$0xff] }
0x3106   :  { %v4622_v52 = vld [vmem:[#allocation4 + $0x38] sm:$0xff]  ;;  %4567 = vst.msk [vmem:[#allocation4 + $0x30] sm:$0xff] %vm127_vm0, %v4560_v16  ;;  %v4607_v43 = vadd.f32 %v4590_v31, %v4572_v39 }
0x3107   :  { %v4623_v30 = vsub.f32 %v4622_v52, %v6918_v46  ;;  %v4594_v24 = vpop.permute.xlu1 %4593  ;;  %v4625_v57 = vld [vmem:[#allocation4] sm:$0xff]  ;;  %v4627_v56 = vld [vmem:[#allocation4 + $0x10] sm:$0xff] }
0x3108   :  { %4614 = vst.msk [vmem:[#allocation4 + $0x18] sm:$0xff] %vm127_vm0, %v4607_v43  ;;  %v4633_v48 = vmax.f32 %v4625_v57, 0.0  ;;  %v4635_v21 = vmax.f32 %v4627_v56, 0.0 }
0x3109   :  { %4624 = vst.msk [vmem:[#allocation4 + $0x38] sm:$0xff] %vm127_vm0, %v4623_v30  ;;  %v4574_v36 = vld [vmem:[#allocation4 + $0x28] sm:$0xff] }
0x310a   :  { %v4609_v44 = vadd.f32 %v4594_v24, %v4574_v36 }
0x310b   :  { %v4626_v28 = vld [vmem:[#allocation4 + $0x8] sm:$0xff]  ;;  %v4629_v8 = vld [vmem:[#allocation4 + $0x20] sm:$0xff] }
0x310c   :  { %4616 = vst.msk [vmem:[#allocation4 + $0x28] sm:$0xff] %vm127_vm0, %v4609_v44  ;;  %v4634_v53 = vmax.f32 %v4626_v28, 0.0  ;;  %v4637_v61 = vmax.f32 %v4629_v8, 0.0 }
0x310d   :  { %v4575_v54 = vld [vmem:[#allocation4 + $0x30] sm:$0xff] }
0x310e   :  { %v4610_v46 = vadd.f32 %v4596_v17, %v4575_v54  ;;  %v4641_v0 = vpack.c.bf16 %v4634_v53, %v4633_v48 }
0x310f   :  { %v4628_v19 = vld [vmem:[#allocation4 + $0x18] sm:$0xff] }
0x3110   :  { %4617 = vst.msk [vmem:[#allocation4 + $0x30] sm:$0xff] %vm127_vm0, %v4610_v46  ;;  %5392 = vmatprep.mubr.msk.bf16.mxu0 %vm127_vm0, %v4641_v0  ;;  %v4636_v60 = vmax.f32 %v4628_v19, 0.0  ;;  %v4632_v62 = vld [vmem:[#allocation4 + $0x38] sm:$0xff] }
0x3111   :  { %v4640_v3 = vmax.f32 %v4632_v62, 0.0 }
0x3112   :  { %v4642_v33 = vpack.c.bf16 %v4636_v60, %v4635_v21 }
0x3113   :  { %v4630_v34 = vld [vmem:[#allocation4 + $0x28] sm:$0xff] }
0x3114   :  { %5393 = vmatmul.mubr.msk.bf16.vlgmr.msra.gmra.mrb[48].mxu0 %vm127_vm0, %v4642_v33  ;;  %v4638_v27 = vmax.f32 %v4630_v34, 0.0 }
0x3116   :  { %v4643_v13 = vpack.c.bf16 %v4638_v27, %v4637_v61 }
0x3117   :  { %v4631_v2 = vld [vmem:[#allocation4 + $0x30] sm:$0xff] }
0x3118   :  { %5396 = vmatprep.mubr.msk.bf16.mxu0 %vm127_vm0, %v4643_v13  ;;  %v4639_v15 = vmax.f32 %v4631_v2, 0.0 }
0x311a   :  { %v4644_v4 = vpack.c.bf16 %v4640_v3, %v4639_v15 }
0x311c   :  { %5397 = vmatmul.mubr.msk.bf16.gmra.mrb[52].mxu0 %vm127_vm0, %v4644_v4 }
0x31e7   :  { %v5394_v5 = vpop.f32.mrb[48].mxu0 }
0x31e8   :  { %v4723_v14 = vadd.f32 %v5394_v5, %v4911_v51  ;;  %v4714_v58 = vpop.f32.mrb[49].mxu0 }
0x31e9   :  { %v4715_v10 = vadd.f32 %v4911_v51, %v4714_v58  ;;  %v5395_v12 = vpop.f32.mrb[50].mxu0 }
0x31ea   :  { %v4920_v37 = vmul.f32 -1.442695, %v4723_v14  ;;  %v4726_v38 = vadd.f32 %v5395_v12, %v4911_v51  ;;  %v4717_v49 = vpop.f32.mrb[51].mxu0 }
0x31eb   :  { %v4918_v63 = vmul.f32 -1.442695, %v4715_v10  ;;  %v4718_v6 = vadd.f32 %v4911_v51, %v4717_v49 }
0x31ec   :  { %5759 = vpow2.f32 %v4920_v37  ;;  %v4921_v55 = vmul.f32 -1.442695, %v4726_v38 }
0x31ed   :  { %5761 = vpow2.f32 %v4918_v63  ;;  %v4919_v9 = vmul.f32 -1.442695, %v4718_v6 }
0x31ee   :  { %5763 = vpow2.f32 %v4921_v55 }
0x31ef   :  { %5765 = vpow2.f32 %v4919_v9  ;;  %v5398_v47 = vpop.f32.mrb[52].mxu0 }
0x31f0   :  { %v4739_v41 = vadd.f32 %v5398_v47, %v4911_v51  ;;  %v4730_v50 = vpop.f32.mrb[53].mxu0 }
0x31f1   :  { %v4731_v23 = vadd.f32 %v4911_v51, %v4730_v50  ;;  %v5399_v11 = vpop.f32.mrb[54].mxu0 }
0x31f2   :  { %v4924_v1 = vmul.f32 -1.442695, %v4739_v41  ;;  %v4742_v20 = vadd.f32 %v5399_v11, %v4911_v51  ;;  %v4733_v29 = vpop.f32.mrb[55].mxu0 }
0x31f3   :  { %v4922_v32 = vmul.f32 -1.442695, %v4731_v23  ;;  %v4734_v40 = vadd.f32 %v4911_v51, %v4733_v29 }
0x31f4   :  { %5767 = vpow2.f32 %v4924_v1  ;;  %v4925_v45 = vmul.f32 -1.442695, %v4742_v20 }
0x31f5   :  { %5769 = vpow2.f32 %v4922_v32  ;;  %v4923_v25 = vmul.f32 -1.442695, %v4734_v40 }
0x31f6   :  { %v5760_v7 = vpop.eup %5759  ;;  %5771 = vpow2.f32 %v4925_v45 }
0x31f7   :  { %v5762_v42 = vpop.eup %5761  ;;  %v4771_v26 = vadd.f32 1.0, %v5760_v7  ;;  %5773 = vpow2.f32 %v4923_v25 }
0x31f8   :  { %v5764_v22 = vpop.eup %5763  ;;  %v4769_v18 = vadd.f32 1.0, %v5762_v42 }
0x31f9   :  { %v5766_v59 = vpop.eup %5765  ;;  %5775 = vrcp.f32 %v4771_v26  ;;  %v4772_v35 = vadd.f32 1.0, %v5764_v22 }
0x31fa   :  { %5777 = vrcp.f32 %v4769_v18  ;;  %v4770_v31 = vadd.f32 1.0, %v5766_v59 }
0x31fb   :  { %5779 = vrcp.f32 %v4772_v35 }
0x31fc   :  { %5781 = vrcp.f32 %v4770_v31 }
0x31fe   :  { %v5768_v16 = vpop.eup %5767 }
0x31ff   :  { %v5770_v52 = vpop.eup %5769  ;;  %v4775_v39 = vadd.f32 1.0, %v5768_v16 }
0x3200   :  { %v5772_v30 = vpop.eup %5771  ;;  %v4773_v43 = vadd.f32 1.0, %v5770_v52 }
0x3201   :  { %v5774_v36 = vpop.eup %5773  ;;  %5783 = vrcp.f32 %v4775_v39  ;;  %v4776_v24 = vadd.f32 1.0, %v5772_v30 }
0x3202   :  { %5785 = vrcp.f32 %v4773_v43  ;;  %v4774_v57 = vadd.f32 1.0, %v5774_v36 }
0x3203   :  { %v5776_v44 = vpop.eup %5775  ;;  %5787 = vrcp.f32 %v4776_v24 }
0x3204   :  { %v5778_v28 = vpop.eup %5777  ;;  %4796 = vst.msk [vmem:[%s7059_s25 + $0x10] sm:$0xff] %vm4793_vm7, %v5776_v44  ;;  %5789 = vrcp.f32 %v4774_v57 }
0x3205   :  { %v5780_v48 = vpop.eup %5779  ;;  %4794 = vst.msk [vmem:[%s7059_s25] sm:$0xff] %vm4793_vm7, %v5778_v28 }
0x3206   :  { %v5782_v53 = vpop.eup %5781  ;;  %4797 = vst.msk [vmem:[%s7059_s25 + $0x18] sm:$0xff] %vm4793_vm7, %v5780_v48 }
0x3207   :  { %4795 = vst.msk [vmem:[%s7059_s25 + $0x8] sm:$0xff] %vm4793_vm7, %v5782_v53 }
0x320b   :  { %v5784_v17 = vpop.eup %5783 }
0x320c   :  { %v5786_v54 = vpop.eup %5785  ;;  %4800 = vst.msk [vmem:[%s7059_s25 + $0x30] sm:$0xff] %vm4793_vm7, %v5784_v17 }
0x320d   :  { %v5788_v56 = vpop.eup %5787  ;;  %4798 = vst.msk [vmem:[%s7059_s25 + $0x20] sm:$0xff] %vm4793_vm7, %v5786_v54 }
0x320e   :  { %v5790_v46 = vpop.eup %5789  ;;  %4801 = vst.msk [vmem:[%s7059_s25 + $0x38] sm:$0xff] %vm4793_vm7, %v5788_v56 }
0x320f   :  { %4799 = vst.msk [vmem:[%s7059_s25 + $0x28] sm:$0xff] %vm4793_vm7, %v5790_v46 }

</bundles_post_ra>
